<compile_context>
chip_gen: v7x
topology: tpu7x:2x2x1
jax: 0.10.0
libtpu: 0.0.40
codegen_flags: <defaults>
</compile_context>

<pallas_src>
import math
from functools import partial

import jax
import jax.numpy as jnp
from jax.experimental import pallas as pl
from jax.experimental.pallas import tpu as pltpu

# ----------------------------- model hyper-params (small) -------------------
IMG = 16          # img_size
PATCH = 4         # patch_size
IN_C = 3          # in_c
EMBED = 32        # embed_dim
DEPTH = 2         # number of transformer blocks
HEADS = 4         # num_heads
MLP_RATIO = 4
NUM_CLASSES = 10
BATCH = 2

GRID = IMG // PATCH
NUM_PATCHES = GRID * GRID            # 16
NTOK = NUM_PATCHES + 1               # +1 cls token = 17
NTOK_PAD = 24                        # padded to a multiple of 8 sublanes
PATCH_K = IN_C * PATCH * PATCH       # 48
HEAD_DIM = EMBED // HEADS
SCALE = HEAD_DIM ** -0.5
LN_EPS = 1e-6
MLP_HIDDEN = EMBED * MLP_RATIO
NEG_INF = -1e30


# ----------------------------- shared math helpers ---------------------------
def _layernorm(x, w2d, b2d):
    # x: (rows, C); w2d/b2d: (1, C)
    mu = jnp.mean(x, axis=-1, keepdims=True)
    var = jnp.mean((x - mu) ** 2, axis=-1, keepdims=True)
    return (x - mu) * jax.lax.rsqrt(var + LN_EPS) * w2d + b2d


def _erf_gelu(x, recip):
    """nn.GELU() (erf form).  erf via Abramowitz-Stegun 7.1.26 (|err| < 1.5e-7).
    `recip` supplies the reciprocal (pl.reciprocal(approx=True) inside kernels,
    plain division in the pure-JAX reference)."""
    a1, a2, a3, a4, a5 = 0.254829592, -0.284496736, 1.421413741, -1.453152027, 1.061405429
    p = 0.3275911
    z = x * 0.7071067811865476
    s = jnp.where(z >= 0.0, 1.0, -1.0)
    az = jnp.abs(z)
    t = recip(1.0 + p * az)
    poly = ((((a5 * t + a4) * t + a3) * t + a2) * t + a1) * t
    erf = s * (1.0 - poly * jnp.exp(-az * az))
    return 0.5 * x * (1.0 + erf)


# ----------------------------- fused Pallas kernel ---------------------------
def _vit_fused_kernel(
        patches_ref, base_ref, bias_ref, pw_ref,
        ln1w_ref, ln1b_ref, qw_ref, qb_ref, kw_ref, kb_ref, vw_ref, vb_ref,
        prw_ref, prb_ref, ln2w_ref, ln2b_ref,
        f1w_ref, f1b_ref, f2w_ref, f2b_ref,
        nw_ref, nb_ref, hw_ref, hb_ref,
        out_ref, buf_ref,
        *, bs, ntok_pad, depth, num_heads, scale):
    """Entire ViT forward for `bs` batch elements folded onto the sublane axis.

    patches_ref : (bs*ntok_pad, PATCH_K)  zero rows at the cls / padding slots
    base_ref    : (bs*ntok_pad, C)        cls token + pos embed + conv bias
    bias_ref    : (rows, rows)            block-diagonal / pad attention mask
    buf_ref     : VMEM scratch (rows, C)  head-output packing + cls gather
    """
    c = pw_ref.shape[1]
    hd = c // num_heads
    approx_recip = lambda u: pl.reciprocal(u, approx=True)

    # ---- patch embedding; cls token / pos embed / conv bias folded in `base`
    x = jnp.dot(patches_ref[...], pw_ref[...], preferred_element_type=jnp.float32)
    x = x + base_ref[...]                             # (rows, C)

    attn_bias = bias_ref[...]                         # hoisted once, reused everywhere

    # ---- encoder blocks (depth unrolled, stacked weights indexed statically) --
    for d in range(depth):
        # attention branch
        h = _layernorm(x, ln1w_ref[d], ln1b_ref[d])
        q = jnp.dot(h, qw_ref[d], preferred_element_type=jnp.float32) + qb_ref[d]
        k = jnp.dot(h, kw_ref[d], preferred_element_type=jnp.float32) + kb_ref[d]
        v = jnp.dot(h, vw_ref[d], preferred_element_type=jnp.float32) + vb_ref[d]

        for i in range(num_heads):
            qh = q[:, i * hd:(i + 1) * hd]
            kh = k[:, i * hd:(i + 1) * hd]
            vh = v[:, i * hd:(i + 1) * hd]
            s = jax.lax.dot_general(qh, kh, (((1,), (1,)), ((), ())),
                                    preferred_element_type=jnp.float32)
            s = s * scale + attn_bias                 # masks pads + other batches
            s = s - jnp.max(s, axis=-1, keepdims=True)
            e = jnp.exp(s)
            prob = e * approx_recip(jnp.sum(e, axis=-1, keepdims=True))
            ho = jnp.dot(prob, vh, preferred_element_type=jnp.float32)   # (rows, hd)
            buf_ref[:, i * hd:(i + 1) * hd] = ho      # pack heads lane-contiguously

        attn = jnp.dot(buf_ref[...], prw_ref[d],
                       preferred_element_type=jnp.float32) + prb_ref[d]
        x = x + attn

        # MLP branch
        h2 = _layernorm(x, ln2w_ref[d], ln2b_ref[d])
        z = jnp.dot(h2, f1w_ref[d], preferred_element_type=jnp.float32) + f1b_ref[d]
        z = _erf_gelu(z, approx_recip)
        z = jnp.dot(z, f2w_ref[d], preferred_element_type=jnp.float32) + f2b_ref[d]
        x = x + z

    # ---- final LayerNorm on cls rows + classification head --------------------
    for b in range(bs):                               # gather cls rows (reuse scratch)
        buf_ref[b:b + 1, :] = x[b * ntok_pad:b * ntok_pad + 1, :]
    cls = _layernorm(buf_ref[0:bs, :], nw_ref[...], nb_ref[...])
    logits = jnp.dot(cls, hw_ref[...], preferred_element_type=jnp.float32) + hb_ref[...]
    out_ref[0] = logits.astype(out_ref.dtype)


# ----------------------------- JAX glue --------------------------------------
def extract_patches(x_nchw, ps):
    # (B, C, H, W) -> (B, num_patches, C*ps*ps), patch vector ordered (c, kh, kw)
    b, c, h, w = x_nchw.shape
    gh, gw = h // ps, w // ps
    x = x_nchw.reshape(b, c, gh, ps, gw, ps)
    x = x.transpose(0, 2, 4, 1, 3, 5)          # (B, gh, gw, C, ps, ps)
    return x.reshape(b, gh * gw, c * ps * ps)


def _token_base(params):
    """Per-token additive term: row 0 = cls + pos[0]; rows 1..16 = pos + conv
    bias (so the kernel can do one bias-free patch matmul); pad rows stay 0."""
    base = jnp.zeros((NTOK_PAD, EMBED), jnp.float32)
    base = base.at[0].set(params["cls_token"][0, 0] + params["pos_embed"][0, 0])
    base = base.at[1:NTOK].set(params["pos_embed"][0, 1:] + params["patch_b"][0])
    return base


def _attn_bias(bs):
    """Additive attention mask for the batch-folded slab: keys must belong to
    the same batch element and be real (non-padded) tokens."""
    rows = bs * NTOK_PAD
    r = jnp.arange(rows)
    same_batch = (r[:, None] // NTOK_PAD) == (r[None, :] // NTOK_PAD)
    real_key = (r[None, :] % NTOK_PAD) < NTOK
    return jnp.where(same_batch & real_key, 0.0, NEG_INF).astype(jnp.float32)


_STACK_ORDER = ("ln1_w", "ln1_b", "q_w", "q_b", "k_w", "k_b", "v_w", "v_b",
                "proj_w", "proj_b", "ln2_w", "ln2_b", "fc1_w", "fc1_b", "fc2_w", "fc2_b")


def _pack_blocks(blocks):
    return [jnp.stack([blk[name] for blk in blocks], axis=0) for name in _STACK_ORDER]


@partial(jax.jit, static_argnames=("num_shards",))
def vit_forward(x_nchw, params, num_shards=1):
    batch = x_nchw.shape[0]
    bs = batch // num_shards            # batch elements per grid step
    rows = bs * NTOK_PAD

    patches = extract_patches(x_nchw, PATCH)                             # (B, 16, 48)
    patches = jnp.pad(patches, ((0, 0), (1, NTOK_PAD - NTOK), (0, 0)))   # zero cls/pad rows
    patches_flat = patches.reshape(batch * NTOK_PAD, PATCH_K)

    base = jnp.tile(_token_base(params), (bs, 1))                        # (rows, C)
    attn_bias = _attn_bias(bs)                                           # (rows, rows)
    weights = ([params["patch_w"]] + _pack_blocks(params["blocks"]) +
               [params["norm_w"], params["norm_b"], params["head_w"], params["head_b"]])

    def const_spec(a):
        zeros = (0,) * a.ndim
        return pl.BlockSpec(a.shape, lambda i, _z=zeros: _z)

    kernel = partial(_vit_fused_kernel, bs=bs, ntok_pad=NTOK_PAD,
                     depth=DEPTH, num_heads=HEADS, scale=SCALE)
    out = pl.pallas_call(
        kernel,
        out_shape=jax.ShapeDtypeStruct((num_shards, bs, NUM_CLASSES), jnp.float32),
        grid=(num_shards,),
        in_specs=[pl.BlockSpec((rows, PATCH_K), lambda i: (i, 0)),
                  const_spec(base), const_spec(attn_bias)]
                 + [const_spec(w) for w in weights],
        out_specs=pl.BlockSpec((1, bs, NUM_CLASSES), lambda i: (i, 0, 0)),
        scratch_shapes=[pltpu.VMEM((rows, EMBED), jnp.float32)],
        compiler_params=pltpu.CompilerParams(dimension_semantics=("parallel",)),
    )(patches_flat, base, attn_bias, *weights)
    return out.reshape(batch, NUM_CLASSES)


def pick_num_shards(batch):
    """2-way batch sharding across TensorCores on v7x-style parts; single grid
    step on single-TC v5e/v6e where a batch grid is only serial overhead."""
    try:
        kind = jax.devices()[0].device_kind.lower()
    except Exception:
        kind = ""
    n = 2 if ("v7" in kind or "7x" in kind) else 1
    return n if (n <= batch and batch % n == 0) else 1


# ----------------------------- pure-JAX reference ----------------------------
def _ref_block(x, p):
    b, n, c = x.shape
    h = _layernorm(x.reshape(b * n, c), p["ln1_w"], p["ln1_b"]).reshape(b, n, c)

    def to_heads(y):
        return y.reshape(b, n, HEADS, HEAD_DIM).transpose(0, 2, 1, 3)

    q = to_heads(h @ p["q_w"] + p["q_b"])
    k = to_heads(h @ p["k_w"] + p["k_b"])
    v = to_heads(h @ p["v_w"] + p["v_b"])
    attn = jnp.einsum("bhqd,bhkd->bhqk", q, k) * SCALE
    attn = jax.nn.softmax(attn, axis=-1)
    out = jnp.einsum("bhqk,bhkd->bhqd", attn, v).transpose(0, 2, 1, 3).reshape(b, n, c)
    out = out @ p["proj_w"] + p["proj_b"]
    x = x + out
    h2 = _layernorm(x.reshape(b * n, c), p["ln2_w"], p["ln2_b"]).reshape(b, n, c)
    z = _erf_gelu(h2 @ p["fc1_w"] + p["fc1_b"], lambda u: 1.0 / u)
    z = z @ p["fc2_w"] + p["fc2_b"]
    return x + z


def vit_reference(x_nchw, params):
    b = x_nchw.shape[0]
    patches = extract_patches(x_nchw, PATCH)
    tok = patches @ params["patch_w"] + params["patch_b"]
    cls = jnp.broadcast_to(params["cls_token"], (b, 1, EMBED))
    x = jnp.concatenate([cls, tok], axis=1) + params["pos_embed"]
    for blk in params["blocks"]:
        x = _ref_block(x, blk)
    cls_tok = _layernorm(x[:, 0, :], params["norm_w"], params["norm_b"])
    return cls_tok @ params["head_w"] + params["head_b"]


# ----------------------------- deterministic params --------------------------
def init_params(seed=0):
    key = [jax.random.PRNGKey(seed)]

    def nk():
        key[0], sub = jax.random.split(key[0])
        return sub

    def lin(k_in, k_out, std=0.01):
        return (jax.random.normal(nk(), (k_in, k_out), jnp.float32) * std,
                jnp.zeros((1, k_out), jnp.float32))

    params = {}
    conv_std = math.sqrt(2.0 / (EMBED * PATCH * PATCH))        # kaiming fan_out
    params["patch_w"] = jax.random.normal(nk(), (PATCH_K, EMBED), jnp.float32) * conv_std
    params["patch_b"] = jnp.zeros((1, EMBED), jnp.float32)
    params["cls_token"] = jax.random.normal(nk(), (1, 1, EMBED), jnp.float32) * 0.02
    params["pos_embed"] = jax.random.normal(nk(), (1, NTOK, EMBED), jnp.float32) * 0.02

    blocks = []
    for _ in range(DEPTH):
        q_w, q_b = lin(EMBED, EMBED)
        k_w, k_b = lin(EMBED, EMBED)
        v_w, v_b = lin(EMBED, EMBED)
        proj_w, proj_b = lin(EMBED, EMBED)
        fc1_w, fc1_b = lin(EMBED, MLP_HIDDEN)
        fc2_w, fc2_b = lin(MLP_HIDDEN, EMBED)
        blocks.append({
            "ln1_w": jnp.ones((1, EMBED), jnp.float32),
            "ln1_b": jnp.zeros((1, EMBED), jnp.float32),
            "q_w": q_w, "q_b": q_b, "k_w": k_w, "k_b": k_b, "v_w": v_w, "v_b": v_b,
            "proj_w": proj_w, "proj_b": proj_b,
            "ln2_w": jnp.ones((1, EMBED), jnp.float32),
            "ln2_b": jnp.zeros((1, EMBED), jnp.float32),
            "fc1_w": fc1_w, "fc1_b": fc1_b,
            "fc2_w": fc2_w, "fc2_b": fc2_b,
        })
    params["blocks"] = blocks
    params["norm_w"] = jnp.ones((1, EMBED), jnp.float32)
    params["norm_b"] = jnp.zeros((1, EMBED), jnp.float32)
    hw, hb = lin(EMBED, NUM_CLASSES)
    params["head_w"], params["head_b"] = hw, hb
    return params


# ----------------------------- main -------------------------------------------
if __name__ == "__main__":
    params = init_params(seed=0)
    x = jax.random.normal(jax.random.PRNGKey(0), (BATCH, IN_C, IMG, IMG), jnp.float32)

    n_shards = pick_num_shards(BATCH)
    logits = vit_forward(x, params, num_shards=n_shards)
    logits = jax.block_until_ready(logits)
    assert logits.shape == (BATCH, NUM_CLASSES)
    assert bool(jnp.all(jnp.isfinite(logits)))

    ref = vit_reference(x, params)
    max_diff = float(jnp.max(jnp.abs(logits - ref)))
    assert max_diff < 1e-3, f"mismatch vs reference: {max_diff}"

    print("KERNEL_OK")
</pallas_src>

<mosaic_0001>
module attributes {stable_mosaic.version = 11 : i64} {
  func.func @_vit_fused_kernel(%arg0: i32, %arg1: memref<48x48xf32, #tpu.memory_space<vmem>>, %arg2: memref<48x32xf32, #tpu.memory_space<vmem>>, %arg3: memref<48x48xf32, #tpu.memory_space<vmem>>, %arg4: memref<48x32xf32, #tpu.memory_space<vmem>>, %arg5: memref<2x1x32xf32, #tpu.memory_space<vmem>>, %arg6: memref<2x1x32xf32, #tpu.memory_space<vmem>>, %arg7: memref<2x32x32xf32, #tpu.memory_space<vmem>>, %arg8: memref<2x1x32xf32, #tpu.memory_space<vmem>>, %arg9: memref<2x32x32xf32, #tpu.memory_space<vmem>>, %arg10: memref<2x1x32xf32, #tpu.memory_space<vmem>>, %arg11: memref<2x32x32xf32, #tpu.memory_space<vmem>>, %arg12: memref<2x1x32xf32, #tpu.memory_space<vmem>>, %arg13: memref<2x32x32xf32, #tpu.memory_space<vmem>>, %arg14: memref<2x1x32xf32, #tpu.memory_space<vmem>>, %arg15: memref<2x1x32xf32, #tpu.memory_space<vmem>>, %arg16: memref<2x1x32xf32, #tpu.memory_space<vmem>>, %arg17: memref<2x32x128xf32, #tpu.memory_space<vmem>>, %arg18: memref<2x1x128xf32, #tpu.memory_space<vmem>>, %arg19: memref<2x128x32xf32, #tpu.memory_space<vmem>>, %arg20: memref<2x1x32xf32, #tpu.memory_space<vmem>>, %arg21: memref<1x32xf32, #tpu.memory_space<vmem>>, %arg22: memref<1x32xf32, #tpu.memory_space<vmem>>, %arg23: memref<32x10xf32, #tpu.memory_space<vmem>>, %arg24: memref<1x10xf32, #tpu.memory_space<vmem>>, %arg25: memref<1x2x10xf32, #tpu.memory_space<vmem>>, %arg26: memref<48x32xf32, #tpu.memory_space<vmem>>) attributes {dimension_semantics = [#tpu.dimension_semantics<parallel>], iteration_bounds = array<i64: 1>, scalar_prefetch = 0 : i64, scratch_operands = 1 : i64, tpu.core_type = #tpu.core_type<tc>, window_params = [{transform_indices = @transform_0, window_bounds = array<i64: 48, 48>}, {pipeline_mode = #tpu.pipeline_mode<synchronous>, transform_indices = @transform_1, window_bounds = array<i64: 48, 32>}, {pipeline_mode = #tpu.pipeline_mode<synchronous>, transform_indices = @transform_2, window_bounds = array<i64: 48, 48>}, {pipeline_mode = #tpu.pipeline_mode<synchronous>, transform_indices = @transform_3, window_bounds = array<i64: 48, 32>}, {pipeline_mode = #tpu.pipeline_mode<synchronous>, transform_indices = @transform_4, window_bounds = array<i64: 2, 1, 32>}, {pipeline_mode = #tpu.pipeline_mode<synchronous>, transform_indices = @transform_5, window_bounds = array<i64: 2, 1, 32>}, {pipeline_mode = #tpu.pipeline_mode<synchronous>, transform_indices = @transform_6, window_bounds = array<i64: 2, 32, 32>}, {pipeline_mode = #tpu.pipeline_mode<synchronous>, transform_indices = @transform_7, window_bounds = array<i64: 2, 1, 32>}, {pipeline_mode = #tpu.pipeline_mode<synchronous>, transform_indices = @transform_8, window_bounds = array<i64: 2, 32, 32>}, {pipeline_mode = #tpu.pipeline_mode<synchronous>, transform_indices = @transform_9, window_bounds = array<i64: 2, 1, 32>}, {pipeline_mode = #tpu.pipeline_mode<synchronous>, transform_indices = @transform_10, window_bounds = array<i64: 2, 32, 32>}, {pipeline_mode = #tpu.pipeline_mode<synchronous>, transform_indices = @transform_11, window_bounds = array<i64: 2, 1, 32>}, {pipeline_mode = #tpu.pipeline_mode<synchronous>, transform_indices = @transform_12, window_bounds = array<i64: 2, 32, 32>}, {pipeline_mode = #tpu.pipeline_mode<synchronous>, transform_indices = @transform_13, window_bounds = array<i64: 2, 1, 32>}, {pipeline_mode = #tpu.pipeline_mode<synchronous>, transform_indices = @transform_14, window_bounds = array<i64: 2, 1, 32>}, {pipeline_mode = #tpu.pipeline_mode<synchronous>, transform_indices = @transform_15, window_bounds = array<i64: 2, 1, 32>}, {pipeline_mode = #tpu.pipeline_mode<synchronous>, transform_indices = @transform_16, window_bounds = array<i64: 2, 32, 128>}, {pipeline_mode = #tpu.pipeline_mode<synchronous>, transform_indices = @transform_17, window_bounds = array<i64: 2, 1, 128>}, {pipeline_mode = #tpu.pipeline_mode<synchronous>, transform_indices = @transform_18, window_bounds = array<i64: 2, 128, 32>}, {pipeline_mode = #tpu.pipeline_mode<synchronous>, transform_indices = @transform_19, window_bounds = array<i64: 2, 1, 32>}, {pipeline_mode = #tpu.pipeline_mode<synchronous>, transform_indices = @transform_20, window_bounds = array<i64: 1, 32>}, {pipeline_mode = #tpu.pipeline_mode<synchronous>, transform_indices = @transform_21, window_bounds = array<i64: 1, 32>}, {pipeline_mode = #tpu.pipeline_mode<synchronous>, transform_indices = @transform_22, window_bounds = array<i64: 32, 10>}, {pipeline_mode = #tpu.pipeline_mode<synchronous>, transform_indices = @transform_23, window_bounds = array<i64: 1, 10>}, {transform_indices = @transform_24, window_bounds = array<i64: 1, 2, 10>}]} {
    %c0 = arith.constant 0 : index
    %c0_0 = arith.constant 0 : index
    %0 = vector.load %arg1[%c0, %c0_0] : memref<48x48xf32, #tpu.memory_space<vmem>>, vector<48x48xf32>
    %c0_1 = arith.constant 0 : index
    %c0_2 = arith.constant 0 : index
    %1 = vector.load %arg4[%c0_1, %c0_2] : memref<48x32xf32, #tpu.memory_space<vmem>>, vector<48x32xf32>
    %cst = arith.constant dense<0.000000e+00> : vector<48x32xf32>
    %2 = tpu.matmul %0, %1, %cst {dimension_numbers = #tpu.dot_dimension_numbers<[1], [0], [0], [1], [0, 0, 1, 1], [], []>} : vector<48x48xf32>, vector<48x32xf32>, vector<48x32xf32> -> vector<48x32xf32>
    %c0_3 = arith.constant 0 : index
    %c0_4 = arith.constant 0 : index
    %3 = vector.load %arg2[%c0_3, %c0_4] : memref<48x32xf32, #tpu.memory_space<vmem>>, vector<48x32xf32>
    %4 = arith.addf %2, %3 : vector<48x32xf32>
    %c0_5 = arith.constant 0 : index
    %c0_6 = arith.constant 0 : index
    %5 = vector.load %arg3[%c0_5, %c0_6] : memref<48x48xf32, #tpu.memory_space<vmem>>, vector<48x48xf32>
    %c0_7 = arith.constant 0 : index
    %c0_8 = arith.constant 0 : index
    %c0_9 = arith.constant 0 : index
    %6 = vector.load %arg5[%c0_7, %c0_8, %c0_9] : memref<2x1x32xf32, #tpu.memory_space<vmem>>, vector<1x1x32xf32>
    %7 = vector.shape_cast %6 : vector<1x1x32xf32> to vector<1x32xf32>
    %c0_10 = arith.constant 0 : index
    %c0_11 = arith.constant 0 : index
    %c0_12 = arith.constant 0 : index
    %8 = vector.load %arg6[%c0_10, %c0_11, %c0_12] : memref<2x1x32xf32, #tpu.memory_space<vmem>>, vector<1x1x32xf32>
    %9 = vector.shape_cast %8 : vector<1x1x32xf32> to vector<1x32xf32>
    %cst_13 = arith.constant dense<0.000000e+00> : vector<48xf32>
    %10 = vector.multi_reduction <add>, %4, %cst_13 [1] : vector<48x32xf32> to vector<48xf32>
    %11 = vector.shape_cast %10 : vector<48xf32> to vector<48x1xf32>
    %cst_14 = arith.constant 3.200000e+01 : f32
    %12 = vector.broadcast %cst_14 : f32 to vector<48x1xf32>
    %13 = arith.divf %11, %12 : vector<48x1xf32>
    %14 = vector.broadcast %13 : vector<48x1xf32> to vector<48x32xf32>
    %15 = arith.subf %4, %14 : vector<48x32xf32>
    %16 = arith.mulf %15, %15 : vector<48x32xf32>
    %cst_15 = arith.constant dense<0.000000e+00> : vector<48xf32>
    %17 = vector.multi_reduction <add>, %16, %cst_15 [1] : vector<48x32xf32> to vector<48xf32>
    %18 = vector.shape_cast %17 : vector<48xf32> to vector<48x1xf32>
    %cst_16 = arith.constant 3.200000e+01 : f32
    %19 = vector.broadcast %cst_16 : f32 to vector<48x1xf32>
    %20 = arith.divf %18, %19 : vector<48x1xf32>
    %21 = vector.broadcast %13 : vector<48x1xf32> to vector<48x32xf32>
    %22 = arith.subf %4, %21 : vector<48x32xf32>
    %cst_17 = arith.constant 9.99999997E-7 : f32
    %23 = vector.broadcast %cst_17 : f32 to vector<48x1xf32>
    %24 = arith.addf %20, %23 : vector<48x1xf32>
    %25 = math.rsqrt %24 : vector<48x1xf32>
    %26 = vector.broadcast %25 : vector<48x1xf32> to vector<48x32xf32>
    %27 = arith.mulf %22, %26 : vector<48x32xf32>
    %28 = vector.broadcast %7 : vector<1x32xf32> to vector<48x32xf32>
    %29 = arith.mulf %27, %28 : vector<48x32xf32>
    %30 = vector.broadcast %9 : vector<1x32xf32> to vector<48x32xf32>
    %31 = arith.addf %29, %30 : vector<48x32xf32>
    %c0_18 = arith.constant 0 : index
    %c0_19 = arith.constant 0 : index
    %c0_20 = arith.constant 0 : index
    %32 = vector.load %arg7[%c0_18, %c0_19, %c0_20] : memref<2x32x32xf32, #tpu.memory_space<vmem>>, vector<1x32x32xf32>
    %33 = vector.shape_cast %32 : vector<1x32x32xf32> to vector<32x32xf32>
    %cst_21 = arith.constant dense<0.000000e+00> : vector<48x32xf32>
    %34 = tpu.matmul %31, %33, %cst_21 {dimension_numbers = #tpu.dot_dimension_numbers<[1], [0], [0], [1], [0, 0, 1, 1], [], []>} : vector<48x32xf32>, vector<32x32xf32>, vector<48x32xf32> -> vector<48x32xf32>
    %c0_22 = arith.constant 0 : index
    %c0_23 = arith.constant 0 : index
    %c0_24 = arith.constant 0 : index
    %35 = vector.load %arg8[%c0_22, %c0_23, %c0_24] : memref<2x1x32xf32, #tpu.memory_space<vmem>>, vector<1x1x32xf32>
    %36 = vector.shape_cast %35 : vector<1x1x32xf32> to vector<1x32xf32>
    %37 = vector.broadcast %36 : vector<1x32xf32> to vector<48x32xf32>
    %38 = arith.addf %34, %37 : vector<48x32xf32>
    %c0_25 = arith.constant 0 : index
    %c0_26 = arith.constant 0 : index
    %c0_27 = arith.constant 0 : index
    %39 = vector.load %arg9[%c0_25, %c0_26, %c0_27] : memref<2x32x32xf32, #tpu.memory_space<vmem>>, vector<1x32x32xf32>
    %40 = vector.shape_cast %39 : vector<1x32x32xf32> to vector<32x32xf32>
    %cst_28 = arith.constant dense<0.000000e+00> : vector<48x32xf32>
    %41 = tpu.matmul %31, %40, %cst_28 {dimension_numbers = #tpu.dot_dimension_numbers<[1], [0], [0], [1], [0, 0, 1, 1], [], []>} : vector<48x32xf32>, vector<32x32xf32>, vector<48x32xf32> -> vector<48x32xf32>
    %c0_29 = arith.constant 0 : index
    %c0_30 = arith.constant 0 : index
    %c0_31 = arith.constant 0 : index
    %42 = vector.load %arg10[%c0_29, %c0_30, %c0_31] : memref<2x1x32xf32, #tpu.memory_space<vmem>>, vector<1x1x32xf32>
    %43 = vector.shape_cast %42 : vector<1x1x32xf32> to vector<1x32xf32>
    %44 = vector.broadcast %43 : vector<1x32xf32> to vector<48x32xf32>
    %45 = arith.addf %41, %44 : vector<48x32xf32>
    %c0_32 = arith.constant 0 : index
    %c0_33 = arith.constant 0 : index
    %c0_34 = arith.constant 0 : index
    %46 = vector.load %arg11[%c0_32, %c0_33, %c0_34] : memref<2x32x32xf32, #tpu.memory_space<vmem>>, vector<1x32x32xf32>
    %47 = vector.shape_cast %46 : vector<1x32x32xf32> to vector<32x32xf32>
    %cst_35 = arith.constant dense<0.000000e+00> : vector<48x32xf32>
    %48 = tpu.matmul %31, %47, %cst_35 {dimension_numbers = #tpu.dot_dimension_numbers<[1], [0], [0], [1], [0, 0, 1, 1], [], []>} : vector<48x32xf32>, vector<32x32xf32>, vector<48x32xf32> -> vector<48x32xf32>
    %c0_36 = arith.constant 0 : index
    %c0_37 = arith.constant 0 : index
    %c0_38 = arith.constant 0 : index
    %49 = vector.load %arg12[%c0_36, %c0_37, %c0_38] : memref<2x1x32xf32, #tpu.memory_space<vmem>>, vector<1x1x32xf32>
    %50 = vector.shape_cast %49 : vector<1x1x32xf32> to vector<1x32xf32>
    %51 = vector.broadcast %50 : vector<1x32xf32> to vector<48x32xf32>
    %52 = arith.addf %48, %51 : vector<48x32xf32>
    %53 = vector.extract_strided_slice %38 {offsets = [0, 0], sizes = [48, 8], strides = [1, 1]} : vector<48x32xf32> to vector<48x8xf32>
    %54 = vector.extract_strided_slice %45 {offsets = [0, 0], sizes = [48, 8], strides = [1, 1]} : vector<48x32xf32> to vector<48x8xf32>
    %55 = vector.extract_strided_slice %52 {offsets = [0, 0], sizes = [48, 8], strides = [1, 1]} : vector<48x32xf32> to vector<48x8xf32>
    %cst_39 = arith.constant dense<0.000000e+00> : vector<48x48xf32>
    %56 = tpu.matmul %53, %54, %cst_39 {dimension_numbers = #tpu.dot_dimension_numbers<[1], [1], [0], [0], [0, 0, 1, 0], [], []>} : vector<48x8xf32>, vector<48x8xf32>, vector<48x48xf32> -> vector<48x48xf32>
    %cst_40 = arith.constant 0.353553385 : f32
    %57 = vector.broadcast %cst_40 : f32 to vector<48x48xf32>
    %58 = arith.mulf %56, %57 : vector<48x48xf32>
    %59 = arith.addf %58, %5 : vector<48x48xf32>
    %cst_41 = arith.constant dense<0xFF800000> : vector<48xf32>
    %60 = vector.multi_reduction <maximumf>, %59, %cst_41 [1] : vector<48x48xf32> to vector<48xf32>
    %61 = vector.shape_cast %60 : vector<48xf32> to vector<48x1xf32>
    %62 = vector.broadcast %61 : vector<48x1xf32> to vector<48x48xf32>
    %63 = arith.subf %59, %62 : vector<48x48xf32>
    %64 = math.exp %63 : vector<48x48xf32>
    %cst_42 = arith.constant dense<0.000000e+00> : vector<48xf32>
    %65 = vector.multi_reduction <add>, %64, %cst_42 [1] : vector<48x48xf32> to vector<48xf32>
    %66 = vector.shape_cast %65 : vector<48xf32> to vector<48x1xf32>
    %67 = tpu.reciprocal %66 {approx = true} : vector<48x1xf32> -> vector<48x1xf32>
    %68 = vector.broadcast %67 : vector<48x1xf32> to vector<48x48xf32>
    %69 = arith.mulf %64, %68 : vector<48x48xf32>
    %cst_43 = arith.constant dense<0.000000e+00> : vector<48x8xf32>
    %70 = tpu.matmul %69, %55, %cst_43 {dimension_numbers = #tpu.dot_dimension_numbers<[1], [0], [0], [1], [0, 0, 1, 1], [], []>} : vector<48x48xf32>, vector<48x8xf32>, vector<48x8xf32> -> vector<48x8xf32>
    %c0_44 = arith.constant 0 : index
    %c0_45 = arith.constant 0 : index
    %71 = vector.load %arg26[%c0_44, %c0_45] : memref<48x32xf32, #tpu.memory_space<vmem>>, vector<48x8xf32>
    tpu.vector_store %arg26[%c0_44, %c0_45], %70 {strides = array<i32>} : memref<48x32xf32, #tpu.memory_space<vmem>>, vector<48x8xf32>,
    %72 = vector.extract_strided_slice %38 {offsets = [0, 8], sizes = [48, 8], strides = [1, 1]} : vector<48x32xf32> to vector<48x8xf32>
    %73 = vector.extract_strided_slice %45 {offsets = [0, 8], sizes = [48, 8], strides = [1, 1]} : vector<48x32xf32> to vector<48x8xf32>
    %74 = vector.extract_strided_slice %52 {offsets = [0, 8], sizes = [48, 8], strides = [1, 1]} : vector<48x32xf32> to vector<48x8xf32>
    %cst_46 = arith.constant dense<0.000000e+00> : vector<48x48xf32>
    %75 = tpu.matmul %72, %73, %cst_46 {dimension_numbers = #tpu.dot_dimension_numbers<[1], [1], [0], [0], [0, 0, 1, 0], [], []>} : vector<48x8xf32>, vector<48x8xf32>, vector<48x48xf32> -> vector<48x48xf32>
    %cst_47 = arith.constant 0.353553385 : f32
    %76 = vector.broadcast %cst_47 : f32 to vector<48x48xf32>
    %77 = arith.mulf %75, %76 : vector<48x48xf32>
    %78 = arith.addf %77, %5 : vector<48x48xf32>
    %cst_48 = arith.constant dense<0xFF800000> : vector<48xf32>
    %79 = vector.multi_reduction <maximumf>, %78, %cst_48 [1] : vector<48x48xf32> to vector<48xf32>
    %80 = vector.shape_cast %79 : vector<48xf32> to vector<48x1xf32>
    %81 = vector.broadcast %80 : vector<48x1xf32> to vector<48x48xf32>
    %82 = arith.subf %78, %81 : vector<48x48xf32>
    %83 = math.exp %82 : vector<48x48xf32>
    %cst_49 = arith.constant dense<0.000000e+00> : vector<48xf32>
    %84 = vector.multi_reduction <add>, %83, %cst_49 [1] : vector<48x48xf32> to vector<48xf32>
    %85 = vector.shape_cast %84 : vector<48xf32> to vector<48x1xf32>
    %86 = tpu.reciprocal %85 {approx = true} : vector<48x1xf32> -> vector<48x1xf32>
    %87 = vector.broadcast %86 : vector<48x1xf32> to vector<48x48xf32>
    %88 = arith.mulf %83, %87 : vector<48x48xf32>
    %cst_50 = arith.constant dense<0.000000e+00> : vector<48x8xf32>
    %89 = tpu.matmul %88, %74, %cst_50 {dimension_numbers = #tpu.dot_dimension_numbers<[1], [0], [0], [1], [0, 0, 1, 1], [], []>} : vector<48x48xf32>, vector<48x8xf32>, vector<48x8xf32> -> vector<48x8xf32>
    %c0_51 = arith.constant 0 : index
    %c8 = arith.constant 8 : index
    %90 = vector.load %arg26[%c0_51, %c8] : memref<48x32xf32, #tpu.memory_space<vmem>>, vector<48x8xf32>
    tpu.vector_store %arg26[%c0_51, %c8], %89 {strides = array<i32>} : memref<48x32xf32, #tpu.memory_space<vmem>>, vector<48x8xf32>,
    %91 = vector.extract_strided_slice %38 {offsets = [0, 16], sizes = [48, 8], strides = [1, 1]} : vector<48x32xf32> to vector<48x8xf32>
    %92 = vector.extract_strided_slice %45 {offsets = [0, 16], sizes = [48, 8], strides = [1, 1]} : vector<48x32xf32> to vector<48x8xf32>
    %93 = vector.extract_strided_slice %52 {offsets = [0, 16], sizes = [48, 8], strides = [1, 1]} : vector<48x32xf32> to vector<48x8xf32>
    %cst_52 = arith.constant dense<0.000000e+00> : vector<48x48xf32>
    %94 = tpu.matmul %91, %92, %cst_52 {dimension_numbers = #tpu.dot_dimension_numbers<[1], [1], [0], [0], [0, 0, 1, 0], [], []>} : vector<48x8xf32>, vector<48x8xf32>, vector<48x48xf32> -> vector<48x48xf32>
    %cst_53 = arith.constant 0.353553385 : f32
    %95 = vector.broadcast %cst_53 : f32 to vector<48x48xf32>
    %96 = arith.mulf %94, %95 : vector<48x48xf32>
    %97 = arith.addf %96, %5 : vector<48x48xf32>
    %cst_54 = arith.constant dense<0xFF800000> : vector<48xf32>
    %98 = vector.multi_reduction <maximumf>, %97, %cst_54 [1] : vector<48x48xf32> to vector<48xf32>
    %99 = vector.shape_cast %98 : vector<48xf32> to vector<48x1xf32>
    %100 = vector.broadcast %99 : vector<48x1xf32> to vector<48x48xf32>
    %101 = arith.subf %97, %100 : vector<48x48xf32>
    %102 = math.exp %101 : vector<48x48xf32>
    %cst_55 = arith.constant dense<0.000000e+00> : vector<48xf32>
    %103 = vector.multi_reduction <add>, %102, %cst_55 [1] : vector<48x48xf32> to vector<48xf32>
    %104 = vector.shape_cast %103 : vector<48xf32> to vector<48x1xf32>
    %105 = tpu.reciprocal %104 {approx = true} : vector<48x1xf32> -> vector<48x1xf32>
    %106 = vector.broadcast %105 : vector<48x1xf32> to vector<48x48xf32>
    %107 = arith.mulf %102, %106 : vector<48x48xf32>
    %cst_56 = arith.constant dense<0.000000e+00> : vector<48x8xf32>
    %108 = tpu.matmul %107, %93, %cst_56 {dimension_numbers = #tpu.dot_dimension_numbers<[1], [0], [0], [1], [0, 0, 1, 1], [], []>} : vector<48x48xf32>, vector<48x8xf32>, vector<48x8xf32> -> vector<48x8xf32>
    %c0_57 = arith.constant 0 : index
    %c16 = arith.constant 16 : index
    %109 = vector.load %arg26[%c0_57, %c16] : memref<48x32xf32, #tpu.memory_space<vmem>>, vector<48x8xf32>
    tpu.vector_store %arg26[%c0_57, %c16], %108 {strides = array<i32>} : memref<48x32xf32, #tpu.memory_space<vmem>>, vector<48x8xf32>,
    %110 = vector.extract_strided_slice %38 {offsets = [0, 24], sizes = [48, 8], strides = [1, 1]} : vector<48x32xf32> to vector<48x8xf32>
    %111 = vector.extract_strided_slice %45 {offsets = [0, 24], sizes = [48, 8], strides = [1, 1]} : vector<48x32xf32> to vector<48x8xf32>
    %112 = vector.extract_strided_slice %52 {offsets = [0, 24], sizes = [48, 8], strides = [1, 1]} : vector<48x32xf32> to vector<48x8xf32>
    %cst_58 = arith.constant dense<0.000000e+00> : vector<48x48xf32>
    %113 = tpu.matmul %110, %111, %cst_58 {dimension_numbers = #tpu.dot_dimension_numbers<[1], [1], [0], [0], [0, 0, 1, 0], [], []>} : vector<48x8xf32>, vector<48x8xf32>, vector<48x48xf32> -> vector<48x48xf32>
    %cst_59 = arith.constant 0.353553385 : f32
    %114 = vector.broadcast %cst_59 : f32 to vector<48x48xf32>
    %115 = arith.mulf %113, %114 : vector<48x48xf32>
    %116 = arith.addf %115, %5 : vector<48x48xf32>
    %cst_60 = arith.constant dense<0xFF800000> : vector<48xf32>
    %117 = vector.multi_reduction <maximumf>, %116, %cst_60 [1] : vector<48x48xf32> to vector<48xf32>
    %118 = vector.shape_cast %117 : vector<48xf32> to vector<48x1xf32>
    %119 = vector.broadcast %118 : vector<48x1xf32> to vector<48x48xf32>
    %120 = arith.subf %116, %119 : vector<48x48xf32>
    %121 = math.exp %120 : vector<48x48xf32>
    %cst_61 = arith.constant dense<0.000000e+00> : vector<48xf32>
    %122 = vector.multi_reduction <add>, %121, %cst_61 [1] : vector<48x48xf32> to vector<48xf32>
    %123 = vector.shape_cast %122 : vector<48xf32> to vector<48x1xf32>
    %124 = tpu.reciprocal %123 {approx = true} : vector<48x1xf32> -> vector<48x1xf32>
    %125 = vector.broadcast %124 : vector<48x1xf32> to vector<48x48xf32>
    %126 = arith.mulf %121, %125 : vector<48x48xf32>
    %cst_62 = arith.constant dense<0.000000e+00> : vector<48x8xf32>
    %127 = tpu.matmul %126, %112, %cst_62 {dimension_numbers = #tpu.dot_dimension_numbers<[1], [0], [0], [1], [0, 0, 1, 1], [], []>} : vector<48x48xf32>, vector<48x8xf32>, vector<48x8xf32> -> vector<48x8xf32>
    %c0_63 = arith.constant 0 : index
    %c24 = arith.constant 24 : index
    %128 = vector.load %arg26[%c0_63, %c24] : memref<48x32xf32, #tpu.memory_space<vmem>>, vector<48x8xf32>
    tpu.vector_store %arg26[%c0_63, %c24], %127 {strides = array<i32>} : memref<48x32xf32, #tpu.memory_space<vmem>>, vector<48x8xf32>,
    %c0_64 = arith.constant 0 : index
    %c0_65 = arith.constant 0 : index
    %129 = vector.load %arg26[%c0_64, %c0_65] : memref<48x32xf32, #tpu.memory_space<vmem>>, vector<48x32xf32>
    %c0_66 = arith.constant 0 : index
    %c0_67 = arith.constant 0 : index
    %c0_68 = arith.constant 0 : index
    %130 = vector.load %arg13[%c0_66, %c0_67, %c0_68] : memref<2x32x32xf32, #tpu.memory_space<vmem>>, vector<1x32x32xf32>
    %131 = vector.shape_cast %130 : vector<1x32x32xf32> to vector<32x32xf32>
    %cst_69 = arith.constant dense<0.000000e+00> : vector<48x32xf32>
    %132 = tpu.matmul %129, %131, %cst_69 {dimension_numbers = #tpu.dot_dimension_numbers<[1], [0], [0], [1], [0, 0, 1, 1], [], []>} : vector<48x32xf32>, vector<32x32xf32>, vector<48x32xf32> -> vector<48x32xf32>
    %c0_70 = arith.constant 0 : index
    %c0_71 = arith.constant 0 : index
    %c0_72 = arith.constant 0 : index
    %133 = vector.load %arg14[%c0_70, %c0_71, %c0_72] : memref<2x1x32xf32, #tpu.memory_space<vmem>>, vector<1x1x32xf32>
    %134 = vector.shape_cast %133 : vector<1x1x32xf32> to vector<1x32xf32>
    %135 = vector.broadcast %134 : vector<1x32xf32> to vector<48x32xf32>
    %136 = arith.addf %132, %135 : vector<48x32xf32>
    %137 = arith.addf %4, %136 : vector<48x32xf32>
    %c0_73 = arith.constant 0 : index
    %c0_74 = arith.constant 0 : index
    %c0_75 = arith.constant 0 : index
    %138 = vector.load %arg15[%c0_73, %c0_74, %c0_75] : memref<2x1x32xf32, #tpu.memory_space<vmem>>, vector<1x1x32xf32>
    %139 = vector.shape_cast %138 : vector<1x1x32xf32> to vector<1x32xf32>
    %c0_76 = arith.constant 0 : index
    %c0_77 = arith.constant 0 : index
    %c0_78 = arith.constant 0 : index
    %140 = vector.load %arg16[%c0_76, %c0_77, %c0_78] : memref<2x1x32xf32, #tpu.memory_space<vmem>>, vector<1x1x32xf32>
    %141 = vector.shape_cast %140 : vector<1x1x32xf32> to vector<1x32xf32>
    %cst_79 = arith.constant dense<0.000000e+00> : vector<48xf32>
    %142 = vector.multi_reduction <add>, %137, %cst_79 [1] : vector<48x32xf32> to vector<48xf32>
    %143 = vector.shape_cast %142 : vector<48xf32> to vector<48x1xf32>
    %cst_80 = arith.constant 3.200000e+01 : f32
    %144 = vector.broadcast %cst_80 : f32 to vector<48x1xf32>
    %145 = arith.divf %143, %144 : vector<48x1xf32>
    %146 = vector.broadcast %145 : vector<48x1xf32> to vector<48x32xf32>
    %147 = arith.subf %137, %146 : vector<48x32xf32>
    %148 = arith.mulf %147, %147 : vector<48x32xf32>
    %cst_81 = arith.constant dense<0.000000e+00> : vector<48xf32>
    %149 = vector.multi_reduction <add>, %148, %cst_81 [1] : vector<48x32xf32> to vector<48xf32>
    %150 = vector.shape_cast %149 : vector<48xf32> to vector<48x1xf32>
    %cst_82 = arith.constant 3.200000e+01 : f32
    %151 = vector.broadcast %cst_82 : f32 to vector<48x1xf32>
    %152 = arith.divf %150, %151 : vector<48x1xf32>
    %153 = vector.broadcast %145 : vector<48x1xf32> to vector<48x32xf32>
    %154 = arith.subf %137, %153 : vector<48x32xf32>
    %cst_83 = arith.constant 9.99999997E-7 : f32
    %155 = vector.broadcast %cst_83 : f32 to vector<48x1xf32>
    %156 = arith.addf %152, %155 : vector<48x1xf32>
    %157 = math.rsqrt %156 : vector<48x1xf32>
    %158 = vector.broadcast %157 : vector<48x1xf32> to vector<48x32xf32>
    %159 = arith.mulf %154, %158 : vector<48x32xf32>
    %160 = vector.broadcast %139 : vector<1x32xf32> to vector<48x32xf32>
    %161 = arith.mulf %159, %160 : vector<48x32xf32>
    %162 = vector.broadcast %141 : vector<1x32xf32> to vector<48x32xf32>
    %163 = arith.addf %161, %162 : vector<48x32xf32>
    %c0_84 = arith.constant 0 : index
    %c0_85 = arith.constant 0 : index
    %c0_86 = arith.constant 0 : index
    %164 = vector.load %arg17[%c0_84, %c0_85, %c0_86] : memref<2x32x128xf32, #tpu.memory_space<vmem>>, vector<1x32x128xf32>
    %165 = vector.shape_cast %164 : vector<1x32x128xf32> to vector<32x128xf32>
    %cst_87 = arith.constant dense<0.000000e+00> : vector<48x128xf32>
    %166 = tpu.matmul %163, %165, %cst_87 {dimension_numbers = #tpu.dot_dimension_numbers<[1], [0], [0], [1], [0, 0, 1, 1], [], []>} : vector<48x32xf32>, vector<32x128xf32>, vector<48x128xf32> -> vector<48x128xf32>
    %c0_88 = arith.constant 0 : index
    %c0_89 = arith.constant 0 : index
    %c0_90 = arith.constant 0 : index
    %167 = vector.load %arg18[%c0_88, %c0_89, %c0_90] : memref<2x1x128xf32, #tpu.memory_space<vmem>>, vector<1x1x128xf32>
    %168 = vector.shape_cast %167 : vector<1x1x128xf32> to vector<1x128xf32>
    %169 = vector.broadcast %168 : vector<1x128xf32> to vector<48x128xf32>
    %170 = arith.addf %166, %169 : vector<48x128xf32>
    %cst_91 = arith.constant 0.707106769 : f32
    %171 = vector.broadcast %cst_91 : f32 to vector<48x128xf32>
    %172 = arith.mulf %170, %171 : vector<48x128xf32>
    %cst_92 = arith.constant 0.000000e+00 : f32
    %173 = vector.broadcast %cst_92 : f32 to vector<48x128xf32>
    %174 = arith.cmpf oge, %172, %173 : vector<48x128xf32>
    %cst_93 = arith.constant 1.000000e+00 : f32
    %cst_94 = arith.constant -1.000000e+00 : f32
    %175 = vector.broadcast %cst_93 : f32 to vector<48x128xf32>
    %176 = vector.broadcast %cst_94 : f32 to vector<48x128xf32>
    %177 = arith.select %174, %175, %176 : vector<48x128xi1>, vector<48x128xf32>
    %178 = math.absf %172 : vector<48x128xf32>
    %cst_95 = arith.constant 0.327591091 : f32
    %179 = vector.broadcast %cst_95 : f32 to vector<48x128xf32>
    %180 = arith.mulf %179, %178 : vector<48x128xf32>
    %cst_96 = arith.constant 1.000000e+00 : f32
    %181 = vector.broadcast %cst_96 : f32 to vector<48x128xf32>
    %182 = arith.addf %181, %180 : vector<48x128xf32>
    %183 = tpu.reciprocal %182 {approx = true} : vector<48x128xf32> -> vector<48x128xf32>
    %cst_97 = arith.constant 1.06140542 : f32
    %184 = vector.broadcast %cst_97 : f32 to vector<48x128xf32>
    %185 = arith.mulf %184, %183 : vector<48x128xf32>
    %cst_98 = arith.constant -1.45315206 : f32
    %186 = vector.broadcast %cst_98 : f32 to vector<48x128xf32>
    %187 = arith.addf %185, %186 : vector<48x128xf32>
    %188 = arith.mulf %187, %183 : vector<48x128xf32>
    %cst_99 = arith.constant 1.42141378 : f32
    %189 = vector.broadcast %cst_99 : f32 to vector<48x128xf32>
    %190 = arith.addf %188, %189 : vector<48x128xf32>
    %191 = arith.mulf %190, %183 : vector<48x128xf32>
    %cst_100 = arith.constant -0.284496725 : f32
    %192 = vector.broadcast %cst_100 : f32 to vector<48x128xf32>
    %193 = arith.addf %191, %192 : vector<48x128xf32>
    %194 = arith.mulf %193, %183 : vector<48x128xf32>
    %cst_101 = arith.constant 0.254829586 : f32
    %195 = vector.broadcast %cst_101 : f32 to vector<48x128xf32>
    %196 = arith.addf %194, %195 : vector<48x128xf32>
    %197 = arith.mulf %196, %183 : vector<48x128xf32>
    %cst_102 = arith.constant 0.000000e+00 : f32
    %198 = vector.broadcast %cst_102 : f32 to vector<48x128xf32>
    %199 = arith.subf %198, %178 : vector<48x128xf32>
    %200 = arith.mulf %199, %178 : vector<48x128xf32>
    %201 = math.exp %200 : vector<48x128xf32>
    %202 = arith.mulf %197, %201 : vector<48x128xf32>
    %cst_103 = arith.constant 1.000000e+00 : f32
    %203 = vector.broadcast %cst_103 : f32 to vector<48x128xf32>
    %204 = arith.subf %203, %202 : vector<48x128xf32>
    %205 = arith.mulf %177, %204 : vector<48x128xf32>
    %cst_104 = arith.constant 5.000000e-01 : f32
    %206 = vector.broadcast %cst_104 : f32 to vector<48x128xf32>
    %207 = arith.mulf %206, %170 : vector<48x128xf32>
    %cst_105 = arith.constant 1.000000e+00 : f32
    %208 = vector.broadcast %cst_105 : f32 to vector<48x128xf32>
    %209 = arith.addf %208, %205 : vector<48x128xf32>
    %210 = arith.mulf %207, %209 : vector<48x128xf32>
    %c0_106 = arith.constant 0 : index
    %c0_107 = arith.constant 0 : index
    %c0_108 = arith.constant 0 : index
    %211 = vector.load %arg19[%c0_106, %c0_107, %c0_108] : memref<2x128x32xf32, #tpu.memory_space<vmem>>, vector<1x128x32xf32>
    %212 = vector.shape_cast %211 : vector<1x128x32xf32> to vector<128x32xf32>
    %cst_109 = arith.constant dense<0.000000e+00> : vector<48x32xf32>
    %213 = tpu.matmul %210, %212, %cst_109 {dimension_numbers = #tpu.dot_dimension_numbers<[1], [0], [0], [1], [0, 0, 1, 1], [], []>} : vector<48x128xf32>, vector<128x32xf32>, vector<48x32xf32> -> vector<48x32xf32>
    %c0_110 = arith.constant 0 : index
    %c0_111 = arith.constant 0 : index
    %c0_112 = arith.constant 0 : index
    %214 = vector.load %arg20[%c0_110, %c0_111, %c0_112] : memref<2x1x32xf32, #tpu.memory_space<vmem>>, vector<1x1x32xf32>
    %215 = vector.shape_cast %214 : vector<1x1x32xf32> to vector<1x32xf32>
    %216 = vector.broadcast %215 : vector<1x32xf32> to vector<48x32xf32>
    %217 = arith.addf %213, %216 : vector<48x32xf32>
    %218 = arith.addf %137, %217 : vector<48x32xf32>
    %c1 = arith.constant 1 : index
    %c0_113 = arith.constant 0 : index
    %c0_114 = arith.constant 0 : index
    %219 = vector.load %arg5[%c1, %c0_113, %c0_114] : memref<2x1x32xf32, #tpu.memory_space<vmem>>, vector<1x1x32xf32>
    %220 = vector.shape_cast %219 : vector<1x1x32xf32> to vector<1x32xf32>
    %c1_115 = arith.constant 1 : index
    %c0_116 = arith.constant 0 : index
    %c0_117 = arith.constant 0 : index
    %221 = vector.load %arg6[%c1_115, %c0_116, %c0_117] : memref<2x1x32xf32, #tpu.memory_space<vmem>>, vector<1x1x32xf32>
    %222 = vector.shape_cast %221 : vector<1x1x32xf32> to vector<1x32xf32>
    %cst_118 = arith.constant dense<0.000000e+00> : vector<48xf32>
    %223 = vector.multi_reduction <add>, %218, %cst_118 [1] : vector<48x32xf32> to vector<48xf32>
    %224 = vector.shape_cast %223 : vector<48xf32> to vector<48x1xf32>
    %cst_119 = arith.constant 3.200000e+01 : f32
    %225 = vector.broadcast %cst_119 : f32 to vector<48x1xf32>
    %226 = arith.divf %224, %225 : vector<48x1xf32>
    %227 = vector.broadcast %226 : vector<48x1xf32> to vector<48x32xf32>
    %228 = arith.subf %218, %227 : vector<48x32xf32>
    %229 = arith.mulf %228, %228 : vector<48x32xf32>
    %cst_120 = arith.constant dense<0.000000e+00> : vector<48xf32>
    %230 = vector.multi_reduction <add>, %229, %cst_120 [1] : vector<48x32xf32> to vector<48xf32>
    %231 = vector.shape_cast %230 : vector<48xf32> to vector<48x1xf32>
    %cst_121 = arith.constant 3.200000e+01 : f32
    %232 = vector.broadcast %cst_121 : f32 to vector<48x1xf32>
    %233 = arith.divf %231, %232 : vector<48x1xf32>
    %234 = vector.broadcast %226 : vector<48x1xf32> to vector<48x32xf32>
    %235 = arith.subf %218, %234 : vector<48x32xf32>
    %cst_122 = arith.constant 9.99999997E-7 : f32
    %236 = vector.broadcast %cst_122 : f32 to vector<48x1xf32>
    %237 = arith.addf %233, %236 : vector<48x1xf32>
    %238 = math.rsqrt %237 : vector<48x1xf32>
    %239 = vector.broadcast %238 : vector<48x1xf32> to vector<48x32xf32>
    %240 = arith.mulf %235, %239 : vector<48x32xf32>
    %241 = vector.broadcast %220 : vector<1x32xf32> to vector<48x32xf32>
    %242 = arith.mulf %240, %241 : vector<48x32xf32>
    %243 = vector.broadcast %222 : vector<1x32xf32> to vector<48x32xf32>
    %244 = arith.addf %242, %243 : vector<48x32xf32>
    %c1_123 = arith.constant 1 : index
    %c0_124 = arith.constant 0 : index
    %c0_125 = arith.constant 0 : index
    %245 = vector.load %arg7[%c1_123, %c0_124, %c0_125] : memref<2x32x32xf32, #tpu.memory_space<vmem>>, vector<1x32x32xf32>
    %246 = vector.shape_cast %245 : vector<1x32x32xf32> to vector<32x32xf32>
    %cst_126 = arith.constant dense<0.000000e+00> : vector<48x32xf32>
    %247 = tpu.matmul %244, %246, %cst_126 {dimension_numbers = #tpu.dot_dimension_numbers<[1], [0], [0], [1], [0, 0, 1, 1], [], []>} : vector<48x32xf32>, vector<32x32xf32>, vector<48x32xf32> -> vector<48x32xf32>
    %c1_127 = arith.constant 1 : index
    %c0_128 = arith.constant 0 : index
    %c0_129 = arith.constant 0 : index
    %248 = vector.load %arg8[%c1_127, %c0_128, %c0_129] : memref<2x1x32xf32, #tpu.memory_space<vmem>>, vector<1x1x32xf32>
    %249 = vector.shape_cast %248 : vector<1x1x32xf32> to vector<1x32xf32>
    %250 = vector.broadcast %249 : vector<1x32xf32> to vector<48x32xf32>
    %251 = arith.addf %247, %250 : vector<48x32xf32>
    %c1_130 = arith.constant 1 : index
    %c0_131 = arith.constant 0 : index
    %c0_132 = arith.constant 0 : index
    %252 = vector.load %arg9[%c1_130, %c0_131, %c0_132] : memref<2x32x32xf32, #tpu.memory_space<vmem>>, vector<1x32x32xf32>
    %253 = vector.shape_cast %252 : vector<1x32x32xf32> to vector<32x32xf32>
    %cst_133 = arith.constant dense<0.000000e+00> : vector<48x32xf32>
    %254 = tpu.matmul %244, %253, %cst_133 {dimension_numbers = #tpu.dot_dimension_numbers<[1], [0], [0], [1], [0, 0, 1, 1], [], []>} : vector<48x32xf32>, vector<32x32xf32>, vector<48x32xf32> -> vector<48x32xf32>
    %c1_134 = arith.constant 1 : index
    %c0_135 = arith.constant 0 : index
    %c0_136 = arith.constant 0 : index
    %255 = vector.load %arg10[%c1_134, %c0_135, %c0_136] : memref<2x1x32xf32, #tpu.memory_space<vmem>>, vector<1x1x32xf32>
    %256 = vector.shape_cast %255 : vector<1x1x32xf32> to vector<1x32xf32>
    %257 = vector.broadcast %256 : vector<1x32xf32> to vector<48x32xf32>
    %258 = arith.addf %254, %257 : vector<48x32xf32>
    %c1_137 = arith.constant 1 : index
    %c0_138 = arith.constant 0 : index
    %c0_139 = arith.constant 0 : index
    %259 = vector.load %arg11[%c1_137, %c0_138, %c0_139] : memref<2x32x32xf32, #tpu.memory_space<vmem>>, vector<1x32x32xf32>
    %260 = vector.shape_cast %259 : vector<1x32x32xf32> to vector<32x32xf32>
    %cst_140 = arith.constant dense<0.000000e+00> : vector<48x32xf32>
    %261 = tpu.matmul %244, %260, %cst_140 {dimension_numbers = #tpu.dot_dimension_numbers<[1], [0], [0], [1], [0, 0, 1, 1], [], []>} : vector<48x32xf32>, vector<32x32xf32>, vector<48x32xf32> -> vector<48x32xf32>
    %c1_141 = arith.constant 1 : index
    %c0_142 = arith.constant 0 : index
    %c0_143 = arith.constant 0 : index
    %262 = vector.load %arg12[%c1_141, %c0_142, %c0_143] : memref<2x1x32xf32, #tpu.memory_space<vmem>>, vector<1x1x32xf32>
    %263 = vector.shape_cast %262 : vector<1x1x32xf32> to vector<1x32xf32>
    %264 = vector.broadcast %263 : vector<1x32xf32> to vector<48x32xf32>
    %265 = arith.addf %261, %264 : vector<48x32xf32>
    %266 = vector.extract_strided_slice %251 {offsets = [0, 0], sizes = [48, 8], strides = [1, 1]} : vector<48x32xf32> to vector<48x8xf32>
    %267 = vector.extract_strided_slice %258 {offsets = [0, 0], sizes = [48, 8], strides = [1, 1]} : vector<48x32xf32> to vector<48x8xf32>
    %268 = vector.extract_strided_slice %265 {offsets = [0, 0], sizes = [48, 8], strides = [1, 1]} : vector<48x32xf32> to vector<48x8xf32>
    %cst_144 = arith.constant dense<0.000000e+00> : vector<48x48xf32>
    %269 = tpu.matmul %266, %267, %cst_144 {dimension_numbers = #tpu.dot_dimension_numbers<[1], [1], [0], [0], [0, 0, 1, 0], [], []>} : vector<48x8xf32>, vector<48x8xf32>, vector<48x48xf32> -> vector<48x48xf32>
    %cst_145 = arith.constant 0.353553385 : f32
    %270 = vector.broadcast %cst_145 : f32 to vector<48x48xf32>
    %271 = arith.mulf %269, %270 : vector<48x48xf32>
    %272 = arith.addf %271, %5 : vector<48x48xf32>
    %cst_146 = arith.constant dense<0xFF800000> : vector<48xf32>
    %273 = vector.multi_reduction <maximumf>, %272, %cst_146 [1] : vector<48x48xf32> to vector<48xf32>
    %274 = vector.shape_cast %273 : vector<48xf32> to vector<48x1xf32>
    %275 = vector.broadcast %274 : vector<48x1xf32> to vector<48x48xf32>
    %276 = arith.subf %272, %275 : vector<48x48xf32>
    %277 = math.exp %276 : vector<48x48xf32>
    %cst_147 = arith.constant dense<0.000000e+00> : vector<48xf32>
    %278 = vector.multi_reduction <add>, %277, %cst_147 [1] : vector<48x48xf32> to vector<48xf32>
    %279 = vector.shape_cast %278 : vector<48xf32> to vector<48x1xf32>
    %280 = tpu.reciprocal %279 {approx = true} : vector<48x1xf32> -> vector<48x1xf32>
    %281 = vector.broadcast %280 : vector<48x1xf32> to vector<48x48xf32>
    %282 = arith.mulf %277, %281 : vector<48x48xf32>
    %cst_148 = arith.constant dense<0.000000e+00> : vector<48x8xf32>
    %283 = tpu.matmul %282, %268, %cst_148 {dimension_numbers = #tpu.dot_dimension_numbers<[1], [0], [0], [1], [0, 0, 1, 1], [], []>} : vector<48x48xf32>, vector<48x8xf32>, vector<48x8xf32> -> vector<48x8xf32>
    %c0_149 = arith.constant 0 : index
    %c0_150 = arith.constant 0 : index
    %284 = vector.load %arg26[%c0_149, %c0_150] : memref<48x32xf32, #tpu.memory_space<vmem>>, vector<48x8xf32>
    tpu.vector_store %arg26[%c0_149, %c0_150], %283 {strides = array<i32>} : memref<48x32xf32, #tpu.memory_space<vmem>>, vector<48x8xf32>,
    %285 = vector.extract_strided_slice %251 {offsets = [0, 8], sizes = [48, 8], strides = [1, 1]} : vector<48x32xf32> to vector<48x8xf32>
    %286 = vector.extract_strided_slice %258 {offsets = [0, 8], sizes = [48, 8], strides = [1, 1]} : vector<48x32xf32> to vector<48x8xf32>
    %287 = vector.extract_strided_slice %265 {offsets = [0, 8], sizes = [48, 8], strides = [1, 1]} : vector<48x32xf32> to vector<48x8xf32>
    %cst_151 = arith.constant dense<0.000000e+00> : vector<48x48xf32>
    %288 = tpu.matmul %285, %286, %cst_151 {dimension_numbers = #tpu.dot_dimension_numbers<[1], [1], [0], [0], [0, 0, 1, 0], [], []>} : vector<48x8xf32>, vector<48x8xf32>, vector<48x48xf32> -> vector<48x48xf32>
    %cst_152 = arith.constant 0.353553385 : f32
    %289 = vector.broadcast %cst_152 : f32 to vector<48x48xf32>
    %290 = arith.mulf %288, %289 : vector<48x48xf32>
    %291 = arith.addf %290, %5 : vector<48x48xf32>
    %cst_153 = arith.constant dense<0xFF800000> : vector<48xf32>
    %292 = vector.multi_reduction <maximumf>, %291, %cst_153 [1] : vector<48x48xf32> to vector<48xf32>
    %293 = vector.shape_cast %292 : vector<48xf32> to vector<48x1xf32>
    %294 = vector.broadcast %293 : vector<48x1xf32> to vector<48x48xf32>
    %295 = arith.subf %291, %294 : vector<48x48xf32>
    %296 = math.exp %295 : vector<48x48xf32>
    %cst_154 = arith.constant dense<0.000000e+00> : vector<48xf32>
    %297 = vector.multi_reduction <add>, %296, %cst_154 [1] : vector<48x48xf32> to vector<48xf32>
    %298 = vector.shape_cast %297 : vector<48xf32> to vector<48x1xf32>
    %299 = tpu.reciprocal %298 {approx = true} : vector<48x1xf32> -> vector<48x1xf32>
    %300 = vector.broadcast %299 : vector<48x1xf32> to vector<48x48xf32>
    %301 = arith.mulf %296, %300 : vector<48x48xf32>
    %cst_155 = arith.constant dense<0.000000e+00> : vector<48x8xf32>
    %302 = tpu.matmul %301, %287, %cst_155 {dimension_numbers = #tpu.dot_dimension_numbers<[1], [0], [0], [1], [0, 0, 1, 1], [], []>} : vector<48x48xf32>, vector<48x8xf32>, vector<48x8xf32> -> vector<48x8xf32>
    %c0_156 = arith.constant 0 : index
    %c8_157 = arith.constant 8 : index
    %303 = vector.load %arg26[%c0_156, %c8_157] : memref<48x32xf32, #tpu.memory_space<vmem>>, vector<48x8xf32>
    tpu.vector_store %arg26[%c0_156, %c8_157], %302 {strides = array<i32>} : memref<48x32xf32, #tpu.memory_space<vmem>>, vector<48x8xf32>,
    %304 = vector.extract_strided_slice %251 {offsets = [0, 16], sizes = [48, 8], strides = [1, 1]} : vector<48x32xf32> to vector<48x8xf32>
    %305 = vector.extract_strided_slice %258 {offsets = [0, 16], sizes = [48, 8], strides = [1, 1]} : vector<48x32xf32> to vector<48x8xf32>
    %306 = vector.extract_strided_slice %265 {offsets = [0, 16], sizes = [48, 8], strides = [1, 1]} : vector<48x32xf32> to vector<48x8xf32>
    %cst_158 = arith.constant dense<0.000000e+00> : vector<48x48xf32>
    %307 = tpu.matmul %304, %305, %cst_158 {dimension_numbers = #tpu.dot_dimension_numbers<[1], [1], [0], [0], [0, 0, 1, 0], [], []>} : vector<48x8xf32>, vector<48x8xf32>, vector<48x48xf32> -> vector<48x48xf32>
    %cst_159 = arith.constant 0.353553385 : f32
    %308 = vector.broadcast %cst_159 : f32 to vector<48x48xf32>
    %309 = arith.mulf %307, %308 : vector<48x48xf32>
    %310 = arith.addf %309, %5 : vector<48x48xf32>
    %cst_160 = arith.constant dense<0xFF800000> : vector<48xf32>
    %311 = vector.multi_reduction <maximumf>, %310, %cst_160 [1] : vector<48x48xf32> to vector<48xf32>
    %312 = vector.shape_cast %311 : vector<48xf32> to vector<48x1xf32>
    %313 = vector.broadcast %312 : vector<48x1xf32> to vector<48x48xf32>
    %314 = arith.subf %310, %313 : vector<48x48xf32>
    %315 = math.exp %314 : vector<48x48xf32>
    %cst_161 = arith.constant dense<0.000000e+00> : vector<48xf32>
    %316 = vector.multi_reduction <add>, %315, %cst_161 [1] : vector<48x48xf32> to vector<48xf32>
    %317 = vector.shape_cast %316 : vector<48xf32> to vector<48x1xf32>
    %318 = tpu.reciprocal %317 {approx = true} : vector<48x1xf32> -> vector<48x1xf32>
    %319 = vector.broadcast %318 : vector<48x1xf32> to vector<48x48xf32>
    %320 = arith.mulf %315, %319 : vector<48x48xf32>
    %cst_162 = arith.constant dense<0.000000e+00> : vector<48x8xf32>
    %321 = tpu.matmul %320, %306, %cst_162 {dimension_numbers = #tpu.dot_dimension_numbers<[1], [0], [0], [1], [0, 0, 1, 1], [], []>} : vector<48x48xf32>, vector<48x8xf32>, vector<48x8xf32> -> vector<48x8xf32>
    %c0_163 = arith.constant 0 : index
    %c16_164 = arith.constant 16 : index
    %322 = vector.load %arg26[%c0_163, %c16_164] : memref<48x32xf32, #tpu.memory_space<vmem>>, vector<48x8xf32>
    tpu.vector_store %arg26[%c0_163, %c16_164], %321 {strides = array<i32>} : memref<48x32xf32, #tpu.memory_space<vmem>>, vector<48x8xf32>,
    %323 = vector.extract_strided_slice %251 {offsets = [0, 24], sizes = [48, 8], strides = [1, 1]} : vector<48x32xf32> to vector<48x8xf32>
    %324 = vector.extract_strided_slice %258 {offsets = [0, 24], sizes = [48, 8], strides = [1, 1]} : vector<48x32xf32> to vector<48x8xf32>
    %325 = vector.extract_strided_slice %265 {offsets = [0, 24], sizes = [48, 8], strides = [1, 1]} : vector<48x32xf32> to vector<48x8xf32>
    %cst_165 = arith.constant dense<0.000000e+00> : vector<48x48xf32>
    %326 = tpu.matmul %323, %324, %cst_165 {dimension_numbers = #tpu.dot_dimension_numbers<[1], [1], [0], [0], [0, 0, 1, 0], [], []>} : vector<48x8xf32>, vector<48x8xf32>, vector<48x48xf32> -> vector<48x48xf32>
    %cst_166 = arith.constant 0.353553385 : f32
    %327 = vector.broadcast %cst_166 : f32 to vector<48x48xf32>
    %328 = arith.mulf %326, %327 : vector<48x48xf32>
    %329 = arith.addf %328, %5 : vector<48x48xf32>
    %cst_167 = arith.constant dense<0xFF800000> : vector<48xf32>
    %330 = vector.multi_reduction <maximumf>, %329, %cst_167 [1] : vector<48x48xf32> to vector<48xf32>
    %331 = vector.shape_cast %330 : vector<48xf32> to vector<48x1xf32>
    %332 = vector.broadcast %331 : vector<48x1xf32> to vector<48x48xf32>
    %333 = arith.subf %329, %332 : vector<48x48xf32>
    %334 = math.exp %333 : vector<48x48xf32>
    %cst_168 = arith.constant dense<0.000000e+00> : vector<48xf32>
    %335 = vector.multi_reduction <add>, %334, %cst_168 [1] : vector<48x48xf32> to vector<48xf32>
    %336 = vector.shape_cast %335 : vector<48xf32> to vector<48x1xf32>
    %337 = tpu.reciprocal %336 {approx = true} : vector<48x1xf32> -> vector<48x1xf32>
    %338 = vector.broadcast %337 : vector<48x1xf32> to vector<48x48xf32>
    %339 = arith.mulf %334, %338 : vector<48x48xf32>
    %cst_169 = arith.constant dense<0.000000e+00> : vector<48x8xf32>
    %340 = tpu.matmul %339, %325, %cst_169 {dimension_numbers = #tpu.dot_dimension_numbers<[1], [0], [0], [1], [0, 0, 1, 1], [], []>} : vector<48x48xf32>, vector<48x8xf32>, vector<48x8xf32> -> vector<48x8xf32>
    %c0_170 = arith.constant 0 : index
    %c24_171 = arith.constant 24 : index
    %341 = vector.load %arg26[%c0_170, %c24_171] : memref<48x32xf32, #tpu.memory_space<vmem>>, vector<48x8xf32>
    tpu.vector_store %arg26[%c0_170, %c24_171], %340 {strides = array<i32>} : memref<48x32xf32, #tpu.memory_space<vmem>>, vector<48x8xf32>,
    %c0_172 = arith.constant 0 : index
    %c0_173 = arith.constant 0 : index
    %342 = vector.load %arg26[%c0_172, %c0_173] : memref<48x32xf32, #tpu.memory_space<vmem>>, vector<48x32xf32>
    %c1_174 = arith.constant 1 : index
    %c0_175 = arith.constant 0 : index
    %c0_176 = arith.constant 0 : index
    %343 = vector.load %arg13[%c1_174, %c0_175, %c0_176] : memref<2x32x32xf32, #tpu.memory_space<vmem>>, vector<1x32x32xf32>
    %344 = vector.shape_cast %343 : vector<1x32x32xf32> to vector<32x32xf32>
    %cst_177 = arith.constant dense<0.000000e+00> : vector<48x32xf32>
    %345 = tpu.matmul %342, %344, %cst_177 {dimension_numbers = #tpu.dot_dimension_numbers<[1], [0], [0], [1], [0, 0, 1, 1], [], []>} : vector<48x32xf32>, vector<32x32xf32>, vector<48x32xf32> -> vector<48x32xf32>
    %c1_178 = arith.constant 1 : index
    %c0_179 = arith.constant 0 : index
    %c0_180 = arith.constant 0 : index
    %346 = vector.load %arg14[%c1_178, %c0_179, %c0_180] : memref<2x1x32xf32, #tpu.memory_space<vmem>>, vector<1x1x32xf32>
    %347 = vector.shape_cast %346 : vector<1x1x32xf32> to vector<1x32xf32>
    %348 = vector.broadcast %347 : vector<1x32xf32> to vector<48x32xf32>
    %349 = arith.addf %345, %348 : vector<48x32xf32>
    %350 = arith.addf %218, %349 : vector<48x32xf32>
    %c1_181 = arith.constant 1 : index
    %c0_182 = arith.constant 0 : index
    %c0_183 = arith.constant 0 : index
    %351 = vector.load %arg15[%c1_181, %c0_182, %c0_183] : memref<2x1x32xf32, #tpu.memory_space<vmem>>, vector<1x1x32xf32>
    %352 = vector.shape_cast %351 : vector<1x1x32xf32> to vector<1x32xf32>
    %c1_184 = arith.constant 1 : index
    %c0_185 = arith.constant 0 : index
    %c0_186 = arith.constant 0 : index
    %353 = vector.load %arg16[%c1_184, %c0_185, %c0_186] : memref<2x1x32xf32, #tpu.memory_space<vmem>>, vector<1x1x32xf32>
    %354 = vector.shape_cast %353 : vector<1x1x32xf32> to vector<1x32xf32>
    %cst_187 = arith.constant dense<0.000000e+00> : vector<48xf32>
    %355 = vector.multi_reduction <add>, %350, %cst_187 [1] : vector<48x32xf32> to vector<48xf32>
    %356 = vector.shape_cast %355 : vector<48xf32> to vector<48x1xf32>
    %cst_188 = arith.constant 3.200000e+01 : f32
    %357 = vector.broadcast %cst_188 : f32 to vector<48x1xf32>
    %358 = arith.divf %356, %357 : vector<48x1xf32>
    %359 = vector.broadcast %358 : vector<48x1xf32> to vector<48x32xf32>
    %360 = arith.subf %350, %359 : vector<48x32xf32>
    %361 = arith.mulf %360, %360 : vector<48x32xf32>
    %cst_189 = arith.constant dense<0.000000e+00> : vector<48xf32>
    %362 = vector.multi_reduction <add>, %361, %cst_189 [1] : vector<48x32xf32> to vector<48xf32>
    %363 = vector.shape_cast %362 : vector<48xf32> to vector<48x1xf32>
    %cst_190 = arith.constant 3.200000e+01 : f32
    %364 = vector.broadcast %cst_190 : f32 to vector<48x1xf32>
    %365 = arith.divf %363, %364 : vector<48x1xf32>
    %366 = vector.broadcast %358 : vector<48x1xf32> to vector<48x32xf32>
    %367 = arith.subf %350, %366 : vector<48x32xf32>
    %cst_191 = arith.constant 9.99999997E-7 : f32
    %368 = vector.broadcast %cst_191 : f32 to vector<48x1xf32>
    %369 = arith.addf %365, %368 : vector<48x1xf32>
    %370 = math.rsqrt %369 : vector<48x1xf32>
    %371 = vector.broadcast %370 : vector<48x1xf32> to vector<48x32xf32>
    %372 = arith.mulf %367, %371 : vector<48x32xf32>
    %373 = vector.broadcast %352 : vector<1x32xf32> to vector<48x32xf32>
    %374 = arith.mulf %372, %373 : vector<48x32xf32>
    %375 = vector.broadcast %354 : vector<1x32xf32> to vector<48x32xf32>
    %376 = arith.addf %374, %375 : vector<48x32xf32>
    %c1_192 = arith.constant 1 : index
    %c0_193 = arith.constant 0 : index
    %c0_194 = arith.constant 0 : index
    %377 = vector.load %arg17[%c1_192, %c0_193, %c0_194] : memref<2x32x128xf32, #tpu.memory_space<vmem>>, vector<1x32x128xf32>
    %378 = vector.shape_cast %377 : vector<1x32x128xf32> to vector<32x128xf32>
    %cst_195 = arith.constant dense<0.000000e+00> : vector<48x128xf32>
    %379 = tpu.matmul %376, %378, %cst_195 {dimension_numbers = #tpu.dot_dimension_numbers<[1], [0], [0], [1], [0, 0, 1, 1], [], []>} : vector<48x32xf32>, vector<32x128xf32>, vector<48x128xf32> -> vector<48x128xf32>
    %c1_196 = arith.constant 1 : index
    %c0_197 = arith.constant 0 : index
    %c0_198 = arith.constant 0 : index
    %380 = vector.load %arg18[%c1_196, %c0_197, %c0_198] : memref<2x1x128xf32, #tpu.memory_space<vmem>>, vector<1x1x128xf32>
    %381 = vector.shape_cast %380 : vector<1x1x128xf32> to vector<1x128xf32>
    %382 = vector.broadcast %381 : vector<1x128xf32> to vector<48x128xf32>
    %383 = arith.addf %379, %382 : vector<48x128xf32>
    %cst_199 = arith.constant 0.707106769 : f32
    %384 = vector.broadcast %cst_199 : f32 to vector<48x128xf32>
    %385 = arith.mulf %383, %384 : vector<48x128xf32>
    %cst_200 = arith.constant 0.000000e+00 : f32
    %386 = vector.broadcast %cst_200 : f32 to vector<48x128xf32>
    %387 = arith.cmpf oge, %385, %386 : vector<48x128xf32>
    %cst_201 = arith.constant 1.000000e+00 : f32
    %cst_202 = arith.constant -1.000000e+00 : f32
    %388 = vector.broadcast %cst_201 : f32 to vector<48x128xf32>
    %389 = vector.broadcast %cst_202 : f32 to vector<48x128xf32>
    %390 = arith.select %387, %388, %389 : vector<48x128xi1>, vector<48x128xf32>
    %391 = math.absf %385 : vector<48x128xf32>
    %cst_203 = arith.constant 0.327591091 : f32
    %392 = vector.broadcast %cst_203 : f32 to vector<48x128xf32>
    %393 = arith.mulf %392, %391 : vector<48x128xf32>
    %cst_204 = arith.constant 1.000000e+00 : f32
    %394 = vector.broadcast %cst_204 : f32 to vector<48x128xf32>
    %395 = arith.addf %394, %393 : vector<48x128xf32>
    %396 = tpu.reciprocal %395 {approx = true} : vector<48x128xf32> -> vector<48x128xf32>
    %cst_205 = arith.constant 1.06140542 : f32
    %397 = vector.broadcast %cst_205 : f32 to vector<48x128xf32>
    %398 = arith.mulf %397, %396 : vector<48x128xf32>
    %cst_206 = arith.constant -1.45315206 : f32
    %399 = vector.broadcast %cst_206 : f32 to vector<48x128xf32>
    %400 = arith.addf %398, %399 : vector<48x128xf32>
    %401 = arith.mulf %400, %396 : vector<48x128xf32>
    %cst_207 = arith.constant 1.42141378 : f32
    %402 = vector.broadcast %cst_207 : f32 to vector<48x128xf32>
    %403 = arith.addf %401, %402 : vector<48x128xf32>
    %404 = arith.mulf %403, %396 : vector<48x128xf32>
    %cst_208 = arith.constant -0.284496725 : f32
    %405 = vector.broadcast %cst_208 : f32 to vector<48x128xf32>
    %406 = arith.addf %404, %405 : vector<48x128xf32>
    %407 = arith.mulf %406, %396 : vector<48x128xf32>
    %cst_209 = arith.constant 0.254829586 : f32
    %408 = vector.broadcast %cst_209 : f32 to vector<48x128xf32>
    %409 = arith.addf %407, %408 : vector<48x128xf32>
    %410 = arith.mulf %409, %396 : vector<48x128xf32>
    %cst_210 = arith.constant 0.000000e+00 : f32
    %411 = vector.broadcast %cst_210 : f32 to vector<48x128xf32>
    %412 = arith.subf %411, %391 : vector<48x128xf32>
    %413 = arith.mulf %412, %391 : vector<48x128xf32>
    %414 = math.exp %413 : vector<48x128xf32>
    %415 = arith.mulf %410, %414 : vector<48x128xf32>
    %cst_211 = arith.constant 1.000000e+00 : f32
    %416 = vector.broadcast %cst_211 : f32 to vector<48x128xf32>
    %417 = arith.subf %416, %415 : vector<48x128xf32>
    %418 = arith.mulf %390, %417 : vector<48x128xf32>
    %cst_212 = arith.constant 5.000000e-01 : f32
    %419 = vector.broadcast %cst_212 : f32 to vector<48x128xf32>
    %420 = arith.mulf %419, %383 : vector<48x128xf32>
    %cst_213 = arith.constant 1.000000e+00 : f32
    %421 = vector.broadcast %cst_213 : f32 to vector<48x128xf32>
    %422 = arith.addf %421, %418 : vector<48x128xf32>
    %423 = arith.mulf %420, %422 : vector<48x128xf32>
    %c1_214 = arith.constant 1 : index
    %c0_215 = arith.constant 0 : index
    %c0_216 = arith.constant 0 : index
    %424 = vector.load %arg19[%c1_214, %c0_215, %c0_216] : memref<2x128x32xf32, #tpu.memory_space<vmem>>, vector<1x128x32xf32>
    %425 = vector.shape_cast %424 : vector<1x128x32xf32> to vector<128x32xf32>
    %cst_217 = arith.constant dense<0.000000e+00> : vector<48x32xf32>
    %426 = tpu.matmul %423, %425, %cst_217 {dimension_numbers = #tpu.dot_dimension_numbers<[1], [0], [0], [1], [0, 0, 1, 1], [], []>} : vector<48x128xf32>, vector<128x32xf32>, vector<48x32xf32> -> vector<48x32xf32>
    %c1_218 = arith.constant 1 : index
    %c0_219 = arith.constant 0 : index
    %c0_220 = arith.constant 0 : index
    %427 = vector.load %arg20[%c1_218, %c0_219, %c0_220] : memref<2x1x32xf32, #tpu.memory_space<vmem>>, vector<1x1x32xf32>
    %428 = vector.shape_cast %427 : vector<1x1x32xf32> to vector<1x32xf32>
    %429 = vector.broadcast %428 : vector<1x32xf32> to vector<48x32xf32>
    %430 = arith.addf %426, %429 : vector<48x32xf32>
    %431 = arith.addf %350, %430 : vector<48x32xf32>
    %432 = vector.extract_strided_slice %431 {offsets = [0, 0], sizes = [1, 32], strides = [1, 1]} : vector<48x32xf32> to vector<1x32xf32>
    %c0_221 = arith.constant 0 : index
    %c0_222 = arith.constant 0 : index
    %433 = vector.load %arg26[%c0_221, %c0_222] : memref<48x32xf32, #tpu.memory_space<vmem>>, vector<1x32xf32>
    tpu.vector_store %arg26[%c0_221, %c0_222], %432 {strides = array<i32>} : memref<48x32xf32, #tpu.memory_space<vmem>>, vector<1x32xf32>,
    %434 = vector.extract_strided_slice %431 {offsets = [24, 0], sizes = [1, 32], strides = [1, 1]} : vector<48x32xf32> to vector<1x32xf32>
    %c1_223 = arith.constant 1 : index
    %c0_224 = arith.constant 0 : index
    %435 = vector.load %arg26[%c1_223, %c0_224] : memref<48x32xf32, #tpu.memory_space<vmem>>, vector<1x32xf32>
    tpu.vector_store %arg26[%c1_223, %c0_224], %434 {strides = array<i32>} : memref<48x32xf32, #tpu.memory_space<vmem>>, vector<1x32xf32>,
    %c0_225 = arith.constant 0 : index
    %c0_226 = arith.constant 0 : index
    %436 = vector.load %arg26[%c0_225, %c0_226] : memref<48x32xf32, #tpu.memory_space<vmem>>, vector<2x32xf32>
    %c0_227 = arith.constant 0 : index
    %c0_228 = arith.constant 0 : index
    %437 = vector.load %arg21[%c0_227, %c0_228] : memref<1x32xf32, #tpu.memory_space<vmem>>, vector<1x32xf32>
    %c0_229 = arith.constant 0 : index
    %c0_230 = arith.constant 0 : index
    %438 = vector.load %arg22[%c0_229, %c0_230] : memref<1x32xf32, #tpu.memory_space<vmem>>, vector<1x32xf32>
    %cst_231 = arith.constant dense<0.000000e+00> : vector<2xf32>
    %439 = vector.multi_reduction <add>, %436, %cst_231 [1] : vector<2x32xf32> to vector<2xf32>
    %440 = vector.shape_cast %439 : vector<2xf32> to vector<2x1xf32>
    %cst_232 = arith.constant 3.200000e+01 : f32
    %441 = vector.broadcast %cst_232 : f32 to vector<2x1xf32>
    %442 = arith.divf %440, %441 : vector<2x1xf32>
    %443 = vector.broadcast %442 : vector<2x1xf32> to vector<2x32xf32>
    %444 = arith.subf %436, %443 : vector<2x32xf32>
    %445 = arith.mulf %444, %444 : vector<2x32xf32>
    %cst_233 = arith.constant dense<0.000000e+00> : vector<2xf32>
    %446 = vector.multi_reduction <add>, %445, %cst_233 [1] : vector<2x32xf32> to vector<2xf32>
    %447 = vector.shape_cast %446 : vector<2xf32> to vector<2x1xf32>
    %cst_234 = arith.constant 3.200000e+01 : f32
    %448 = vector.broadcast %cst_234 : f32 to vector<2x1xf32>
    %449 = arith.divf %447, %448 : vector<2x1xf32>
    %450 = vector.broadcast %442 : vector<2x1xf32> to vector<2x32xf32>
    %451 = arith.subf %436, %450 : vector<2x32xf32>
    %cst_235 = arith.constant 9.99999997E-7 : f32
    %452 = vector.broadcast %cst_235 : f32 to vector<2x1xf32>
    %453 = arith.addf %449, %452 : vector<2x1xf32>
    %454 = math.rsqrt %453 : vector<2x1xf32>
    %455 = vector.broadcast %454 : vector<2x1xf32> to vector<2x32xf32>
    %456 = arith.mulf %451, %455 : vector<2x32xf32>
    %457 = vector.broadcast %437 : vector<1x32xf32> to vector<2x32xf32>
    %458 = arith.mulf %456, %457 : vector<2x32xf32>
    %459 = vector.broadcast %438 : vector<1x32xf32> to vector<2x32xf32>
    %460 = arith.addf %458, %459 : vector<2x32xf32>
    %c0_236 = arith.constant 0 : index
    %c0_237 = arith.constant 0 : index
    %461 = vector.load %arg23[%c0_236, %c0_237] : memref<32x10xf32, #tpu.memory_space<vmem>>, vector<32x10xf32>
    %cst_238 = arith.constant dense<0.000000e+00> : vector<2x10xf32>
    %462 = tpu.matmul %460, %461, %cst_238 {dimension_numbers = #tpu.dot_dimension_numbers<[1], [0], [0], [1], [0, 0, 1, 1], [], []>} : vector<2x32xf32>, vector<32x10xf32>, vector<2x10xf32> -> vector<2x10xf32>
    %c0_239 = arith.constant 0 : index
    %c0_240 = arith.constant 0 : index
    %463 = vector.load %arg24[%c0_239, %c0_240] : memref<1x10xf32, #tpu.memory_space<vmem>>, vector<1x10xf32>
    %464 = vector.broadcast %463 : vector<1x10xf32> to vector<2x10xf32>
    %465 = arith.addf %462, %464 : vector<2x10xf32>
    %c0_241 = arith.constant 0 : index
    %c0_242 = arith.constant 0 : index
    %c0_243 = arith.constant 0 : index
    %466 = vector.load %arg25[%c0_241, %c0_242, %c0_243] : memref<1x2x10xf32, #tpu.memory_space<vmem>>, vector<1x2x10xf32>
    %467 = vector.shape_cast %466 : vector<1x2x10xf32> to vector<2x10xf32>
    %468 = vector.shape_cast %465 : vector<2x10xf32> to vector<1x2x10xf32>
    tpu.vector_store %arg25[%c0_241, %c0_242, %c0_243], %468 {strides = array<i32>} : memref<1x2x10xf32, #tpu.memory_space<vmem>>, vector<1x2x10xf32>,
    return
  }
  func.func @transform_0(%arg0: i32) -> (i32, i32) {
    %c0_i32 = arith.constant 0 : i32
    %c0_i32_0 = arith.constant 0 : i32
    return %arg0, %c0_i32 : i32, i32
  }
  func.func @transform_1(%arg0: i32) -> (i32, i32) {
    %c0_i32 = arith.constant 0 : i32
    %c0_i32_0 = arith.constant 0 : i32
    %c0_i32_1 = arith.constant 0 : i32
    return %c0_i32, %c0_i32_0 : i32, i32
  }
  func.func @transform_2(%arg0: i32) -> (i32, i32) {
    %c0_i32 = arith.constant 0 : i32
    %c0_i32_0 = arith.constant 0 : i32
    %c0_i32_1 = arith.constant 0 : i32
    return %c0_i32, %c0_i32_0 : i32, i32
  }
  func.func @transform_3(%arg0: i32) -> (i32, i32) {
    %c0_i32 = arith.constant 0 : i32
    %c0_i32_0 = arith.constant 0 : i32
    %c0_i32_1 = arith.constant 0 : i32
    return %c0_i32, %c0_i32_0 : i32, i32
  }
  func.func @transform_4(%arg0: i32) -> (i32, i32, i32) {
    %c0_i32 = arith.constant 0 : i32
    %c0_i32_0 = arith.constant 0 : i32
    %c0_i32_1 = arith.constant 0 : i32
    %c0_i32_2 = arith.constant 0 : i32
    return %c0_i32, %c0_i32_0, %c0_i32_1 : i32, i32, i32
  }
  func.func @transform_5(%arg0: i32) -> (i32, i32, i32) {
    %c0_i32 = arith.constant 0 : i32
    %c0_i32_0 = arith.constant 0 : i32
    %c0_i32_1 = arith.constant 0 : i32
    %c0_i32_2 = arith.constant 0 : i32
    return %c0_i32, %c0_i32_0, %c0_i32_1 : i32, i32, i32
  }
  func.func @transform_6(%arg0: i32) -> (i32, i32, i32) {
    %c0_i32 = arith.constant 0 : i32
    %c0_i32_0 = arith.constant 0 : i32
    %c0_i32_1 = arith.constant 0 : i32
    %c0_i32_2 = arith.constant 0 : i32
    return %c0_i32, %c0_i32_0, %c0_i32_1 : i32, i32, i32
  }
  func.func @transform_7(%arg0: i32) -> (i32, i32, i32) {
    %c0_i32 = arith.constant 0 : i32
    %c0_i32_0 = arith.constant 0 : i32
    %c0_i32_1 = arith.constant 0 : i32
    %c0_i32_2 = arith.constant 0 : i32
    return %c0_i32, %c0_i32_0, %c0_i32_1 : i32, i32, i32
  }
  func.func @transform_8(%arg0: i32) -> (i32, i32, i32) {
    %c0_i32 = arith.constant 0 : i32
    %c0_i32_0 = arith.constant 0 : i32
    %c0_i32_1 = arith.constant 0 : i32
    %c0_i32_2 = arith.constant 0 : i32
    return %c0_i32, %c0_i32_0, %c0_i32_1 : i32, i32, i32
  }
  func.func @transform_9(%arg0: i32) -> (i32, i32, i32) {
    %c0_i32 = arith.constant 0 : i32
    %c0_i32_0 = arith.constant 0 : i32
    %c0_i32_1 = arith.constant 0 : i32
    %c0_i32_2 = arith.constant 0 : i32
    return %c0_i32, %c0_i32_0, %c0_i32_1 : i32, i32, i32
  }
  func.func @transform_10(%arg0: i32) -> (i32, i32, i32) {
    %c0_i32 = arith.constant 0 : i32
    %c0_i32_0 = arith.constant 0 : i32
    %c0_i32_1 = arith.constant 0 : i32
    %c0_i32_2 = arith.constant 0 : i32
    return %c0_i32, %c0_i32_0, %c0_i32_1 : i32, i32, i32
  }
  func.func @transform_11(%arg0: i32) -> (i32, i32, i32) {
    %c0_i32 = arith.constant 0 : i32
    %c0_i32_0 = arith.constant 0 : i32
    %c0_i32_1 = arith.constant 0 : i32
    %c0_i32_2 = arith.constant 0 : i32
    return %c0_i32, %c0_i32_0, %c0_i32_1 : i32, i32, i32
  }
  func.func @transform_12(%arg0: i32) -> (i32, i32, i32) {
    %c0_i32 = arith.constant 0 : i32
    %c0_i32_0 = arith.constant 0 : i32
    %c0_i32_1 = arith.constant 0 : i32
    %c0_i32_2 = arith.constant 0 : i32
    return %c0_i32, %c0_i32_0, %c0_i32_1 : i32, i32, i32
  }
  func.func @transform_13(%arg0: i32) -> (i32, i32, i32) {
    %c0_i32 = arith.constant 0 : i32
    %c0_i32_0 = arith.constant 0 : i32
    %c0_i32_1 = arith.constant 0 : i32
    %c0_i32_2 = arith.constant 0 : i32
    return %c0_i32, %c0_i32_0, %c0_i32_1 : i32, i32, i32
  }
  func.func @transform_14(%arg0: i32) -> (i32, i32, i32) {
    %c0_i32 = arith.constant 0 : i32
    %c0_i32_0 = arith.constant 0 : i32
    %c0_i32_1 = arith.constant 0 : i32
    %c0_i32_2 = arith.constant 0 : i32
    return %c0_i32, %c0_i32_0, %c0_i32_1 : i32, i32, i32
  }
  func.func @transform_15(%arg0: i32) -> (i32, i32, i32) {
    %c0_i32 = arith.constant 0 : i32
    %c0_i32_0 = arith.constant 0 : i32
    %c0_i32_1 = arith.constant 0 : i32
    %c0_i32_2 = arith.constant 0 : i32
    return %c0_i32, %c0_i32_0, %c0_i32_1 : i32, i32, i32
  }
  func.func @transform_16(%arg0: i32) -> (i32, i32, i32) {
    %c0_i32 = arith.constant 0 : i32
    %c0_i32_0 = arith.constant 0 : i32
    %c0_i32_1 = arith.constant 0 : i32
    %c0_i32_2 = arith.constant 0 : i32
    return %c0_i32, %c0_i32_0, %c0_i32_1 : i32, i32, i32
  }
  func.func @transform_17(%arg0: i32) -> (i32, i32, i32) {
    %c0_i32 = arith.constant 0 : i32
    %c0_i32_0 = arith.constant 0 : i32
    %c0_i32_1 = arith.constant 0 : i32
    %c0_i32_2 = arith.constant 0 : i32
    return %c0_i32, %c0_i32_0, %c0_i32_1 : i32, i32, i32
  }
  func.func @transform_18(%arg0: i32) -> (i32, i32, i32) {
    %c0_i32 = arith.constant 0 : i32
    %c0_i32_0 = arith.constant 0 : i32
    %c0_i32_1 = arith.constant 0 : i32
    %c0_i32_2 = arith.constant 0 : i32
    return %c0_i32, %c0_i32_0, %c0_i32_1 : i32, i32, i32
  }
  func.func @transform_19(%arg0: i32) -> (i32, i32, i32) {
    %c0_i32 = arith.constant 0 : i32
    %c0_i32_0 = arith.constant 0 : i32
    %c0_i32_1 = arith.constant 0 : i32
    %c0_i32_2 = arith.constant 0 : i32
    return %c0_i32, %c0_i32_0, %c0_i32_1 : i32, i32, i32
  }
  func.func @transform_20(%arg0: i32) -> (i32, i32) {
    %c0_i32 = arith.constant 0 : i32
    %c0_i32_0 = arith.constant 0 : i32
    %c0_i32_1 = arith.constant 0 : i32
    return %c0_i32, %c0_i32_0 : i32, i32
  }
  func.func @transform_21(%arg0: i32) -> (i32, i32) {
    %c0_i32 = arith.constant 0 : i32
    %c0_i32_0 = arith.constant 0 : i32
    %c0_i32_1 = arith.constant 0 : i32
    return %c0_i32, %c0_i32_0 : i32, i32
  }
  func.func @transform_22(%arg0: i32) -> (i32, i32) {
    %c0_i32 = arith.constant 0 : i32
    %c0_i32_0 = arith.constant 0 : i32
    %c0_i32_1 = arith.constant 0 : i32
    return %c0_i32, %c0_i32_0 : i32, i32
  }
  func.func @transform_23(%arg0: i32) -> (i32, i32) {
    %c0_i32 = arith.constant 0 : i32
    %c0_i32_0 = arith.constant 0 : i32
    %c0_i32_1 = arith.constant 0 : i32
    return %c0_i32, %c0_i32_0 : i32, i32
  }
  func.func @transform_24(%arg0: i32) -> (i32, i32, i32) {
    %c0_i32 = arith.constant 0 : i32
    %c0_i32_0 = arith.constant 0 : i32
    %c0_i32_1 = arith.constant 0 : i32
    return %arg0, %c0_i32, %c0_i32_0 : i32, i32, i32
  }
}

</mosaic_0001>

<bundles_post_ra>
// kernel: vit_forward.1
= control target key start
LH: loop header
LB: loop body
LE: loop exit
PB: predicated region body
PF: predicated region fallthrough
CT: control target
= control target key end

     0   :  { %s9446_s0 = inlined_call_operand.vmem [shape: f32[48,48], index: 0, kind: input, shape index: {}]   ;;  %s9447_s1 = inlined_call_operand.vmem [shape: f32[48,32], index: 1, kind: input, shape index: {}]   ;;  %s9448_s2 = inlined_call_operand.vmem [shape: f32[48,48], index: 2, kind: input, shape index: {}]   ;;  %s9449_s3 = inlined_call_operand.vmem [shape: f32[48,32], index: 3, kind: input, shape index: {}]   ;;  %s9450_s4 = inlined_call_operand.vmem [shape: f32[2,1,32], index: 4, kind: input, shape index: {}]   ;;  %s9451_s5 = inlined_call_operand.vmem [shape: f32[2,1,32], index: 5, kind: input, shape index: {}]   ;;  %s9452_s6 = inlined_call_operand.vmem [shape: f32[2,32,32], index: 6, kind: input, shape index: {}]   ;;  %s9453_s7 = inlined_call_operand.vmem [shape: f32[2,1,32], index: 7, kind: input, shape index: {}]   ;;  %s9454_s8 = inlined_call_operand.vmem [shape: f32[2,32,32], index: 8, kind: input, shape index: {}]   ;;  %s9455_s9 = inlined_call_operand.vmem [shape: f32[2,1,32], index: 9, kind: input, shape index: {}]   ;;  %s9456_s10 = inlined_call_operand.vmem [shape: f32[2,32,32], index: 10, kind: input, shape index: {}]   ;;  %s9457_s11 = inlined_call_operand.vmem [shape: f32[2,1,32], index: 11, kind: input, shape index: {}]   ;;  %s9458_s12 = inlined_call_operand.vmem [shape: f32[2,32,32], index: 12, kind: input, shape index: {}]   ;;  %s9459_s13 = inlined_call_operand.vmem [shape: f32[2,1,32], index: 13, kind: input, shape index: {}]   ;;  %s9460_s14 = inlined_call_operand.vmem [shape: f32[2,1,32], index: 14, kind: input, shape index: {}]   ;;  %s9461_s15 = inlined_call_operand.vmem [shape: f32[2,1,32], index: 15, kind: input, shape index: {}]   ;;  %s9462_s16 = inlined_call_operand.vmem [shape: f32[2,32,128], index: 16, kind: input, shape index: {}]   ;;  %s9463_s17 = inlined_call_operand.vmem [shape: f32[2,1,128], index: 17, kind: input, shape index: {}]   ;;  %s9464_s18 = inlined_call_operand.vmem [shape: f32[2,128,32], index: 18, kind: input, shape index: {}]   ;;  %s9465_s19 = inlined_call_operand.vmem [shape: f32[2,1,32], index: 19, kind: input, shape index: {}]   ;;  %s9466_s20 = inlined_call_operand.vmem [shape: f32[1,32], index: 20, kind: input, shape index: {}]   ;;  %s9467_s21 = inlined_call_operand.vmem [shape: f32[1,32], index: 21, kind: input, shape index: {}]   ;;  %s9468_s22 = inlined_call_operand.vmem [shape: f32[32,10], index: 22, kind: input, shape index: {}]   ;;  %s9469_s23 = inlined_call_operand.vmem [shape: f32[1,10], index: 23, kind: input, shape index: {}]   ;;  %s9470_s24 = inlined_call_operand.hbm [shape: f32[1,2,10], index: 24, kind: output, shape index: {}]  }
   0x1   :  { %9493 = sst [smem:[#allocation6_spill]] %s9446_s0 }
   0x2   :  { %9494 = sst [smem:[#allocation7_spill]] %s9447_s1 }
   0x3   :  { %9495 = sst [smem:[#allocation8_spill]] %s9448_s2 }
   0x4   :  { %9496 = sst [smem:[#allocation9_spill]] %s9449_s3 }
   0x5   :  { %9497 = sst [smem:[#allocation10_spill]] %s9450_s4 }
   0x6   :  { %9498 = sst [smem:[#allocation11_spill]] %s9451_s5 }
   0x7   :  { %9499 = sst [smem:[#allocation12_spill]] %s9452_s6 }
   0x8   :  { %9500 = sst [smem:[#allocation13_spill]] %s9453_s7 }
   0x9   :  { %9501 = sst [smem:[#allocation14_spill]] %s9454_s8 }
   0xa   :  { %9502 = sst [smem:[#allocation15_spill]] %s9470_s24 }
   0xb   :  { %s9503_s27 = sld [smem:[#allocation9_spill]]  ;;  %vm96_vm0 = vcmask 392192   ;;  %s9504_s5 = sld [smem:[#allocation6_spill]] }
  0x11   :  { %v84_v0 = vld [vmem:[%s9503_s27] sm:$0xff]  ;;  %v85_v1 = vld [vmem:[%s9503_s27 + $0x8] sm:$0xff]  ;;  %v86_v2 = vld [vmem:[%s9503_s27 + $0x10] sm:$0xff] }
  0x12   :  { %v6745_v3 = vpack.c.bf16 %v85_v1, %v84_v0  ;;  %v87_v4 = vld [vmem:[%s9503_s27 + $0x18] sm:$0xff]  ;;  %v88_v6 = vld [vmem:[%s9503_s27 + $0x20] sm:$0xff]  ;;  %v89_v7 = vld [vmem:[%s9503_s27 + $0x28] sm:$0xff] }
  0x13   :  { %v6749_v5 = vpack.c.bf16 %v87_v4, %v86_v2  ;;  %v78_v8 = vld [vmem:[%s9504_s5] sm:$0xff] }
  0x14   :  { %6746 = vmatprep.subr.bf16.mxu0 %v6745_v3  ;;  %6137 = vmatprep.mubr.msk.f32.mxu0 %vm96_vm0, %v78_v8 }
  0x15   :  { %6748 = vmatpush3.bf16.msra.mxu0 %v6745_v3 }
  0x16   :  { %29 = vsyncpa [#allocation4], 0  ;;  %6750 = vmatprep.subr.bf16.mxu0 %v6749_v5  ;;  %v6753_v9 = vpack.c.bf16 %v89_v7, %v88_v6  ;;  %v79_v10 = vld [vmem:[%s9504_s5 + $0x8] sm:$0xff]  ;;  %v80_v11 = vld [vmem:[%s9504_s5 + $0x10] sm:$0xff]  ;;  %s9505_s4 = sld [smem:[#allocation7_spill]]  ;;  %vm218_vm1 = vcmask 261120  }
  0x17   :  { %v81_v12 = vld [vmem:[%s9504_s5 + $0x18] sm:$0xff]  ;;  %v82_v13 = vld [vmem:[%s9504_s5 + $0x20] sm:$0xff]  ;;  %v83_v14 = vld [vmem:[%s9504_s5 + $0x28] sm:$0xff]  ;;  %s9506_s25 = sld [smem:[#allocation12_spill]]  ;;  %s9507_s28 = sld [smem:[#allocation14_spill]]  ;;  %vm658_vm2 = vcmask 64512  }
  0x18   :  { %s9508_s2 = sld [smem:[#allocation10_spill]]  ;;  %s9509_s7 = sld [smem:[#allocation11_spill]]  ;;  %vm7995_vm3 = vmpackc.low %vm658_vm2, %vm658_vm2  ;;  %vm1369_vm4 = vcmask 130112   ;;  %vm1752_vm5 = vcmask 195712   ;;  %vm2135_vm6 = vcmask 261312  }
  0x19   :  { %6752 = vmatpush3.bf16.msra.mxu0 %v6749_v5  ;;  %s9510_s27 = sld [smem:[#allocation13_spill]]  ;;  %s9513_s8 = sld [smem:[#allocation8_spill]] }
  0x1a   :  { %6754 = vmatprep.subr.bf16.mxu0 %v6753_v9  ;;  %s9490_s1 = smov 120   ;;  %s9486_s26 = smov 112  }
  0x1b   :  { %s9484_s6 = smov 104   ;;  %s9482_s5 = smov 8  }
  0x1c   :  { %v90_v15 = vld [vmem:[%s9505_s4] sm:$0xff]  ;;  %v91_v17 = vld [vmem:[%s9505_s4 + $0x8] sm:$0xff]  ;;  %v93_v20 = vld [vmem:[%s9505_s4 + $0x18] sm:$0xff]  ;;  %s9480_s29 = smov 16   ;;  %s9488_s0 = smov 24  }
  0x1d   :  { %6756 = vmatpush3.bf16.msra.mxu0 %v6753_v9  ;;  %v92_v21 = vld [vmem:[%s9505_s4 + $0x10] sm:$0xff]  ;;  %v95_v28 = vld [vmem:[%s9505_s4 + $0x28] sm:$0xff]  ;;  %v94_v29 = vld [vmem:[%s9505_s4 + $0x20] sm:$0xff] }
  0x1e   :  { %v322_v5 = vld [vmem:[%s9506_s25] sm:$0xff]  ;;  %v323_v6 = vld [vmem:[%s9506_s25 + $0x8] sm:$0xff] }
  0x1f   :  { %v446_v7 = vld [vmem:[%s9507_s28] sm:$0xff]  ;;  %v6757_v8 = vpack.c.bf16 %v323_v6, %v322_v5  ;;  %v447_v9 = vld [vmem:[%s9507_s28 + $0x8] sm:$0xff] }
  0x20   :  { %6138 = vmatmul.mubr.msk.f32.vlgmr.msra.gmra.mrb[0].mxu0 %vm96_vm0, %v79_v10  ;;  %v6765_v10 = vpack.c.bf16 %v447_v9, %v446_v7 }
  0x21   :  { %6140 = vmatprep.mubr.msk.f32.mxu0 %vm96_vm0, %v80_v11  ;;  %6758 = vmatprep.subr.bf16.mxu0 %v6757_v8  ;;  %v324_v11 = vld [vmem:[%s9506_s25 + $0x10] sm:$0xff] }
  0x22   :  { %6766 = vmatprep.subr.bf16.mxu1 %v6765_v10  ;;  %6760 = vmatpush3.bf16.msra.mxu0 %v6757_v8 }
  0x23   :  { %6768 = vmatpush3.bf16.msra.mxu1 %v6765_v10  ;;  %v7988_v10 = vld [vmem:[%s9510_s27] ss:$0 sm:$0xff] }
  0x24   :  { %6141 = vmatmul.mubr.msk.f32.gmra.mrb[2].mxu0 %vm96_vm0, %v81_v12  ;;  %v325_v12 = vld [vmem:[%s9506_s25 + $0x18] sm:$0xff] }
  0x25   :  { %6143 = vmatprep.mubr.msk.f32.mxu0 %vm96_vm0, %v82_v13  ;;  %v6761_v13 = vpack.c.bf16 %v325_v12, %v324_v11 }
  0x27   :  { %6762 = vmatprep.subr.bf16.mxu0 %v6761_v13 }
  0x28   :  { %6144 = vmatmul.mubr.msk.f32.gmra.mrb[4].mxu0 %vm96_vm0, %v83_v14  ;;  %v448_v14 = vld [vmem:[%s9507_s28 + $0x10] sm:$0xff] }
  0x29   :  { %6764 = vmatpush3.bf16.msra.mxu0 %v6761_v13 }
  0xf3   :  { %v6139_v16 = vpop.f32.mrb[0].mxu0 }
  0xf4   :  { %v181_v18 = vpop.f32.mrb[1].mxu0  ;;  %v7852_v22 = vadd.f32 %v6139_v16, %v91_v17  ;;  %v552_v17 = vld [vmem:[%s9456_s10] sm:$0xff] }
  0xf5   :  { %v7844_v19 = vadd.f32 %v181_v18, %v90_v15  ;;  %v449_v15 = vld [vmem:[%s9507_s28 + $0x18] sm:$0xff]  ;;  %v553_v18 = vld [vmem:[%s9456_s10 + $0x8] sm:$0xff] }
  0xf6   :  { %v222_v32 = vsel %vm218_vm1, %v7852_v22, 0.0  ;;  %v6769_v16 = vpack.c.bf16 %v449_v15, %v448_v14 }
  0xf7   :  { %v6142_v23 = vpop.f32.mrb[2].mxu0  ;;  %v219_v24 = vsel %vm218_vm1, %v7844_v19, 0.0 }
  0xf8   :  { %v191_v25 = vpop.f32.mrb[3].mxu0  ;;  %220 = vadd.xlane.f32.xlu0 %v219_v24  ;;  %v7856_v26 = vadd.f32 %v6142_v23, %v93_v20  ;;  %6770 = vmatprep.subr.bf16.mxu1 %v6769_v16  ;;  %v6773_v20 = vpack.c.bf16 %v553_v18, %v552_v17 }
  0xf9   :  { %v7858_v27 = vadd.f32 %v191_v25, %v92_v21  ;;  %6772 = vmatpush3.bf16.msra.mxu1 %v6769_v16 }
  0xfa   :  { %v228_v36 = vsel %vm218_vm1, %v7856_v26, 0.0  ;;  %6774 = vmatprep.subr.bf16.mxu0 %v6773_v20 }
  0xfb   :  { %v6145_v30 = vpop.f32.mrb[4].mxu0  ;;  %v225_v31 = vsel %vm218_vm1, %v7858_v27, 0.0 }
  0xfc   :  { %v201_v33 = vpop.f32.mrb[5].mxu0  ;;  %226 = vadd.xlane.f32.xlu1 %v225_v31  ;;  %223 = vadd.xlane.f32.xlu0 %v222_v32  ;;  %v7870_v34 = vadd.f32 %v6145_v30, %v95_v28 }
  0xfd   :  { %v7872_v35 = vadd.f32 %v201_v33, %v94_v29 }
  0xfe   :  { %v234_v38 = vsel %vm218_vm1, %v7870_v34, 0.0 }
  0xff   :  { %v231_v37 = vsel %vm218_vm1, %v7872_v35, 0.0 }
 0x100   :  { %229 = vadd.xlane.f32.xlu1 %v228_v36  ;;  %232 = vadd.xlane.f32.xlu0 %v231_v37 }
 0x104   :  { %235 = vadd.xlane.f32.xlu1 %v234_v38 }
 0x185   :  { %v221_v39 = vpop.xlane.xlu0 %220 }
 0x186   :  { %v238_v40 = vmul.f32 0.03125, %v221_v39 }
 0x188   :  { %v7881_v41 = vsub.f32 %v7844_v19, %v238_v40 }
 0x189   :  { %v227_v42 = vpop.xlane.xlu1 %226  ;;  %v224_v43 = vpop.xlane.xlu0 %223 }
 0x18a   :  { %v240_v44 = vmul.f32 0.03125, %v227_v42  ;;  %v239_v45 = vmul.f32 0.03125, %v224_v43  ;;  %v250_v46 = vmul.f32 %v7881_v41, %v7881_v41 }
 0x18c   :  { %v7886_v47 = vsub.f32 %v7858_v27, %v240_v44  ;;  %v7889_v48 = vsub.f32 %v7852_v22, %v239_v45  ;;  %v256_v49 = vsel %vm218_vm1, %v250_v46, 0.0  ;;  %v5498_v45 = vld [vmem:[%s9508_s2] ss:$0 sm:$0xff] }
 0x18d   :  { %v230_v50 = vpop.xlane.xlu1 %229  ;;  %257 = vadd.xlane.f32.xlu0 %v256_v49  ;;  %v233_v51 = vpop.xlane.xlu0 %232 }
 0x18e   :  { %v241_v52 = vmul.f32 0.03125, %v230_v50  ;;  %v242_v53 = vmul.f32 0.03125, %v233_v51  ;;  %v252_v54 = vmul.f32 %v7886_v47, %v7886_v47  ;;  %v251_v55 = vmul.f32 %v7889_v48, %v7889_v48  ;;  %v5499_v50 = vld [vmem:[%s9509_s7] ss:$0 sm:$0xff] }
 0x190   :  { %v7897_v56 = vsub.f32 %v7856_v26, %v241_v52  ;;  %v7900_v57 = vsub.f32 %v7872_v35, %v242_v53  ;;  %v262_v58 = vsel %vm218_vm1, %v252_v54, 0.0  ;;  %v259_v59 = vsel %vm218_vm1, %v251_v55, 0.0 }
 0x191   :  { %v236_v60 = vpop.xlane.xlu1 %235  ;;  %263 = vadd.xlane.f32.xlu0 %v262_v58  ;;  %260 = vadd.xlane.f32.xlu1 %v259_v59 }
 0x192   :  { %v243_v61 = vmul.f32 0.03125, %v236_v60  ;;  %v253_v62 = vmul.f32 %v7897_v56, %v7897_v56  ;;  %v254_v63 = vmul.f32 %v7900_v57, %v7900_v57  ;;  %v555_v60 = vld [vmem:[%s9456_s10 + $0x18] sm:$0xff] }
 0x194   :  { %v7909_v0 = vsub.f32 %v7870_v34, %v243_v61  ;;  %v265_v1 = vsel %vm218_vm1, %v253_v62, 0.0  ;;  %v268_v2 = vsel %vm218_vm1, %v254_v63, 0.0 }
 0x195   :  { %266 = vadd.xlane.f32.xlu1 %v265_v1  ;;  %269 = vadd.xlane.f32.xlu0 %v268_v2 }
 0x196   :  { %v255_v3 = vmul.f32 %v7909_v0, %v7909_v0 }
 0x198   :  { %v271_v4 = vsel %vm218_vm1, %v255_v3, 0.0 }
 0x199   :  { %272 = vadd.xlane.f32.xlu1 %v271_v4 }
 0x21a   :  { %v258_v21 = vpop.xlane.xlu0 %257 }
 0x21b   :  { %v274_v23 = vmul.f32 0.03125, %v258_v21 }
 0x21d   :  { %v280_v24 = vadd.f32 1e-06, %v274_v23 }
 0x21e   :  { %v261_v25 = vpop.xlane.xlu1 %260  ;;  %v264_v28 = vpop.xlane.xlu0 %263 }
 0x21f   :  { %7338 = vrsqrt.f32 %v280_v24  ;;  %v275_v29 = vmul.f32 0.03125, %v261_v25  ;;  %v276_v30 = vmul.f32 0.03125, %v264_v28 }
 0x221   :  { %v281_v31 = vadd.f32 1e-06, %v275_v29  ;;  %v282_v32 = vadd.f32 1e-06, %v276_v30 }
 0x222   :  { %v267_v33 = vpop.xlane.xlu1 %266  ;;  %v270_v36 = vpop.xlane.xlu0 %269 }
 0x223   :  { %7340 = vrsqrt.f32 %v281_v31  ;;  %v277_v37 = vmul.f32 0.03125, %v267_v33  ;;  %v278_v38 = vmul.f32 0.03125, %v270_v36 }
 0x224   :  { %7342 = vrsqrt.f32 %v282_v32 }
 0x225   :  { %v283_v39 = vadd.f32 1e-06, %v277_v37  ;;  %v284_v40 = vadd.f32 1e-06, %v278_v38 }
 0x226   :  { %v273_v42 = vpop.xlane.xlu1 %272 }
 0x227   :  { %7344 = vrsqrt.f32 %v283_v39  ;;  %v279_v43 = vmul.f32 0.03125, %v273_v42  ;;  %v5514_v42 = vld [vmem:[%s9457_s11] ss:$0 sm:$0xff] }
 0x228   :  { %7346 = vrsqrt.f32 %v284_v40 }
 0x229   :  { %v7339_v44 = vpop.eup %7338  ;;  %v285_v46 = vadd.f32 1e-06, %v279_v43 }
 0x22a   :  { %v292_v49 = vmul.f32 %v7339_v44, %v7881_v41  ;;  %v554_v41 = vld [vmem:[%s9456_s10 + $0x10] sm:$0xff] }
 0x22b   :  { %7348 = vrsqrt.f32 %v285_v46  ;;  %v6777_v3 = vpack.c.bf16 %v555_v60, %v554_v41 }
 0x22c   :  { %v304_v51 = vmul.f32 %v5498_v45, %v292_v49 }
 0x22d   :  { %v7341_v52 = vpop.eup %7340 }
 0x22e   :  { %v7343_v53 = vpop.eup %7342  ;;  %v293_v54 = vmul.f32 %v7341_v52, %v7889_v48  ;;  %v316_v55 = vadd.f32 %v5499_v50, %v304_v51 }
 0x22f   :  { %v294_v58 = vmul.f32 %v7343_v53, %v7886_v47 }
 0x230   :  { %v305_v59 = vmul.f32 %v5498_v45, %v293_v54  ;;  %6154 = vmatprep.mubr.msk.f32.mxu0 %vm218_vm1, %v316_v55  ;;  %6171 = vmatprep.mubr.msk.f32.mxu1 %vm218_vm1, %v316_v55 }
 0x231   :  { %v7345_v61 = vpop.eup %7344  ;;  %v306_v62 = vmul.f32 %v5498_v45, %v294_v58 }
 0x232   :  { %v7347_v63 = vpop.eup %7346  ;;  %v317_v48 = vadd.f32 %v5499_v50, %v305_v59  ;;  %v295_v1 = vmul.f32 %v7345_v61, %v7897_v56 }
 0x233   :  { %v318_v47 = vadd.f32 %v5499_v50, %v306_v62  ;;  %v296_v2 = vmul.f32 %v7347_v63, %v7900_v57 }
 0x234   :  { %6155 = vmatmul.mubr.msk.f32.vlgmr.msra.gmra.mrb[6].mxu0 %vm218_vm1, %v317_v48  ;;  %6172 = vmatmul.mubr.msk.f32.vlgmr.msra.gmra.mrb[0].mxu1 %vm218_vm1, %v317_v48  ;;  %v307_v4 = vmul.f32 %v5498_v45, %v295_v1 }
 0x235   :  { %v7349_v5 = vpop.eup %7348  ;;  %6157 = vmatprep.mubr.msk.f32.mxu0 %vm218_vm1, %v318_v47  ;;  %6174 = vmatprep.mubr.msk.f32.mxu1 %vm218_vm1, %v318_v47  ;;  %v308_v6 = vmul.f32 %v5498_v45, %v296_v2 }
 0x236   :  { %v319_v7 = vadd.f32 %v5499_v50, %v307_v4  ;;  %6776 = vmatpush3.bf16.msra.mxu0 %v6773_v20  ;;  %v297_v8 = vmul.f32 %v7349_v5, %v7909_v0  ;;  %v5507_v0 = vld [vmem:[%s9455_s9] ss:$0 sm:$0xff] }
 0x237   :  { %v320_v56 = vadd.f32 %v5499_v50, %v308_v6  ;;  %6778 = vmatprep.subr.bf16.mxu0 %v6777_v3 }
 0x238   :  { %6158 = vmatmul.mubr.msk.f32.gmra.mrb[8].mxu0 %vm218_vm1, %v319_v7  ;;  %6175 = vmatmul.mubr.msk.f32.gmra.mrb[2].mxu1 %vm218_vm1, %v319_v7  ;;  %v309_v57 = vmul.f32 %v5498_v45, %v297_v8 }
 0x239   :  { %6160 = vmatprep.mubr.msk.f32.mxu0 %vm218_vm1, %v320_v56  ;;  %6177 = vmatprep.mubr.msk.f32.mxu1 %vm218_vm1, %v320_v56 }
 0x23a   :  { %v321_v9 = vadd.f32 %v5499_v50, %v309_v57  ;;  %6780 = vmatpush3.bf16.msra.mxu0 %v6777_v3  ;;  %v8061_v57 = vld [vmem:[%s9513_s8] sm:$0xff] }
 0x23c   :  { %6161 = vmatmul.mubr.msk.f32.gmra.mrb[10].mxu0 %vm218_vm1, %v321_v9  ;;  %6178 = vmatmul.mubr.msk.f32.gmra.mrb[4].mxu1 %vm218_vm1, %v321_v9 }
 0x23d   :  { %6188 = vmatprep.mubr.msk.f32.mxu0 %vm218_vm1, %v316_v55 }
 0x240   :  { %6189 = vmatmul.mubr.msk.f32.vlgmr.msra.gmra.mrb[12].mxu0 %vm218_vm1, %v317_v48 }
 0x241   :  { %6191 = vmatprep.mubr.msk.f32.mxu0 %vm218_vm1, %v318_v47 }
 0x244   :  { %6192 = vmatmul.mubr.msk.f32.gmra.mrb[14].mxu0 %vm218_vm1, %v319_v7  ;;  %v8056_v7 = vld [vmem:[%s9513_s8 + $0x8] sm:$0xff] }
 0x245   :  { %6194 = vmatprep.mubr.msk.f32.mxu0 %vm218_vm1, %v320_v56 }
 0x248   :  { %6195 = vmatmul.mubr.msk.f32.gmra.mrb[16].mxu0 %vm218_vm1, %v321_v9 }
 0x307   :  { %v6156_v11 = vpop.f32.mrb[6].mxu0  ;;  %v6173_v12 = vpop.f32.mrb[0].mxu1 }
 0x308   :  { %v529_v13 = vadd.f32 %v6173_v12, %v5507_v0  ;;  %v417_v14 = vpop.f32.mrb[7].mxu0  ;;  %v523_v15 = vpop.f32.mrb[1].mxu1  ;;  %v8029_v47 = vadd.f32 %v6156_v11, %v7988_v10  ;;  %v8068_v12 = vld [vmem:[%s9513_s8 + $0x18] sm:$0xff] }
 0x309   :  { %v7991_v16 = vadd.f32 %v7988_v10, %v417_v14  ;;  %v524_v17 = vadd.f32 %v5507_v0, %v523_v15 }
 0x30b   :  { %v6159_v20 = vpop.f32.mrb[8].mxu0  ;;  %v6176_v21 = vpop.f32.mrb[2].mxu1  ;;  %6209 = vmatprep.mubr.msk.f32.mxu1 %vm658_vm2, %v7991_v16  ;;  %v6781_v23 = vpack.c.bf16 %v529_v13, %v524_v17  ;;  %v8001_v24 = vpack.i.bf16 %v529_v13, %v524_v17  ;;  %v8074_v17 = vld [vmem:[%s9513_s8 + $0x10] sm:$0xff] }
 0x30c   :  { %v539_v25 = vadd.f32 %v6176_v21, %v5507_v0  ;;  %v427_v28 = vpop.f32.mrb[9].mxu0  ;;  %v533_v29 = vpop.f32.mrb[3].mxu1  ;;  %v8039_v3 = vadd.f32 %v6159_v20, %v7988_v10 }
 0x30d   :  { %v534_v30 = vadd.f32 %v5507_v0, %v533_v29  ;;  %6783 = vmatprep.subr.msk.bf16.mxu1 %vm7995_vm3, %v6781_v23  ;;  %v8032_v2 = vadd.f32 %v7988_v10, %v427_v28  ;;  %v8082_v29 = vld [vmem:[%s9513_s8 + $0x28] sm:$0xff] }
 0x30e   :  { %6786 = vmatpush3.bf16.xpose.msk.msra.mxu1 %vm7995_vm3, %v6781_v23 }
 0x30f   :  { %v6162_v31 = vpop.f32.mrb[10].mxu0  ;;  %v6179_v32 = vpop.f32.mrb[4].mxu1  ;;  %v6787_v33 = vpack.c.bf16 %v539_v25, %v534_v30  ;;  %v8007_v36 = vpack.i.bf16 %v539_v25, %v534_v30 }
 0x310   :  { %v549_v37 = vadd.f32 %v6179_v32, %v5507_v0  ;;  %v437_v38 = vpop.f32.mrb[11].mxu0  ;;  %v543_v39 = vpop.f32.mrb[5].mxu1  ;;  %v8049_v5 = vadd.f32 %v6162_v31, %v7988_v10 }
 0x311   :  { %v544_v40 = vadd.f32 %v5507_v0, %v543_v39  ;;  %6789 = vmatprep.subr.msk.bf16.mxu1 %vm7995_vm3, %v6787_v33  ;;  %v8042_v4 = vadd.f32 %v7988_v10, %v437_v38 }
 0x313   :  { %v6190_v43 = vpop.f32.mrb[12].mxu0  ;;  %v6793_v44 = vpack.c.bf16 %v549_v37, %v544_v40  ;;  %v8014_v45 = vpack.i.bf16 %v549_v37, %v544_v40 }
 0x314   :  { %v635_v46 = vadd.f32 %v6190_v43, %v5514_v42  ;;  %v629_v49 = vpop.f32.mrb[13].mxu0 }
 0x315   :  { %v630_v50 = vadd.f32 %v5514_v42, %v629_v49 }
 0x316   :  { %6792 = vmatpush3.bf16.xpose.msk.msra.mxu1 %vm7995_vm3, %v6787_v33  ;;  %v8088_v33 = vld [vmem:[%s9513_s8 + $0x20] sm:$0xff] }
 0x317   :  { %v6193_v51 = vpop.f32.mrb[14].mxu0  ;;  %6795 = vmatprep.subr.msk.bf16.mxu1 %vm7995_vm3, %v6793_v44  ;;  %v6799_v52 = vpack.c.bf16 %v635_v46, %v630_v50  ;;  %v8020_v53 = vpack.i.bf16 %v635_v46, %v630_v50 }
 0x318   :  { %v645_v54 = vadd.f32 %v6193_v51, %v5514_v42  ;;  %v639_v55 = vpop.f32.mrb[15].mxu0 }
 0x319   :  { %v640_v58 = vadd.f32 %v5514_v42, %v639_v55  ;;  %6800 = vmatprep.subr.bf16.mxu0 %v6799_v52 }
 0x31a   :  { %6802 = vmatpush3.bf16.msra.mxu0 %v6799_v52 }
 0x31b   :  { %v6196_v59 = vpop.f32.mrb[16].mxu0  ;;  %v6803_v41 = vpack.c.bf16 %v645_v54, %v640_v58  ;;  %v8022_v60 = vpack.i.bf16 %v645_v54, %v640_v58 }
 0x31c   :  { %v655_v61 = vadd.f32 %v6196_v59, %v5514_v42  ;;  %v649_v62 = vpop.f32.mrb[17].mxu0 }
 0x31d   :  { %v650_v63 = vadd.f32 %v5514_v42, %v649_v62  ;;  %6804 = vmatprep.subr.bf16.mxu0 %v6803_v41 }
 0x31e   :  { %6798 = vmatpush3.bf16.xpose.msk.msra.mxu1 %vm7995_vm3, %v6793_v44  ;;  %6806 = vmatpush3.bf16.msra.mxu0 %v6803_v41 }
 0x31f   :  { %v6807_v48 = vpack.c.bf16 %v655_v61, %v650_v63  ;;  %v8026_v1 = vpack.i.bf16 %v655_v61, %v650_v63 }
 0x321   :  { %6808 = vmatprep.subr.bf16.mxu0 %v6807_v48 }
 0x322   :  { %6810 = vmatpush3.bf16.msra.mxu0 %v6807_v48 }
 0x325   :  { %6210 = vmatmul.mubr.msk.f32.vlgmr.msra.gmra.mrb[6].mxu1 %vm658_vm2, %v8029_v47 }
 0x326   :  { %6212 = vmatprep.mubr.msk.f32.mxu1 %vm658_vm2, %v8032_v2 }
 0x329   :  { %6213 = vmatmul.mubr.msk.f32.gmra.mrb[8].mxu1 %vm658_vm2, %v8039_v3 }
 0x32a   :  { %6215 = vmatprep.mubr.msk.f32.mxu1 %vm658_vm2, %v8042_v4 }
 0x32d   :  { %6216 = vmatmul.mubr.msk.f32.gmra.mrb[10].mxu1 %vm658_vm2, %v8049_v5 }
 0x3f8   :  { %v6211_v6 = vpop.f32.mrb[6].mxu1 }
 0x3f9   :  { %v791_v8 = vmul.f32 0.35355338, %v6211_v6  ;;  %v761_v56 = vpop.f32.mrb[7].mxu1 }
 0x3fa   :  { %v790_v9 = vmul.f32 0.35355338, %v761_v56 }
 0x3fb   :  { %v797_v0 = vadd.f32 %v791_v8, %v8056_v7 }
 0x3fc   :  { %v6214_v10 = vpop.f32.mrb[8].mxu1  ;;  %v796_v11 = vadd.f32 %v790_v9, %v8061_v57 }
 0x3fd   :  { %v793_v13 = vmul.f32 0.35355338, %v6214_v10  ;;  %v771_v14 = vpop.f32.mrb[9].mxu1  ;;  %v805_v15 = vsel %vm96_vm0, %v797_v0, -inf }
 0x3fe   :  { %v792_v20 = vmul.f32 0.35355338, %v771_v14  ;;  %806 = vmax.xlane.f32.xlu1 %v805_v15  ;;  %v802_v21 = vsel %vm96_vm0, %v796_v11, -inf }
 0x3ff   :  { %803 = vmax.xlane.f32.xlu0 %v802_v21  ;;  %v799_v23 = vadd.f32 %v793_v13, %v8068_v12 }
 0x400   :  { %v6217_v25 = vpop.f32.mrb[10].mxu1  ;;  %v798_v28 = vadd.f32 %v792_v20, %v8074_v17 }
 0x401   :  { %v795_v30 = vmul.f32 0.35355338, %v6217_v25  ;;  %v781_v31 = vpop.f32.mrb[11].mxu1  ;;  %v811_v32 = vsel %vm96_vm0, %v799_v23, -inf }
 0x402   :  { %v794_v37 = vmul.f32 0.35355338, %v781_v31  ;;  %812 = vmax.xlane.f32.xlu1 %v811_v32  ;;  %v808_v38 = vsel %vm96_vm0, %v798_v28, -inf }
 0x403   :  { %809 = vmax.xlane.f32.xlu0 %v808_v38  ;;  %v801_v39 = vadd.f32 %v795_v30, %v8082_v29 }
 0x404   :  { %v800_v40 = vadd.f32 %v794_v37, %v8088_v33 }
 0x405   :  { %v817_v42 = vsel %vm96_vm0, %v801_v39, -inf }
 0x406   :  { %818 = vmax.xlane.f32.xlu1 %v817_v42  ;;  %v814_v43 = vsel %vm96_vm0, %v800_v40, -inf }
 0x407   :  { %815 = vmax.xlane.f32.xlu0 %v814_v43 }
 0x48b   :  { %v807_v44 = vpop.xlane.xlu1 %806 }
 0x48c   :  { %v821_v46 = vsub.f32 %v797_v0, %v807_v44  ;;  %v804_v49 = vpop.xlane.xlu0 %803 }
 0x48d   :  { %v820_v50 = vsub.f32 %v796_v11, %v804_v49 }
 0x48e   :  { %v828_v51 = vmul.f32 1.442695, %v821_v46 }
 0x48f   :  { %v826_v52 = vmul.f32 1.442695, %v820_v50  ;;  %v813_v54 = vpop.xlane.xlu1 %812 }
 0x490   :  { %7350 = vpow2.f32 %v828_v51  ;;  %v823_v55 = vsub.f32 %v799_v23, %v813_v54  ;;  %v810_v58 = vpop.xlane.xlu0 %809 }
 0x491   :  { %7352 = vpow2.f32 %v826_v52  ;;  %v822_v59 = vsub.f32 %v798_v28, %v810_v58 }
 0x492   :  { %v832_v41 = vmul.f32 1.442695, %v823_v55 }
 0x493   :  { %v830_v61 = vmul.f32 1.442695, %v822_v59  ;;  %v819_v62 = vpop.xlane.xlu1 %818 }
 0x494   :  { %7354 = vpow2.f32 %v832_v41  ;;  %v825_v63 = vsub.f32 %v801_v39, %v819_v62  ;;  %v816_v48 = vpop.xlane.xlu0 %815 }
 0x495   :  { %7356 = vpow2.f32 %v830_v61  ;;  %v824_v6 = vsub.f32 %v800_v40, %v816_v48 }
 0x496   :  { %v836_v8 = vmul.f32 1.442695, %v825_v63 }
 0x497   :  { %v834_v56 = vmul.f32 1.442695, %v824_v6 }
 0x498   :  { %7358 = vpow2.f32 %v836_v8 }
 0x499   :  { %7360 = vpow2.f32 %v834_v56 }
 0x49a   :  { %v7351_v9 = vpop.eup %7350 }
 0x49b   :  { %v7353_v0 = vpop.eup %7352  ;;  %v841_v10 = vsel %vm96_vm0, %v7351_v9, 0.0 }
 0x49c   :  { %842 = vadd.xlane.f32.xlu1 %v841_v10  ;;  %v838_v11 = vsel %vm96_vm0, %v7353_v0, 0.0 }
 0x49d   :  { %839 = vadd.xlane.f32.xlu0 %v838_v11 }
 0x49e   :  { %v7355_v13 = vpop.eup %7354 }
 0x49f   :  { %v7357_v14 = vpop.eup %7356  ;;  %v847_v15 = vsel %vm96_vm0, %v7355_v13, 0.0 }
 0x4a0   :  { %848 = vadd.xlane.f32.xlu1 %v847_v15  ;;  %v844_v20 = vsel %vm96_vm0, %v7357_v14, 0.0 }
 0x4a1   :  { %845 = vadd.xlane.f32.xlu0 %v844_v20 }
 0x4a2   :  { %v7359_v21 = vpop.eup %7358 }
 0x4a3   :  { %v7361_v23 = vpop.eup %7360  ;;  %v853_v25 = vsel %vm96_vm0, %v7359_v21, 0.0 }
 0x4a4   :  { %854 = vadd.xlane.f32.xlu1 %v853_v25  ;;  %v850_v28 = vsel %vm96_vm0, %v7361_v23, 0.0 }
 0x4a5   :  { %851 = vadd.xlane.f32.xlu0 %v850_v28 }
 0x4b5   :  { %7164 = vrot.lane.b32.xlu1 %v8007_v36, %s9490_s1 }
 0x4b9   :  { %7169 = vrot.lane.b32.xlu1 %v8014_v45, %s9490_s1 }
 0x4bb   :  { %7159 = vrot.lane.b32.xlu0 %v8001_v24, %s9490_s1 }
 0x4bd   :  { %987 = vrot.lane.b32.xlu1 %v7991_v16, %s9490_s1 }
 0x4bf   :  { %989 = vrot.lane.b32.xlu0 %v8029_v47, %s9490_s1 }
 0x4c1   :  { %991 = vrot.lane.b32.xlu1 %v8032_v2, %s9490_s1 }
 0x4c3   :  { %993 = vrot.lane.b32.xlu0 %v8039_v3, %s9490_s1 }
 0x4c5   :  { %995 = vrot.lane.b32.xlu1 %v8042_v4, %s9490_s1 }
 0x4c7   :  { %997 = vrot.lane.b32.xlu0 %v8049_v5, %s9490_s1 }
 0x529   :  { %v843_v30 = vpop.xlane.xlu1 %842 }
 0x52a   :  { %7362 = vrcp.f32 %v843_v30  ;;  %v840_v31 = vpop.xlane.xlu0 %839 }
 0x52b   :  { %7364 = vrcp.f32 %v840_v31 }
 0x52d   :  { %v849_v32 = vpop.xlane.xlu1 %848 }
 0x52e   :  { %7366 = vrcp.f32 %v849_v32  ;;  %v846_v37 = vpop.xlane.xlu0 %845 }
 0x52f   :  { %7368 = vrcp.f32 %v846_v37 }
 0x531   :  { %v855_v38 = vpop.xlane.xlu1 %854 }
 0x532   :  { %7370 = vrcp.f32 %v855_v38  ;;  %v852_v39 = vpop.xlane.xlu0 %851 }
 0x533   :  { %7372 = vrcp.f32 %v852_v39 }
 0x534   :  { %v7363_v40 = vpop.eup %7362 }
 0x535   :  { %v7365_v42 = vpop.eup %7364  ;;  %v7165_v43 = vpop.permute.xlu1 %7164  ;;  %v863_v44 = vmul.f32 %v7363_v40, %v7351_v9 }
 0x536   :  { %v7160_v46 = vpop.permute.xlu0 %7159  ;;  %v862_v49 = vmul.f32 %v7365_v42, %v7353_v0  ;;  %v7167_v50 = vunpack.i.h.bf16 %v7165_v43  ;;  %v7166_v51 = vunpack.i.l.bf16 %v7165_v43 }
 0x537   :  { %v7162_v52 = vunpack.i.h.bf16 %v7160_v46  ;;  %v7161_v54 = vunpack.i.l.bf16 %v7160_v46 }
 0x538   :  { %v7367_v55 = vpop.eup %7366  ;;  %6230 = vmatprep.mubr.msk.f32.mxu0 %vm96_vm0, %v862_v49  ;;  %v6817_v61 = vpack.c.bf16 %v7167_v50, %v7166_v51 }
 0x539   :  { %v7369_v58 = vpop.eup %7368  ;;  %v6811_v59 = vpack.c.bf16 %v7162_v52, %v7161_v54  ;;  %6231 = vmatmul.mubr.msk.f32.vlgmr.msra.gmra.mrb[18].mxu0 %vm96_vm0, %v863_v44  ;;  %v7170_v62 = vpop.permute.xlu1 %7169  ;;  %v865_v63 = vmul.f32 %v7367_v55, %v7355_v13 }
 0x53a   :  { %v864_v41 = vmul.f32 %v7369_v58, %v7357_v14  ;;  %v7172_v56 = vunpack.i.h.bf16 %v7170_v62  ;;  %v7171_v9 = vunpack.i.l.bf16 %v7170_v62  ;;  %v990_v13 = vpop.permute.xlu0 %989 }
 0x53b   :  { %6813 = vmatprep.subr.msk.bf16.mxu0 %vm7995_vm3, %v6811_v59 }
 0x53c   :  { %v7371_v48 = vpop.eup %7370  ;;  %6233 = vmatprep.mubr.msk.f32.mxu0 %vm96_vm0, %v864_v41  ;;  %6816 = vmatpush3.bf16.xpose.msk.msra.mxu0 %vm7995_vm3, %v6811_v59  ;;  %v6823_v11 = vpack.c.bf16 %v7172_v56, %v7171_v9 }
 0x53d   :  { %v7373_v6 = vpop.eup %7372  ;;  %6234 = vmatmul.mubr.msk.f32.gmra.mrb[20].mxu0 %vm96_vm0, %v865_v63  ;;  %6819 = vmatprep.subr.msk.bf16.mxu0 %vm7995_vm3, %v6817_v61  ;;  %v867_v0 = vmul.f32 %v7371_v48, %v7359_v21  ;;  %v988_v10 = vpop.permute.xlu1 %987 }
 0x53e   :  { %v866_v8 = vmul.f32 %v7373_v6, %v7361_v23  ;;  %v994_v15 = vpop.permute.xlu0 %993 }
 0x540   :  { %6236 = vmatprep.mubr.msk.f32.mxu0 %vm96_vm0, %v866_v8 }
 0x541   :  { %6237 = vmatmul.mubr.msk.f32.gmra.mrb[22].mxu0 %vm96_vm0, %v867_v0  ;;  %v992_v14 = vpop.permute.xlu1 %991 }
 0x542   :  { %6251 = vmatprep.mubr.msk.f32.mxu0 %vm658_vm2, %v988_v10  ;;  %v998_v21 = vpop.permute.xlu0 %997 }
 0x544   :  { %6822 = vmatpush3.bf16.xpose.msk.msra.mxu0 %vm7995_vm3, %v6817_v61 }
 0x545   :  { %6825 = vmatprep.subr.msk.bf16.mxu0 %vm7995_vm3, %v6823_v11  ;;  %v996_v20 = vpop.permute.xlu1 %995 }
 0x54c   :  { %6828 = vmatpush3.bf16.xpose.msk.msra.mxu0 %vm7995_vm3, %v6823_v11 }
 0x553   :  { %6252 = vmatmul.mubr.msk.f32.vlgmr.msra.gmra.mrb[24].mxu0 %vm658_vm2, %v990_v13 }
 0x554   :  { %6254 = vmatprep.mubr.msk.f32.mxu0 %vm658_vm2, %v992_v14 }
 0x557   :  { %6255 = vmatmul.mubr.msk.f32.gmra.mrb[26].mxu0 %vm658_vm2, %v994_v15 }
 0x558   :  { %6257 = vmatprep.mubr.msk.f32.mxu0 %vm658_vm2, %v996_v20 }
 0x55b   :  { %6258 = vmatmul.mubr.msk.f32.gmra.mrb[28].mxu0 %vm658_vm2, %v998_v21 }
 0x60c   :  { %v6232_v23 = vpop.f32.mrb[18].mxu0 }
 0x60d   :  { %982 = vst.msk [vmem:[#allocation2 + $0x8] sm:$0xff] %vm658_vm2, %v6232_v23  ;;  %v952_v25 = vpop.f32.mrb[19].mxu0 }
 0x60e   :  { %981 = vst.msk [vmem:[#allocation2] sm:$0xff] %vm658_vm2, %v952_v25 }
 0x610   :  { %v6235_v28 = vpop.f32.mrb[20].mxu0 }
 0x611   :  { %984 = vst.msk [vmem:[#allocation2 + $0x18] sm:$0xff] %vm658_vm2, %v6235_v28  ;;  %v962_v30 = vpop.f32.mrb[21].mxu0 }
 0x612   :  { %983 = vst.msk [vmem:[#allocation2 + $0x10] sm:$0xff] %vm658_vm2, %v962_v30 }
 0x614   :  { %v6238_v31 = vpop.f32.mrb[22].mxu0 }
 0x615   :  { %986 = vst.msk [vmem:[#allocation2 + $0x28] sm:$0xff] %vm658_vm2, %v6238_v31  ;;  %v972_v32 = vpop.f32.mrb[23].mxu0 }
 0x616   :  { %985 = vst.msk [vmem:[#allocation2 + $0x20] sm:$0xff] %vm658_vm2, %v972_v32 }
 0x626   :  { %v6253_v37 = vpop.f32.mrb[24].mxu0 }
 0x627   :  { %v1131_v38 = vmul.f32 0.35355338, %v6253_v37  ;;  %v1101_v39 = vpop.f32.mrb[25].mxu0 }
 0x628   :  { %v1130_v40 = vmul.f32 0.35355338, %v1101_v39 }
 0x629   :  { %v1137_v42 = vadd.f32 %v1131_v38, %v8056_v7 }
 0x62a   :  { %v6256_v43 = vpop.f32.mrb[26].mxu0  ;;  %v1136_v44 = vadd.f32 %v1130_v40, %v8061_v57 }
 0x62b   :  { %v1133_v46 = vmul.f32 0.35355338, %v6256_v43  ;;  %v1111_v49 = vpop.f32.mrb[27].mxu0  ;;  %v1145_v50 = vsel %vm96_vm0, %v1137_v42, -inf }
 0x62c   :  { %v1132_v51 = vmul.f32 0.35355338, %v1111_v49  ;;  %1146 = vmax.xlane.f32.xlu0 %v1145_v50  ;;  %v1142_v52 = vsel %vm96_vm0, %v1136_v44, -inf }
 0x62d   :  { %1143 = vmax.xlane.f32.xlu1 %v1142_v52  ;;  %v1139_v54 = vadd.f32 %v1133_v46, %v8068_v12 }
 0x62e   :  { %v6259_v55 = vpop.f32.mrb[28].mxu0  ;;  %v1138_v61 = vadd.f32 %v1132_v51, %v8074_v17 }
 0x62f   :  { %v1135_v58 = vmul.f32 0.35355338, %v6259_v55  ;;  %v1121_v59 = vpop.f32.mrb[29].mxu0  ;;  %v1151_v41 = vsel %vm96_vm0, %v1139_v54, -inf }
 0x630   :  { %v1134_v62 = vmul.f32 0.35355338, %v1121_v59  ;;  %1152 = vmax.xlane.f32.xlu0 %v1151_v41  ;;  %v1148_v48 = vsel %vm96_vm0, %v1138_v61, -inf }
 0x631   :  { %v1141_v6 = vadd.f32 %v1135_v58, %v8082_v29 }
 0x632   :  { %v1140_v63 = vadd.f32 %v1134_v62, %v8088_v33 }
 0x633   :  { %v1157_v56 = vsel %vm96_vm0, %v1141_v6, -inf }
 0x634   :  { %1149 = vmax.xlane.f32.xlu0 %v1148_v48  ;;  %v1154_v8 = vsel %vm96_vm0, %v1140_v63, -inf }
 0x635   :  { %1155 = vmax.xlane.f32.xlu1 %v1154_v8 }
 0x638   :  { %1158 = vmax.xlane.f32.xlu0 %v1157_v56 }
 0x646   :  { %7174 = vrot.lane.b32.xlu1 %v8020_v53, %s9490_s1 }
 0x64a   :  { %7184 = vrot.lane.b32.xlu1 %v8026_v1, %s9490_s1 }
 0x64e   :  { %7179 = vrot.lane.b32.xlu0 %v8022_v60, %s9490_s1 }
 0x6b9   :  { %v1147_v9 = vpop.xlane.xlu0 %1146 }
 0x6ba   :  { %v1161_v0 = vsub.f32 %v1137_v42, %v1147_v9  ;;  %v1144_v10 = vpop.xlane.xlu1 %1143 }
 0x6bb   :  { %v1160_v11 = vsub.f32 %v1136_v44, %v1144_v10 }
 0x6bc   :  { %v1168_v13 = vmul.f32 1.442695, %v1161_v0 }
 0x6bd   :  { %v1166_v14 = vmul.f32 1.442695, %v1160_v11  ;;  %v1153_v15 = vpop.xlane.xlu0 %1152 }
 0x6be   :  { %7374 = vpow2.f32 %v1168_v13  ;;  %v1163_v20 = vsub.f32 %v1139_v54, %v1153_v15 }
 0x6bf   :  { %7376 = vpow2.f32 %v1166_v14 }
 0x6c0   :  { %v1172_v21 = vmul.f32 1.442695, %v1163_v20 }
 0x6c1   :  { %v1150_v23 = vpop.xlane.xlu0 %1149 }
 0x6c2   :  { %7378 = vpow2.f32 %v1172_v21  ;;  %v1162_v25 = vsub.f32 %v1138_v61, %v1150_v23  ;;  %v1156_v28 = vpop.xlane.xlu1 %1155 }
 0x6c3   :  { %v1164_v31 = vsub.f32 %v1140_v63, %v1156_v28 }
 0x6c4   :  { %v1170_v30 = vmul.f32 1.442695, %v1162_v25 }
 0x6c5   :  { %v1159_v32 = vpop.xlane.xlu0 %1158  ;;  %v1174_v43 = vmul.f32 1.442695, %v1164_v31 }
 0x6c6   :  { %7380 = vpow2.f32 %v1170_v30  ;;  %v1165_v37 = vsub.f32 %v1141_v6, %v1159_v32  ;;  %v7175_v38 = vpop.permute.xlu1 %7174 }
 0x6c7   :  { %v7177_v39 = vunpack.i.h.bf16 %v7175_v38  ;;  %v7176_v40 = vunpack.i.l.bf16 %v7175_v38 }
 0x6c8   :  { %v7375_v42 = vpop.eup %7374  ;;  %v1176_v44 = vmul.f32 1.442695, %v1165_v37 }
 0x6c9   :  { %v7377_v46 = vpop.eup %7376  ;;  %v7180_v49 = vpop.permute.xlu0 %7179  ;;  %v1181_v50 = vsel %vm96_vm0, %v7375_v42, 0.0  ;;  %v6829_v51 = vpack.c.bf16 %v7177_v39, %v7176_v40 }
 0x6ca   :  { %7382 = vpow2.f32 %v1176_v44  ;;  %v7182_v52 = vunpack.i.h.bf16 %v7180_v49  ;;  %v7181_v54 = vunpack.i.l.bf16 %v7180_v49  ;;  %1182 = vadd.xlane.f32.xlu0 %v1181_v50  ;;  %v7185_v55 = vpop.permute.xlu1 %7184  ;;  %v1178_v58 = vsel %vm96_vm0, %v7377_v46, 0.0 }
 0x6cb   :  { %v7187_v59 = vunpack.i.h.bf16 %v7185_v55  ;;  %v7186_v41 = vunpack.i.l.bf16 %v7185_v55  ;;  %1179 = vadd.xlane.f32.xlu1 %v1178_v58  ;;  %6830 = vmatprep.subr.bf16.mxu1 %v6829_v51  ;;  %7384 = vpow2.f32 %v1174_v43 }
 0x6cc   :  { %v7379_v61 = vpop.eup %7378  ;;  %6832 = vmatpush3.bf16.msra.mxu1 %v6829_v51  ;;  %v6833_v62 = vpack.c.bf16 %v7182_v52, %v7181_v54 }
 0x6cd   :  { %v1187_v63 = vsel %vm96_vm0, %v7379_v61, 0.0  ;;  %v6837_v48 = vpack.c.bf16 %v7187_v59, %v7186_v41 }
 0x6ce   :  { %1188 = vadd.xlane.f32.xlu0 %v1187_v63  ;;  %6834 = vmatprep.subr.bf16.mxu1 %v6833_v62 }
 0x6d0   :  { %v7381_v6 = vpop.eup %7380  ;;  %6836 = vmatpush3.bf16.msra.mxu1 %v6833_v62 }
 0x6d1   :  { %6838 = vmatprep.subr.bf16.mxu1 %v6837_v48  ;;  %v1184_v8 = vsel %vm96_vm0, %v7381_v6, 0.0 }
 0x6d2   :  { %1185 = vadd.xlane.f32.xlu1 %v1184_v8 }
 0x6d4   :  { %v7383_v56 = vpop.eup %7382  ;;  %6840 = vmatpush3.bf16.msra.mxu1 %v6837_v48 }
 0x6d5   :  { %v1193_v9 = vsel %vm96_vm0, %v7383_v56, 0.0  ;;  %v7385_v0 = vpop.eup %7384 }
 0x6d6   :  { %1194 = vadd.xlane.f32.xlu0 %v1193_v9  ;;  %v1190_v10 = vsel %vm96_vm0, %v7385_v0, 0.0 }
 0x6da   :  { %1191 = vadd.xlane.f32.xlu0 %v1190_v10 }
 0x6e3   :  { %7194 = vrot.lane.b32.xlu1 %v8007_v36, %s9486_s26 }
 0x6e7   :  { %7199 = vrot.lane.b32.xlu1 %v8014_v45, %s9486_s26 }
 0x6eb   :  { %1376 = vrot.lane.b32.xlu1 %v7991_v16, %s9486_s26 }
 0x6ef   :  { %1378 = vrot.lane.b32.xlu1 %v8029_v47, %s9486_s26 }
 0x6f0   :  { %7189 = vrot.lane.b32.xlu0 %v8001_v24, %s9486_s26 }
 0x6f3   :  { %1380 = vrot.lane.b32.xlu1 %v8032_v2, %s9486_s26 }
 0x6f4   :  { %1382 = vrot.lane.b32.xlu0 %v8039_v3, %s9486_s26 }
 0x6f7   :  { %1384 = vrot.lane.b32.xlu1 %v8042_v4, %s9486_s26 }
 0x6f8   :  { %1386 = vrot.lane.b32.xlu0 %v8049_v5, %s9486_s26 }
 0x757   :  { %v1183_v11 = vpop.xlane.xlu0 %1182 }
 0x758   :  { %7386 = vrcp.f32 %v1183_v11  ;;  %v1180_v13 = vpop.xlane.xlu1 %1179 }
 0x759   :  { %7388 = vrcp.f32 %v1180_v13 }
 0x75b   :  { %v1189_v14 = vpop.xlane.xlu0 %1188 }
 0x75c   :  { %7390 = vrcp.f32 %v1189_v14 }
 0x75f   :  { %v1186_v15 = vpop.xlane.xlu1 %1185 }
 0x760   :  { %7392 = vrcp.f32 %v1186_v15 }
 0x762   :  { %v7387_v20 = vpop.eup %7386 }
 0x763   :  { %v7389_v21 = vpop.eup %7388  ;;  %v1195_v23 = vpop.xlane.xlu0 %1194  ;;  %v1203_v28 = vmul.f32 %v7387_v20, %v7375_v42 }
 0x764   :  { %v1202_v25 = vmul.f32 %v7389_v21, %v7377_v46  ;;  %7394 = vrcp.f32 %v1195_v23  ;;  %v7195_v31 = vpop.permute.xlu1 %7194 }
 0x765   :  { %v7197_v38 = vunpack.i.h.bf16 %v7195_v31  ;;  %v7196_v43 = vunpack.i.l.bf16 %v7195_v31 }
 0x766   :  { %6272 = vmatprep.mubr.msk.f32.mxu1 %vm96_vm0, %v1202_v25  ;;  %v7391_v32 = vpop.eup %7390 }
 0x767   :  { %v1192_v30 = vpop.xlane.xlu0 %1191  ;;  %6273 = vmatmul.mubr.msk.f32.vlgmr.msra.gmra.mrb[12].mxu1 %vm96_vm0, %v1203_v28  ;;  %v1205_v50 = vmul.f32 %v7391_v32, %v7379_v61  ;;  %v6847_v46 = vpack.c.bf16 %v7197_v38, %v7196_v43 }
 0x768   :  { %7396 = vrcp.f32 %v1192_v30  ;;  %v7200_v51 = vpop.permute.xlu1 %7199 }
 0x769   :  { %v7202_v58 = vunpack.i.h.bf16 %v7200_v51  ;;  %v7201_v59 = vunpack.i.l.bf16 %v7200_v51 }
 0x76a   :  { %v7393_v37 = vpop.eup %7392 }
 0x76b   :  { %v7190_v39 = vpop.permute.xlu0 %7189  ;;  %v1204_v40 = vmul.f32 %v7393_v37, %v7381_v6  ;;  %v6853_v62 = vpack.c.bf16 %v7202_v58, %v7201_v59 }
 0x76c   :  { %v7192_v44 = vunpack.i.h.bf16 %v7190_v39  ;;  %v7191_v49 = vunpack.i.l.bf16 %v7190_v39  ;;  %v1377_v61 = vpop.permute.xlu1 %1376 }
 0x76d   :  { %6275 = vmatprep.mubr.msk.f32.mxu1 %vm96_vm0, %v1204_v40 }
 0x76e   :  { %v6841_v42 = vpack.c.bf16 %v7192_v44, %v7191_v49  ;;  %6276 = vmatmul.mubr.msk.f32.gmra.mrb[14].mxu1 %vm96_vm0, %v1205_v50  ;;  %v7395_v52 = vpop.eup %7394 }
 0x76f   :  { %v1207_v41 = vmul.f32 %v7395_v52, %v7383_v56  ;;  %v1383_v6 = vpop.permute.xlu0 %1382 }
 0x770   :  { %6843 = vmatprep.subr.msk.bf16.mxu1 %vm7995_vm3, %v6841_v42  ;;  %v1379_v63 = vpop.permute.xlu1 %1378 }
 0x771   :  { %6846 = vmatpush3.bf16.xpose.msk.msra.mxu1 %vm7995_vm3, %v6841_v42 }
 0x772   :  { %v7397_v54 = vpop.eup %7396  ;;  %6849 = vmatprep.subr.msk.bf16.mxu1 %vm7995_vm3, %v6847_v46 }
 0x773   :  { %v1206_v55 = vmul.f32 %v7397_v54, %v7385_v0  ;;  %v1387_v56 = vpop.permute.xlu0 %1386 }
 0x774   :  { %v1381_v48 = vpop.permute.xlu1 %1380 }
 0x775   :  { %6278 = vmatprep.mubr.msk.f32.mxu1 %vm96_vm0, %v1206_v55 }
 0x776   :  { %6279 = vmatmul.mubr.msk.f32.gmra.mrb[16].mxu1 %vm96_vm0, %v1207_v41 }
 0x777   :  { %6293 = vmatprep.mubr.msk.f32.mxu1 %vm658_vm2, %v1377_v61 }
 0x778   :  { %v1385_v8 = vpop.permute.xlu1 %1384 }
 0x779   :  { %6852 = vmatpush3.bf16.xpose.msk.msra.mxu1 %vm7995_vm3, %v6847_v46 }
 0x77a   :  { %6855 = vmatprep.subr.msk.bf16.mxu1 %vm7995_vm3, %v6853_v62 }
 0x781   :  { %6858 = vmatpush3.bf16.xpose.msk.msra.mxu1 %vm7995_vm3, %v6853_v62 }
 0x788   :  { %6294 = vmatmul.mubr.msk.f32.vlgmr.msra.gmra.mrb[18].mxu1 %vm658_vm2, %v1379_v63 }
 0x789   :  { %6296 = vmatprep.mubr.msk.f32.mxu1 %vm658_vm2, %v1381_v48 }
 0x78c   :  { %6297 = vmatmul.mubr.msk.f32.gmra.mrb[20].mxu1 %vm658_vm2, %v1383_v6 }
 0x78d   :  { %6299 = vmatprep.mubr.msk.f32.mxu1 %vm658_vm2, %v1385_v8 }
 0x790   :  { %6300 = vmatmul.mubr.msk.f32.gmra.mrb[22].mxu1 %vm658_vm2, %v1387_v56 }
 0x83a   :  { %v8215_v9 = vpop.f32.mrb[12].mxu1 }
 0x83b   :  { %v8217_v0 = vpop.f32.mrb[13].mxu1 }
 0x841   :  { %v8219_v10 = vpop.f32.mrb[14].mxu1 }
 0x842   :  { %v8221_v11 = vpop.f32.mrb[15].mxu1 }
 0x849   :  { %v8223_v13 = vpop.f32.mrb[16].mxu1 }
 0x84a   :  { %v8225_v14 = vpop.f32.mrb[17].mxu1 }
 0x85b   :  { %v6295_v15 = vpop.f32.mrb[18].mxu1 }
 0x85c   :  { %v1520_v20 = vmul.f32 0.35355338, %v6295_v15  ;;  %v1490_v21 = vpop.f32.mrb[19].mxu1 }
 0x85d   :  { %v1519_v23 = vmul.f32 0.35355338, %v1490_v21 }
 0x85e   :  { %v1526_v25 = vadd.f32 %v1520_v20, %v8056_v7 }
 0x85f   :  { %v6298_v28 = vpop.f32.mrb[20].mxu1  ;;  %v1525_v30 = vadd.f32 %v1519_v23, %v8061_v57 }
 0x860   :  { %v1522_v31 = vmul.f32 0.35355338, %v6298_v28  ;;  %v1500_v32 = vpop.f32.mrb[21].mxu1  ;;  %v1534_v37 = vsel %vm96_vm0, %v1526_v25, -inf }
 0x861   :  { %v1521_v38 = vmul.f32 0.35355338, %v1500_v32  ;;  %1535 = vmax.xlane.f32.xlu0 %v1534_v37  ;;  %v1531_v39 = vsel %vm96_vm0, %v1525_v30, -inf }
 0x862   :  { %1532 = vmax.xlane.f32.xlu1 %v1531_v39  ;;  %v1528_v40 = vadd.f32 %v1522_v31, %v8068_v12 }
 0x863   :  { %v6301_v43 = vpop.f32.mrb[22].mxu1  ;;  %v1527_v42 = vadd.f32 %v1521_v38, %v8074_v17 }
 0x864   :  { %v1524_v44 = vmul.f32 0.35355338, %v6301_v43  ;;  %v1510_v49 = vpop.f32.mrb[23].mxu1  ;;  %v1540_v50 = vsel %vm96_vm0, %v1528_v40, -inf }
 0x865   :  { %v1523_v46 = vmul.f32 0.35355338, %v1510_v49  ;;  %1541 = vmax.xlane.f32.xlu0 %v1540_v50  ;;  %v1537_v52 = vsel %vm96_vm0, %v1527_v42, -inf }
 0x866   :  { %v1530_v54 = vadd.f32 %v1524_v44, %v8082_v29 }
 0x867   :  { %v1529_v51 = vadd.f32 %v1523_v46, %v8088_v33 }
 0x868   :  { %v1546_v58 = vsel %vm96_vm0, %v1530_v54, -inf }
 0x869   :  { %1538 = vmax.xlane.f32.xlu0 %v1537_v52  ;;  %v1543_v55 = vsel %vm96_vm0, %v1529_v51, -inf }
 0x86a   :  { %1544 = vmax.xlane.f32.xlu1 %v1543_v55 }
 0x86d   :  { %1547 = vmax.xlane.f32.xlu0 %v1546_v58 }
 0x87b   :  { %7204 = vrot.lane.b32.xlu1 %v8020_v53, %s9486_s26 }
 0x87f   :  { %7214 = vrot.lane.b32.xlu1 %v8026_v1, %s9486_s26 }
 0x883   :  { %7209 = vrot.lane.b32.xlu0 %v8022_v60, %s9486_s26 }
 0x8ee   :  { %v1536_v59 = vpop.xlane.xlu0 %1535 }
 0x8ef   :  { %v1550_v41 = vsub.f32 %v1526_v25, %v1536_v59  ;;  %v1533_v61 = vpop.xlane.xlu1 %1532 }
 0x8f0   :  { %v1549_v62 = vsub.f32 %v1525_v30, %v1533_v61 }
 0x8f1   :  { %v1557_v63 = vmul.f32 1.442695, %v1550_v41 }
 0x8f2   :  { %v1555_v48 = vmul.f32 1.442695, %v1549_v62  ;;  %v1542_v6 = vpop.xlane.xlu0 %1541 }
 0x8f3   :  { %7398 = vpow2.f32 %v1557_v63  ;;  %v1552_v8 = vsub.f32 %v1528_v40, %v1542_v6 }
 0x8f4   :  { %7400 = vpow2.f32 %v1555_v48 }
 0x8f5   :  { %v1561_v56 = vmul.f32 1.442695, %v1552_v8 }
 0x8f6   :  { %v1539_v15 = vpop.xlane.xlu0 %1538 }
 0x8f7   :  { %7402 = vpow2.f32 %v1561_v56  ;;  %v1551_v20 = vsub.f32 %v1527_v42, %v1539_v15  ;;  %v1545_v21 = vpop.xlane.xlu1 %1544 }
 0x8f8   :  { %v1553_v28 = vsub.f32 %v1529_v51, %v1545_v21 }
 0x8f9   :  { %v1559_v23 = vmul.f32 1.442695, %v1551_v20 }
 0x8fa   :  { %v1548_v31 = vpop.xlane.xlu0 %1547  ;;  %v1563_v39 = vmul.f32 1.442695, %v1553_v28 }
 0x8fb   :  { %7404 = vpow2.f32 %v1559_v23  ;;  %v1554_v32 = vsub.f32 %v1530_v54, %v1548_v31  ;;  %v7205_v37 = vpop.permute.xlu1 %7204 }
 0x8fc   :  { %v7207_v25 = vunpack.i.h.bf16 %v7205_v37  ;;  %v7206_v38 = vunpack.i.l.bf16 %v7205_v37 }
 0x8fd   :  { %v7399_v30 = vpop.eup %7398  ;;  %v1565_v43 = vmul.f32 1.442695, %v1554_v32 }
 0x8fe   :  { %v7401_v44 = vpop.eup %7400  ;;  %v7210_v49 = vpop.permute.xlu0 %7209  ;;  %v1570_v40 = vsel %vm96_vm0, %v7399_v30, 0.0  ;;  %v6859_v50 = vpack.c.bf16 %v7207_v25, %v7206_v38 }
 0x8ff   :  { %7406 = vpow2.f32 %v1565_v43  ;;  %v7212_v46 = vunpack.i.h.bf16 %v7210_v49  ;;  %v7211_v42 = vunpack.i.l.bf16 %v7210_v49  ;;  %1571 = vadd.xlane.f32.xlu0 %v1570_v40  ;;  %v7215_v52 = vpop.permute.xlu1 %7214  ;;  %v1567_v51 = vsel %vm96_vm0, %v7401_v44, 0.0 }
 0x900   :  { %v7217_v55 = vunpack.i.h.bf16 %v7215_v52  ;;  %v7216_v54 = vunpack.i.l.bf16 %v7215_v52  ;;  %1568 = vadd.xlane.f32.xlu1 %v1567_v51  ;;  %6860 = vmatprep.subr.bf16.mxu0 %v6859_v50  ;;  %7408 = vpow2.f32 %v1563_v39 }
 0x901   :  { %v7403_v58 = vpop.eup %7402  ;;  %6862 = vmatpush3.bf16.msra.mxu0 %v6859_v50  ;;  %v6863_v59 = vpack.c.bf16 %v7212_v46, %v7211_v42 }
 0x902   :  { %v1576_v41 = vsel %vm96_vm0, %v7403_v58, 0.0  ;;  %v6867_v61 = vpack.c.bf16 %v7217_v55, %v7216_v54 }
 0x903   :  { %1577 = vadd.xlane.f32.xlu0 %v1576_v41  ;;  %6864 = vmatprep.subr.bf16.mxu0 %v6863_v59 }
 0x905   :  { %v7405_v62 = vpop.eup %7404  ;;  %6866 = vmatpush3.bf16.msra.mxu0 %v6863_v59 }
 0x906   :  { %6868 = vmatprep.subr.bf16.mxu0 %v6867_v61  ;;  %v1573_v63 = vsel %vm96_vm0, %v7405_v62, 0.0 }
 0x907   :  { %1574 = vadd.xlane.f32.xlu1 %v1573_v63 }
 0x909   :  { %v7407_v48 = vpop.eup %7406  ;;  %6870 = vmatpush3.bf16.msra.mxu0 %v6867_v61 }
 0x90a   :  { %v1582_v6 = vsel %vm96_vm0, %v7407_v48, 0.0  ;;  %v7409_v8 = vpop.eup %7408 }
 0x90b   :  { %1583 = vadd.xlane.f32.xlu0 %v1582_v6  ;;  %v1579_v56 = vsel %vm96_vm0, %v7409_v8, 0.0 }
 0x90f   :  { %1580 = vadd.xlane.f32.xlu0 %v1579_v56 }
 0x918   :  { %7224 = vrot.lane.b32.xlu1 %v8007_v36, %s9484_s6 }
 0x91c   :  { %7229 = vrot.lane.b32.xlu1 %v8014_v45, %s9484_s6 }
 0x920   :  { %1759 = vrot.lane.b32.xlu1 %v7991_v16, %s9484_s6 }
 0x924   :  { %1761 = vrot.lane.b32.xlu1 %v8029_v47, %s9484_s6 }
 0x925   :  { %7219 = vrot.lane.b32.xlu0 %v8001_v24, %s9484_s6 }
 0x928   :  { %1763 = vrot.lane.b32.xlu1 %v8032_v2, %s9484_s6 }
 0x929   :  { %1765 = vrot.lane.b32.xlu0 %v8039_v3, %s9484_s6 }
 0x92c   :  { %1767 = vrot.lane.b32.xlu1 %v8042_v4, %s9484_s6 }
 0x92d   :  { %1769 = vrot.lane.b32.xlu0 %v8049_v5, %s9484_s6 }
 0x98c   :  { %v1572_v36 = vpop.xlane.xlu0 %1571 }
 0x98d   :  { %7410 = vrcp.f32 %v1572_v36  ;;  %v1569_v16 = vpop.xlane.xlu1 %1568 }
 0x98e   :  { %7412 = vrcp.f32 %v1569_v16 }
 0x990   :  { %v1578_v45 = vpop.xlane.xlu0 %1577 }
 0x991   :  { %7414 = vrcp.f32 %v1578_v45 }
 0x994   :  { %v1575_v47 = vpop.xlane.xlu1 %1574 }
 0x995   :  { %7416 = vrcp.f32 %v1575_v47 }
 0x997   :  { %v7411_v24 = vpop.eup %7410 }
 0x998   :  { %v7413_v15 = vpop.eup %7412  ;;  %v1584_v2 = vpop.xlane.xlu0 %1583  ;;  %v1592_v21 = vmul.f32 %v7411_v24, %v7399_v30 }
 0x999   :  { %v1591_v20 = vmul.f32 %v7413_v15, %v7401_v44  ;;  %7418 = vrcp.f32 %v1584_v2  ;;  %v7225_v4 = vpop.permute.xlu1 %7224 }
 0x99a   :  { %v7227_v28 = vunpack.i.h.bf16 %v7225_v4  ;;  %v7226_v37 = vunpack.i.l.bf16 %v7225_v4 }
 0x99b   :  { %6314 = vmatprep.mubr.msk.f32.mxu0 %vm96_vm0, %v1591_v20  ;;  %v7415_v5 = vpop.eup %7414 }
 0x99c   :  { %v1581_v3 = vpop.xlane.xlu0 %1580  ;;  %6315 = vmatmul.mubr.msk.f32.vlgmr.msra.gmra.mrb[30].mxu0 %vm96_vm0, %v1592_v21  ;;  %v1594_v39 = vmul.f32 %v7415_v5, %v7403_v58  ;;  %v6877_v43 = vpack.c.bf16 %v7227_v28, %v7226_v37 }
 0x99d   :  { %7420 = vrcp.f32 %v1581_v3  ;;  %v7230_v44 = vpop.permute.xlu1 %7229 }
 0x99e   :  { %v7232_v46 = vunpack.i.h.bf16 %v7230_v44  ;;  %v7231_v42 = vunpack.i.l.bf16 %v7230_v44 }
 0x99f   :  { %v7417_v23 = vpop.eup %7416 }
 0x9a0   :  { %v7220_v31 = vpop.permute.xlu0 %7219  ;;  %v1593_v32 = vmul.f32 %v7417_v23, %v7405_v62  ;;  %v6883_v55 = vpack.c.bf16 %v7232_v46, %v7231_v42 }
 0x9a1   :  { %v7222_v25 = vunpack.i.h.bf16 %v7220_v31  ;;  %v7221_v38 = vunpack.i.l.bf16 %v7220_v31  ;;  %v1760_v51 = vpop.permute.xlu1 %1759 }
 0x9a2   :  { %6317 = vmatprep.mubr.msk.f32.mxu0 %vm96_vm0, %v1593_v32 }
 0x9a3   :  { %v6871_v30 = vpack.c.bf16 %v7222_v25, %v7221_v38  ;;  %6318 = vmatmul.mubr.msk.f32.gmra.mrb[32].mxu0 %vm96_vm0, %v1594_v39  ;;  %v7419_v49 = vpop.eup %7418 }
 0x9a4   :  { %v1596_v52 = vmul.f32 %v7419_v49, %v7407_v48  ;;  %v1766_v59 = vpop.permute.xlu0 %1765 }
 0x9a5   :  { %6873 = vmatprep.subr.msk.bf16.mxu0 %vm7995_vm3, %v6871_v30  ;;  %v1762_v54 = vpop.permute.xlu1 %1761 }
 0x9a6   :  { %6876 = vmatpush3.bf16.xpose.msk.msra.mxu0 %vm7995_vm3, %v6871_v30 }
 0x9a7   :  { %v7421_v40 = vpop.eup %7420  ;;  %6879 = vmatprep.subr.msk.bf16.mxu0 %vm7995_vm3, %v6877_v43 }
 0x9a8   :  { %v1595_v50 = vmul.f32 %v7421_v40, %v7409_v8  ;;  %v1770_v61 = vpop.permute.xlu0 %1769 }
 0x9a9   :  { %v1764_v58 = vpop.permute.xlu1 %1763 }
 0x9aa   :  { %6320 = vmatprep.mubr.msk.f32.mxu0 %vm96_vm0, %v1595_v50 }
 0x9ab   :  { %6321 = vmatmul.mubr.msk.f32.gmra.mrb[34].mxu0 %vm96_vm0, %v1596_v52 }
 0x9ac   :  { %6335 = vmatprep.mubr.msk.f32.mxu0 %vm658_vm2, %v1760_v51 }
 0x9ad   :  { %v1768_v41 = vpop.permute.xlu1 %1767 }
 0x9ae   :  { %6882 = vmatpush3.bf16.xpose.msk.msra.mxu0 %vm7995_vm3, %v6877_v43 }
 0x9af   :  { %6885 = vmatprep.subr.msk.bf16.mxu0 %vm7995_vm3, %v6883_v55 }
 0x9b6   :  { %6888 = vmatpush3.bf16.xpose.msk.msra.mxu0 %vm7995_vm3, %v6883_v55 }
 0x9bd   :  { %6336 = vmatmul.mubr.msk.f32.vlgmr.msra.gmra.mrb[36].mxu0 %vm658_vm2, %v1762_v54 }
 0x9be   :  { %6338 = vmatprep.mubr.msk.f32.mxu0 %vm658_vm2, %v1764_v58 }
 0x9c1   :  { %6339 = vmatmul.mubr.msk.f32.gmra.mrb[38].mxu0 %vm658_vm2, %v1766_v59 }
 0x9c2   :  { %6341 = vmatprep.mubr.msk.f32.mxu0 %vm658_vm2, %v1768_v41 }
 0x9c5   :  { %6342 = vmatmul.mubr.msk.f32.gmra.mrb[40].mxu0 %vm658_vm2, %v1770_v61 }
 0xa6f   :  { %v8293_v62 = vpop.f32.mrb[30].mxu0 }
 0xa70   :  { %v8295_v63 = vpop.f32.mrb[31].mxu0 }
 0xa76   :  { %v8297_v48 = vpop.f32.mrb[32].mxu0 }
 0xa77   :  { %v8299_v6 = vpop.f32.mrb[33].mxu0 }
 0xa7e   :  { %v8301_v8 = vpop.f32.mrb[34].mxu0 }
 0xa7f   :  { %v8303_v56 = vpop.f32.mrb[35].mxu0 }
 0xa90   :  { %v6337_v36 = vpop.f32.mrb[36].mxu0 }
 0xa91   :  { %v1903_v16 = vmul.f32 0.35355338, %v6337_v36  ;;  %v1873_v45 = vpop.f32.mrb[37].mxu0 }
 0xa92   :  { %v1902_v47 = vmul.f32 0.35355338, %v1873_v45 }
 0xa93   :  { %v1909_v24 = vadd.f32 %v1903_v16, %v8056_v7 }
 0xa94   :  { %v6340_v15 = vpop.f32.mrb[38].mxu0  ;;  %v1908_v2 = vadd.f32 %v1902_v47, %v8061_v57 }
 0xa95   :  { %v1883_v20 = vpop.f32.mrb[39].mxu0  ;;  %v1917_v21 = vsel %vm96_vm0, %v1909_v24, -inf  ;;  %v1905_v3 = vmul.f32 0.35355338, %v6340_v15 }
 0xa96   :  { %v1904_v4 = vmul.f32 0.35355338, %v1883_v20  ;;  %1918 = vmax.xlane.f32.xlu0 %v1917_v21  ;;  %v1914_v5 = vsel %vm96_vm0, %v1908_v2, -inf }
 0xa97   :  { %1915 = vmax.xlane.f32.xlu1 %v1914_v5  ;;  %v1911_v25 = vadd.f32 %v1905_v3, %v8068_v12 }
 0xa98   :  { %v6343_v23 = vpop.f32.mrb[40].mxu0  ;;  %v1910_v28 = vadd.f32 %v1904_v4, %v8074_v17 }
 0xa99   :  { %v1893_v31 = vpop.f32.mrb[41].mxu0  ;;  %v1907_v32 = vmul.f32 0.35355338, %v6343_v23  ;;  %v1923_v38 = vsel %vm96_vm0, %v1911_v25, -inf }
 0xa9a   :  { %v1906_v37 = vmul.f32 0.35355338, %v1893_v31  ;;  %v1920_v7 = vsel %vm96_vm0, %v1910_v28, -inf }
 0xa9b   :  { %1921 = vmax.xlane.f32.xlu0 %v1920_v7  ;;  %v1913_v30 = vadd.f32 %v1907_v32, %v8082_v29 }
 0xa9c   :  { %v1912_v57 = vadd.f32 %v1906_v37, %v8088_v33 }
 0xa9d   :  { %v1929_v17 = vsel %vm96_vm0, %v1913_v30, -inf }
 0xa9e   :  { %v1926_v39 = vsel %vm96_vm0, %v1912_v57, -inf }
 0xa9f   :  { %1924 = vmax.xlane.f32.xlu0 %v1923_v38  ;;  %1927 = vmax.xlane.f32.xlu1 %v1926_v39 }
 0xaa3   :  { %1930 = vmax.xlane.f32.xlu0 %v1929_v17 }
 0xab0   :  { %7234 = vrot.lane.b32.xlu1 %v8020_v53, %s9484_s6 }
 0xb23   :  { %v1919_v43 = vpop.xlane.xlu0 %1918 }
 0xb24   :  { %v1933_v44 = vsub.f32 %v1909_v24, %v1919_v43  ;;  %v1916_v12 = vpop.xlane.xlu1 %1915 }
 0xb25   :  { %v1932_v49 = vsub.f32 %v1908_v2, %v1916_v12 }
 0xb26   :  { %v1940_v40 = vmul.f32 1.442695, %v1933_v44 }
 0xb27   :  { %v1938_v33 = vmul.f32 1.442695, %v1932_v49 }
 0xb28   :  { %7422 = vpow2.f32 %v1940_v40  ;;  %v1922_v50 = vpop.xlane.xlu0 %1921 }
 0xb29   :  { %7424 = vpow2.f32 %v1938_v33  ;;  %v1934_v46 = vsub.f32 %v1910_v28, %v1922_v50 }
 0xb2b   :  { %v1942_v42 = vmul.f32 1.442695, %v1934_v46 }
 0xb2c   :  { %v1925_v29 = vpop.xlane.xlu0 %1924  ;;  %v1928_v52 = vpop.xlane.xlu1 %1927 }
 0xb2d   :  { %7426 = vpow2.f32 %v1942_v42  ;;  %v1935_v51 = vsub.f32 %v1911_v25, %v1925_v29  ;;  %v1936_v55 = vsub.f32 %v1912_v57, %v1928_v52 }
 0xb2f   :  { %v1944_v54 = vmul.f32 1.442695, %v1935_v51  ;;  %v1946_v58 = vmul.f32 1.442695, %v1936_v55 }
 0xb30   :  { %v1931_v59 = vpop.xlane.xlu0 %1930  ;;  %v7235_v53 = vpop.permute.xlu1 %7234 }
 0xb31   :  { %7428 = vpow2.f32 %v1944_v54  ;;  %v1937_v41 = vsub.f32 %v1913_v30, %v1931_v59  ;;  %v7237_v61 = vunpack.i.h.bf16 %v7235_v53  ;;  %v7236_v36 = vunpack.i.l.bf16 %v7235_v53  ;;  %v2148_v59 = vld [vmem:[%s9458_s12] sm:$0xff]  ;;  %v2149_v53 = vld [vmem:[%s9458_s12 + $0x8] sm:$0xff] }
 0xb32   :  { %v8319_v16 = vpop.eup %7422  ;;  %7430 = vpow2.f32 %v1946_v58 }
 0xb33   :  { %v7425_v45 = vpop.eup %7424  ;;  %v1948_v47 = vmul.f32 1.442695, %v1937_v41  ;;  %v1953_v24 = vsel %vm96_vm0, %v8319_v16, 0.0  ;;  %v6889_v15 = vpack.c.bf16 %v7237_v61, %v7236_v36  ;;  %v6901_v41 = vpack.c.bf16 %v2149_v53, %v2148_v59  ;;  %v2150_v61 = vld [vmem:[%s9458_s12 + $0x10] sm:$0xff]  ;;  %v2151_v36 = vld [vmem:[%s9458_s12 + $0x18] sm:$0xff] }
 0xb34   :  { %1954 = vadd.xlane.f32.xlu0 %v1953_v24  ;;  %v1950_v2 = vsel %vm96_vm0, %v7425_v45, 0.0 }
 0xb35   :  { %7432 = vpow2.f32 %v1948_v47  ;;  %1951 = vadd.xlane.f32.xlu1 %v1950_v2  ;;  %6890 = vmatprep.subr.bf16.mxu1 %v6889_v15 }
 0xb36   :  { %6892 = vmatpush3.bf16.msra.mxu1 %v6889_v15 }
 0xb37   :  { %v8324_v20 = vpop.eup %7426 }
 0xb38   :  { %v1956_v21 = vsel %vm96_vm0, %v8324_v20, 0.0 }
 0xb39   :  { %1957 = vadd.xlane.f32.xlu1 %v1956_v21 }
 0xb3b   :  { %v8328_v3 = vpop.eup %7428 }
 0xb3c   :  { %v8330_v4 = vpop.eup %7430  ;;  %v1959_v5 = vsel %vm96_vm0, %v8328_v3, 0.0 }
 0xb3d   :  { %1960 = vadd.xlane.f32.xlu0 %v1959_v5  ;;  %v1962_v23 = vsel %vm96_vm0, %v8330_v4, 0.0 }
 0xb3e   :  { %1963 = vadd.xlane.f32.xlu1 %v1962_v23 }
 0xb3f   :  { %v8336_v28 = vpop.eup %7432 }
 0xb40   :  { %v1965_v31 = vsel %vm96_vm0, %v8336_v28, 0.0 }
 0xb41   :  { %1966 = vadd.xlane.f32.xlu0 %v1965_v31 }
 0xb4f   :  { %7244 = vrot.lane.b32.xlu1 %v8026_v1, %s9484_s6 }
 0xb53   :  { %1351 = vrot.lane.b32.xlu1 %v8217_v0, %s9482_s5 }
 0xb57   :  { %1353 = vrot.lane.b32.xlu1 %v8215_v9, %s9482_s5  ;;  %7239 = vrot.lane.b32.xlu0 %v8022_v60, %s9484_s6  ;;  %s9515_s6 = smov 112  }
 0xb5b   :  { %1736 = vrot.lane.b32.xlu1 %v8293_v62, %s9480_s29  ;;  %1734 = vrot.lane.b32.xlu0 %v8295_v63, %s9480_s29 }
 0xb5f   :  { %1357 = vrot.lane.b32.xlu1 %v8219_v10, %s9482_s5  ;;  %1355 = vrot.lane.b32.xlu0 %v8221_v11, %s9482_s5 }
 0xb63   :  { %1740 = vrot.lane.b32.xlu1 %v8297_v48, %s9480_s29  ;;  %1738 = vrot.lane.b32.xlu0 %v8299_v6, %s9480_s29 }
 0xb67   :  { %1361 = vrot.lane.b32.xlu1 %v8223_v13, %s9482_s5  ;;  %1359 = vrot.lane.b32.xlu0 %v8225_v14, %s9482_s5 }
 0xb6b   :  { %1744 = vrot.lane.b32.xlu1 %v8301_v8, %s9480_s29  ;;  %1742 = vrot.lane.b32.xlu0 %v8303_v56, %s9480_s29  ;;  %s9517_s29 = smov 8  }
 0xbc1   :  { %v1955_v1 = vpop.xlane.xlu0 %1954 }
 0xbc2   :  { %v1952_v60 = vpop.xlane.xlu1 %1951 }
 0xbc3   :  { %7434 = vrcp.f32 %v1952_v60 }
 0xbc4   :  { %7436 = vrcp.f32 %v1955_v1 }
 0xbc6   :  { %v1958_v9 = vpop.xlane.xlu1 %1957 }
 0xbc7   :  { %7438 = vrcp.f32 %v1958_v9 }
 0xbca   :  { %v1961_v0 = vpop.xlane.xlu0 %1960 }
 0xbcb   :  { %v1964_v10 = vpop.xlane.xlu1 %1963  ;;  %7440 = vrcp.f32 %v1961_v0 }
 0xbcc   :  { %7442 = vrcp.f32 %v1964_v10 }
 0xbcd   :  { %v7435_v11 = vpop.eup %7434 }
 0xbce   :  { %v1967_v62 = vpop.xlane.xlu0 %1966  ;;  %v1974_v63 = vmul.f32 %v7435_v11, %v7425_v45  ;;  %v7437_v38 = vpop.eup %7436  ;;  %v5593_v11 = vld [vmem:[%s9459_s13] ss:$0 sm:$0xff] }
 0xbcf   :  { %v7245_v48 = vpop.permute.xlu1 %7244  ;;  %7444 = vrcp.f32 %v1967_v62  ;;  %v1975_v43 = vmul.f32 %v7437_v38, %v8319_v16  ;;  %v6905_v16 = vpack.c.bf16 %v2151_v36, %v2150_v61 }
 0xbd0   :  { %6356 = vmatprep.mubr.msk.f32.mxu1 %vm96_vm0, %v1974_v63  ;;  %v7247_v14 = vunpack.i.h.bf16 %v7245_v48  ;;  %v7246_v6 = vunpack.i.l.bf16 %v7245_v48 }
 0xbd1   :  { %v7439_v30 = vpop.eup %7438 }
 0xbd2   :  { %v7240_v13 = vpop.permute.xlu0 %7239  ;;  %v6897_v57 = vpack.c.bf16 %v7247_v14, %v7246_v6  ;;  %v1976_v49 = vmul.f32 %v7439_v30, %v8324_v20 }
 0xbd3   :  { %v7242_v8 = vunpack.i.h.bf16 %v7240_v13  ;;  %v7241_v56 = vunpack.i.l.bf16 %v7240_v13  ;;  %v1352_v32 = vpop.permute.xlu1 %1351 }
 0xbd4   :  { %1370 = vst.msk [vmem:[#allocation2] sm:$0xff] %vm1369_vm4, %v1352_v32 }
 0xbd5   :  { %v6893_v37 = vpack.c.bf16 %v7242_v8, %v7241_v56  ;;  %v7441_v44 = vpop.eup %7440 }
 0xbd6   :  { %v1735_v7 = vpop.permute.xlu0 %1734  ;;  %v7443_v40 = vpop.eup %7442  ;;  %v1977_v50 = vmul.f32 %v7441_v44, %v8328_v3 }
 0xbd7   :  { %1753 = vst.msk [vmem:[#allocation2] sm:$0xff] %vm1752_vm5, %v1735_v7  ;;  %v1354_v25 = vpop.permute.xlu1 %1353  ;;  %6894 = vmatprep.subr.bf16.mxu1 %v6893_v37  ;;  %v1978_v29 = vmul.f32 %v7443_v40, %v8330_v4 }
 0xbd8   :  { %1371 = vst.msk [vmem:[#allocation2 + $0x8] sm:$0xff] %vm1369_vm4, %v1354_v25  ;;  %6896 = vmatpush3.bf16.msra.mxu1 %v6893_v37 }
 0xbd9   :  { %6898 = vmatprep.subr.bf16.mxu1 %v6897_v57  ;;  %v7445_v46 = vpop.eup %7444 }
 0xbda   :  { %v1356_v39 = vpop.permute.xlu0 %1355  ;;  %v1979_v51 = vmul.f32 %v7445_v46, %v8336_v28 }
 0xbdb   :  { %1372 = vst.msk [vmem:[#allocation2 + $0x10] sm:$0xff] %vm1369_vm4, %v1356_v39  ;;  %v1737_v17 = vpop.permute.xlu1 %1736 }
 0xbdc   :  { %1754 = vst.msk [vmem:[#allocation2 + $0x8] sm:$0xff] %vm1752_vm5, %v1737_v17  ;;  %6900 = vmatpush3.bf16.msra.mxu1 %v6897_v57 }
 0xbdd   :  { %6902 = vmatprep.subr.bf16.mxu1 %v6901_v41 }
 0xbde   :  { %v1739_v12 = vpop.permute.xlu0 %1738 }
 0xbdf   :  { %1755 = vst.msk [vmem:[#allocation2 + $0x10] sm:$0xff] %vm1752_vm5, %v1739_v12  ;;  %v1358_v33 = vpop.permute.xlu1 %1357  ;;  %6357 = vmatmul.mubr.msk.f32.vlgmr.msra.gmra.mrb[24].mxu1 %vm96_vm0, %v1975_v43 }
 0xbe0   :  { %1373 = vst.msk [vmem:[#allocation2 + $0x18] sm:$0xff] %vm1369_vm4, %v1358_v33  ;;  %6359 = vmatprep.mubr.msk.f32.mxu1 %vm96_vm0, %v1976_v49  ;;  %6904 = vmatpush3.bf16.msra.mxu1 %v6901_v41 }
 0xbe1   :  { %6906 = vmatprep.subr.bf16.mxu1 %v6905_v16 }
 0xbe2   :  { %v1360_v42 = vpop.permute.xlu0 %1359 }
 0xbe3   :  { %1374 = vst.msk [vmem:[#allocation2 + $0x20] sm:$0xff] %vm1369_vm4, %v1360_v42  ;;  %v1741_v52 = vpop.permute.xlu1 %1740  ;;  %6360 = vmatmul.mubr.msk.f32.gmra.mrb[26].mxu1 %vm96_vm0, %v1977_v50 }
 0xbe4   :  { %1756 = vst.msk [vmem:[#allocation2 + $0x18] sm:$0xff] %vm1752_vm5, %v1741_v52  ;;  %6362 = vmatprep.mubr.msk.f32.mxu1 %vm96_vm0, %v1978_v29  ;;  %6908 = vmatpush3.bf16.msra.mxu1 %v6905_v16 }
 0xbe6   :  { %v1743_v55 = vpop.permute.xlu0 %1742 }
 0xbe7   :  { %1757 = vst.msk [vmem:[#allocation2 + $0x20] sm:$0xff] %vm1752_vm5, %v1743_v55  ;;  %v1362_v54 = vpop.permute.xlu1 %1361  ;;  %6363 = vmatmul.mubr.msk.f32.gmra.mrb[28].mxu1 %vm96_vm0, %v1979_v51 }
 0xbe8   :  { %1375 = vst.msk [vmem:[#allocation2 + $0x28] sm:$0xff] %vm1369_vm4, %v1362_v54 }
 0xbeb   :  { %v1745_v58 = vpop.permute.xlu1 %1744 }
 0xbec   :  { %1758 = vst.msk [vmem:[#allocation2 + $0x28] sm:$0xff] %vm1752_vm5, %v1745_v58 }
 0xcb2   :  { %v6358_v45 = vpop.f32.mrb[24].mxu1 }
 0xcb3   :  { %2119 = vrot.lane.b32.xlu1 %v6358_v45, %s9488_s0  ;;  %v2082_v47 = vpop.f32.mrb[25].mxu1 }
 0xcb4   :  { %2117 = vrot.lane.b32.xlu0 %v2082_v47, %s9488_s0 }
 0xcb6   :  { %v6361_v24 = vpop.f32.mrb[26].mxu1 }
 0xcb7   :  { %2123 = vrot.lane.b32.xlu1 %v6361_v24, %s9488_s0  ;;  %v2092_v15 = vpop.f32.mrb[27].mxu1 }
 0xcb8   :  { %2121 = vrot.lane.b32.xlu0 %v2092_v15, %s9488_s0 }
 0xcba   :  { %v6364_v2 = vpop.f32.mrb[28].mxu1 }
 0xcbb   :  { %2127 = vrot.lane.b32.xlu1 %v6364_v2, %s9488_s0  ;;  %v2102_v20 = vpop.f32.mrb[29].mxu1 }
 0xcbc   :  { %2125 = vrot.lane.b32.xlu0 %v2102_v20, %s9488_s0  ;;  %s9516_s0 = smov 104  }
 0xd25   :  { %v2120_v21 = vpop.permute.xlu1 %2119 }
 0xd26   :  { %2137 = vst.msk [vmem:[#allocation2 + $0x8] sm:$0xff] %vm2135_vm6, %v2120_v21  ;;  %v2118_v3 = vpop.permute.xlu0 %2117 }
 0xd27   :  { %2136 = vst.msk [vmem:[#allocation2] sm:$0xff] %vm2135_vm6, %v2118_v3 }
 0xd29   :  { %v2124_v4 = vpop.permute.xlu1 %2123 }
 0xd2a   :  { %2139 = vst.msk [vmem:[#allocation2 + $0x18] sm:$0xff] %vm2135_vm6, %v2124_v4  ;;  %v2122_v5 = vpop.permute.xlu0 %2121 }
 0xd2b   :  { %2138 = vst.msk [vmem:[#allocation2 + $0x10] sm:$0xff] %vm2135_vm6, %v2122_v5 }
 0xd2d   :  { %v2128_v23 = vpop.permute.xlu1 %2127  ;;  %v2143_v60 = vld [vmem:[#allocation2 + $0x8] sm:$0xff] }
 0xd2e   :  { %2141 = vst.msk [vmem:[#allocation2 + $0x28] sm:$0xff] %vm2135_vm6, %v2128_v23  ;;  %v2126_v28 = vpop.permute.xlu0 %2125  ;;  %v2142_v31 = vld [vmem:[#allocation2] sm:$0xff] }
 0xd2f   :  { %2140 = vst.msk [vmem:[#allocation2 + $0x20] sm:$0xff] %vm2135_vm6, %v2126_v28  ;;  %6373 = vmatprep.mubr.msk.f32.mxu1 %vm218_vm1, %v2142_v31  ;;  %v2382_v23 = vld [vmem:[%s9462_s16] sm:$0xff]  ;;  %v2383_v28 = vld [vmem:[%s9462_s16 + $0x8] sm:$0xff] }
 0xd30   :  { %6374 = vmatmul.mubr.msk.f32.vlgmr.msra.gmra.mrb[30].mxu1 %vm218_vm1, %v2143_v60  ;;  %v6909_v31 = vpack.c.bf16 %v2383_v28, %v2382_v23  ;;  %v2384_v60 = vld [vmem:[%s9462_s16 + $0x10] sm:$0xff]  ;;  %v2667_v23 = vld [vmem:[%s9464_s18 + $0x28] sm:$0xff] }
 0xd31   :  { %v2145_v9 = vld [vmem:[#allocation2 + $0x18] sm:$0xff] }
 0xd32   :  { %v2144_v1 = vld [vmem:[#allocation2 + $0x10] sm:$0xff]  ;;  %6910 = vmatprep.subr.bf16.mxu0 %v6909_v31 }
 0xd33   :  { %6376 = vmatprep.mubr.msk.f32.mxu1 %vm218_vm1, %v2144_v1  ;;  %6912 = vmatpush3.bf16.msra.mxu0 %v6909_v31  ;;  %v2385_v1 = vld [vmem:[%s9462_s16 + $0x18] sm:$0xff]  ;;  %v2668_v31 = vld [vmem:[%s9464_s18 + $0x30] sm:$0xff] }
 0xd34   :  { %6377 = vmatmul.mubr.msk.f32.gmra.mrb[32].mxu1 %vm218_vm1, %v2145_v9  ;;  %v6913_v9 = vpack.c.bf16 %v2385_v1, %v2384_v60  ;;  %v2669_v60 = vld [vmem:[%s9464_s18 + $0x38] sm:$0xff] }
 0xd35   :  { %v2147_v10 = vld [vmem:[#allocation2 + $0x28] sm:$0xff]  ;;  %v6929_v1 = vpack.c.bf16 %v2669_v60, %v2668_v31 }
 0xd36   :  { %v2146_v0 = vld [vmem:[#allocation2 + $0x20] sm:$0xff]  ;;  %6914 = vmatprep.subr.bf16.mxu0 %v6913_v9 }
 0xd37   :  { %6379 = vmatprep.mubr.msk.f32.mxu1 %vm218_vm1, %v2146_v0  ;;  %6916 = vmatpush3.bf16.msra.mxu0 %v6913_v9  ;;  %v2670_v9 = vld [vmem:[%s9464_s18 + $0x40] sm:$0xff] }
 0xd38   :  { %6380 = vmatmul.mubr.msk.f32.gmra.mrb[34].mxu1 %vm218_vm1, %v2147_v10 }
 0xe03   :  { %v6375_v62 = vpop.f32.mrb[30].mxu1 }
 0xe04   :  { %v2249_v63 = vadd.f32 %v6375_v62, %v5593_v11  ;;  %v2243_v48 = vpop.f32.mrb[31].mxu1 }
 0xe05   :  { %v2244_v13 = vadd.f32 %v5593_v11, %v2243_v48 }
 0xe06   :  { %v8425_v14 = vadd.f32 %v2249_v63, %v7852_v22 }
 0xe07   :  { %v8428_v6 = vadd.f32 %v2244_v13, %v7844_v19  ;;  %v6378_v8 = vpop.f32.mrb[32].mxu1 }
 0xe08   :  { %v2259_v56 = vadd.f32 %v6378_v8, %v5593_v11  ;;  %v2253_v32 = vpop.f32.mrb[33].mxu1  ;;  %v2283_v37 = vsel %vm218_vm1, %v8425_v14, 0.0 }
 0xe09   :  { %v2254_v7 = vadd.f32 %v5593_v11, %v2253_v32  ;;  %2284 = vadd.xlane.f32.xlu1 %v2283_v37  ;;  %v2280_v25 = vsel %vm218_vm1, %v8428_v6, 0.0 }
 0xe0a   :  { %v8435_v57 = vadd.f32 %v2259_v56, %v7856_v26  ;;  %2281 = vadd.xlane.f32.xlu0 %v2280_v25 }
 0xe0b   :  { %v6381_v22 = vpop.f32.mrb[34].mxu1  ;;  %v8440_v30 = vadd.f32 %v2254_v7, %v7858_v27 }
 0xe0c   :  { %v2269_v38 = vadd.f32 %v6381_v22, %v5593_v11  ;;  %v2263_v39 = vpop.f32.mrb[35].mxu1  ;;  %v2289_v19 = vsel %vm218_vm1, %v8435_v57, 0.0 }
 0xe0d   :  { %v2264_v17 = vadd.f32 %v5593_v11, %v2263_v39  ;;  %v2286_v12 = vsel %vm218_vm1, %v8440_v30, 0.0 }
 0xe0e   :  { %v8443_v43 = vadd.f32 %v2269_v38, %v7870_v34  ;;  %2290 = vadd.xlane.f32.xlu0 %v2289_v19 }
 0xe0f   :  { %v8448_v26 = vadd.f32 %v2264_v17, %v7872_v35 }
 0xe10   :  { %v2295_v44 = vsel %vm218_vm1, %v8443_v43, 0.0 }
 0xe11   :  { %2296 = vadd.xlane.f32.xlu1 %v2295_v44  ;;  %v2292_v27 = vsel %vm218_vm1, %v8448_v26, 0.0  ;;  %v5600_v44 = vld [vmem:[%s9460_s14] ss:$0 sm:$0xff] }
 0xe12   :  { %2287 = vadd.xlane.f32.xlu0 %v2286_v12 }
 0xe16   :  { %2293 = vadd.xlane.f32.xlu0 %v2292_v27 }
 0xe96   :  { %v2285_v49 = vpop.xlane.xlu1 %2284 }
 0xe97   :  { %v2299_v40 = vmul.f32 0.03125, %v2285_v49  ;;  %v2282_v34 = vpop.xlane.xlu0 %2281 }
 0xe98   :  { %v2298_v33 = vmul.f32 0.03125, %v2282_v34 }
 0xe99   :  { %v8455_v50 = vsub.f32 %v8425_v14, %v2299_v40 }
 0xe9a   :  { %v8458_v46 = vsub.f32 %v8428_v6, %v2298_v33  ;;  %v5601_v33 = vld [vmem:[%s9461_s15] ss:$0 sm:$0xff] }
 0xe9b   :  { %v2291_v35 = vpop.xlane.xlu0 %2290  ;;  %v2311_v42 = vmul.f32 %v8455_v50, %v8455_v50 }
 0xe9c   :  { %v2301_v29 = vmul.f32 0.03125, %v2291_v35  ;;  %v2310_v52 = vmul.f32 %v8458_v46, %v8458_v46 }
 0xe9d   :  { %v2319_v51 = vsel %vm218_vm1, %v2311_v42, 0.0 }
 0xe9e   :  { %v8466_v55 = vsub.f32 %v8435_v57, %v2301_v29  ;;  %2320 = vadd.xlane.f32.xlu1 %v2319_v51  ;;  %v2297_v54 = vpop.xlane.xlu1 %2296  ;;  %v2316_v58 = vsel %vm218_vm1, %v2310_v52, 0.0 }
 0xe9f   :  { %v2303_v59 = vmul.f32 0.03125, %v2297_v54  ;;  %2317 = vadd.xlane.f32.xlu0 %v2316_v58  ;;  %v2288_v53 = vpop.xlane.xlu0 %2287 }
 0xea0   :  { %v2300_v41 = vmul.f32 0.03125, %v2288_v53  ;;  %v2313_v61 = vmul.f32 %v8466_v55, %v8466_v55 }
 0xea1   :  { %v8472_v36 = vsub.f32 %v8443_v43, %v2303_v59 }
 0xea2   :  { %v8475_v16 = vsub.f32 %v8440_v30, %v2300_v41  ;;  %v2325_v45 = vsel %vm218_vm1, %v2313_v61, 0.0 }
 0xea3   :  { %2326 = vadd.xlane.f32.xlu1 %v2325_v45  ;;  %v2294_v47 = vpop.xlane.xlu0 %2293  ;;  %v2315_v24 = vmul.f32 %v8472_v36, %v8472_v36 }
 0xea4   :  { %v2302_v15 = vmul.f32 0.03125, %v2294_v47  ;;  %v2312_v2 = vmul.f32 %v8475_v16, %v8475_v16 }
 0xea5   :  { %v2331_v20 = vsel %vm218_vm1, %v2315_v24, 0.0 }
 0xea6   :  { %v2308_v21 = vsub.f32 %v8448_v26, %v2302_v15  ;;  %v2322_v3 = vsel %vm218_vm1, %v2312_v2, 0.0 }
 0xea7   :  { %2332 = vadd.xlane.f32.xlu1 %v2331_v20  ;;  %2323 = vadd.xlane.f32.xlu0 %v2322_v3  ;;  %v2665_v3 = vld [vmem:[%s9464_s18 + $0x18] sm:$0xff] }
 0xea8   :  { %v2314_v4 = vmul.f32 %v2308_v21, %v2308_v21 }
 0xeaa   :  { %v2328_v5 = vsel %vm218_vm1, %v2314_v4, 0.0 }
 0xeab   :  { %2329 = vadd.xlane.f32.xlu0 %v2328_v5  ;;  %v2666_v5 = vld [vmem:[%s9464_s18 + $0x20] sm:$0xff] }
 0xeac   :  { %v6925_v28 = vpack.c.bf16 %v2667_v23, %v2666_v5 }
 0xf2b   :  { %v2321_v0 = vpop.xlane.xlu1 %2320 }
 0xf2c   :  { %v2335_v10 = vmul.f32 0.03125, %v2321_v0  ;;  %v2318_v11 = vpop.xlane.xlu0 %2317  ;;  %v2671_v0 = vld [vmem:[%s9464_s18 + $0x48] sm:$0xff] }
 0xf2d   :  { %v2334_v62 = vmul.f32 0.03125, %v2318_v11  ;;  %v2672_v11 = vld [vmem:[%s9464_s18 + $0x50] sm:$0xff] }
 0xf2e   :  { %v2341_v63 = vadd.f32 1e-06, %v2335_v10  ;;  %v6933_v10 = vpack.c.bf16 %v2671_v0, %v2670_v9 }
 0xf2f   :  { %v2340_v48 = vadd.f32 1e-06, %v2334_v62  ;;  %v2673_v62 = vld [vmem:[%s9464_s18 + $0x58] sm:$0xff] }
 0xf30   :  { %7446 = vrsqrt.f32 %v2341_v63  ;;  %v2327_v13 = vpop.xlane.xlu1 %2326  ;;  %v6937_v63 = vpack.c.bf16 %v2673_v62, %v2672_v11 }
 0xf31   :  { %7448 = vrsqrt.f32 %v2340_v48  ;;  %v2337_v8 = vmul.f32 0.03125, %v2327_v13  ;;  %v2674_v48 = vld [vmem:[%s9464_s18 + $0x60] sm:$0xff]  ;;  %v2675_v13 = vld [vmem:[%s9464_s18 + $0x68] sm:$0xff] }
 0xf33   :  { %v2343_v56 = vadd.f32 1e-06, %v2337_v8  ;;  %v2676_v8 = vld [vmem:[%s9464_s18 + $0x70] sm:$0xff] }
 0xf34   :  { %v2333_v32 = vpop.xlane.xlu1 %2332  ;;  %v2324_v37 = vpop.xlane.xlu0 %2323 }
 0xf35   :  { %7450 = vrsqrt.f32 %v2343_v56  ;;  %v2339_v7 = vmul.f32 0.03125, %v2333_v32  ;;  %v2336_v25 = vmul.f32 0.03125, %v2324_v37  ;;  %v6941_v56 = vpack.c.bf16 %v2675_v13, %v2674_v48  ;;  %v2677_v32 = vld [vmem:[%s9464_s18 + $0x78] sm:$0xff] }
 0xf36   :  { %v6945_v37 = vpack.c.bf16 %v2677_v32, %v2676_v8 }
 0xf37   :  { %v2345_v22 = vadd.f32 1e-06, %v2339_v7  ;;  %v2342_v38 = vadd.f32 1e-06, %v2336_v25  ;;  %v5602_v7 = vld [vmem:[%s9463_s17] ss:$0 sm:$0xff] }
 0xf38   :  { %v2330_v39 = vpop.xlane.xlu0 %2329 }
 0xf39   :  { %7452 = vrsqrt.f32 %v2345_v22  ;;  %v2338_v19 = vmul.f32 0.03125, %v2330_v39 }
 0xf3a   :  { %v7447_v17 = vpop.eup %7446  ;;  %7454 = vrsqrt.f32 %v2342_v38 }
 0xf3b   :  { %v7449_v12 = vpop.eup %7448  ;;  %v2353_v27 = vmul.f32 %v7447_v17, %v8455_v50  ;;  %v2344_v49 = vadd.f32 1e-06, %v2338_v19 }
 0xf3c   :  { %v2352_v40 = vmul.f32 %v7449_v12, %v8458_v46 }
 0xf3d   :  { %v2365_v34 = vmul.f32 %v5600_v44, %v2353_v27  ;;  %7456 = vrsqrt.f32 %v2344_v49 }
 0xf3e   :  { %v2364_v35 = vmul.f32 %v5600_v44, %v2352_v40 }
 0xf3f   :  { %v7451_v42 = vpop.eup %7450  ;;  %v2377_v52 = vadd.f32 %v5601_v33, %v2365_v34 }
 0xf40   :  { %v2376_v29 = vadd.f32 %v5601_v33, %v2364_v35  ;;  %v2355_v51 = vmul.f32 %v7451_v42, %v8466_v55 }
 0xf42   :  { %6390 = vmatprep.mubr.msk.f32.mxu0 %vm218_vm1, %v2376_v29  ;;  %v2367_v58 = vmul.f32 %v5600_v44, %v2355_v51 }
 0xf43   :  { %v7453_v54 = vpop.eup %7452  ;;  %6391 = vmatmul.mubr.msk.f32.vlgmr.msra.gmra.mrb[42].mxu0 %vm218_vm1, %v2377_v52 }
 0xf44   :  { %v7455_v50 = vpop.eup %7454  ;;  %v2357_v59 = vmul.f32 %v7453_v54, %v8472_v36  ;;  %v2379_v47 = vadd.f32 %v5601_v33, %v2367_v58  ;;  %v2662_v36 = vld [vmem:[%s9464_s18] sm:$0xff] }
 0xf45   :  { %v2354_v46 = vmul.f32 %v7455_v50, %v8475_v16  ;;  %v2663_v16 = vld [vmem:[%s9464_s18 + $0x8] sm:$0xff] }
 0xf46   :  { %v2369_v15 = vmul.f32 %v5600_v44, %v2357_v59  ;;  %v6917_v20 = vpack.c.bf16 %v2663_v16, %v2662_v36 }
 0xf47   :  { %v7457_v53 = vpop.eup %7456  ;;  %v2366_v41 = vmul.f32 %v5600_v44, %v2354_v46 }
 0xf48   :  { %v2356_v61 = vmul.f32 %v7457_v53, %v2308_v21  ;;  %v2381_v2 = vadd.f32 %v5601_v33, %v2369_v15  ;;  %6918 = vmatprep.subr.bf16.mxu1 %v6917_v20  ;;  %v2664_v21 = vld [vmem:[%s9464_s18 + $0x10] sm:$0xff] }
 0xf49   :  { %v2378_v45 = vadd.f32 %v5601_v33, %v2366_v41  ;;  %6920 = vmatpush3.bf16.msra.mxu1 %v6917_v20  ;;  %v6921_v4 = vpack.c.bf16 %v2665_v3, %v2664_v21 }
 0xf4a   :  { %v2368_v24 = vmul.f32 %v5600_v44, %v2356_v61 }
 0xf4b   :  { %6393 = vmatprep.mubr.msk.f32.mxu0 %vm218_vm1, %v2378_v45  ;;  %6922 = vmatprep.subr.bf16.mxu1 %v6921_v4 }
 0xf4c   :  { %6394 = vmatmul.mubr.msk.f32.gmra.mrb[44].mxu0 %vm218_vm1, %v2379_v47  ;;  %v2380_v55 = vadd.f32 %v5601_v33, %v2368_v24 }
 0xf4d   :  { %6924 = vmatpush3.bf16.msra.mxu1 %v6921_v4 }
 0xf4e   :  { %6396 = vmatprep.mubr.msk.f32.mxu0 %vm218_vm1, %v2380_v55  ;;  %6926 = vmatprep.subr.bf16.mxu1 %v6925_v28 }
 0xf50   :  { %6397 = vmatmul.mubr.msk.f32.gmra.mrb[46].mxu0 %vm218_vm1, %v2381_v2 }
 0xf51   :  { %6928 = vmatpush3.bf16.msra.mxu1 %v6925_v28 }
 0xf52   :  { %6930 = vmatprep.subr.bf16.mxu1 %v6929_v1 }
 0xf55   :  { %6932 = vmatpush3.bf16.msra.mxu1 %v6929_v1 }
 0xf56   :  { %6934 = vmatprep.subr.bf16.mxu1 %v6933_v10 }
 0xf59   :  { %6936 = vmatpush3.bf16.msra.mxu1 %v6933_v10 }
 0xf5a   :  { %6938 = vmatprep.subr.bf16.mxu1 %v6937_v63 }
 0xf5d   :  { %6940 = vmatpush3.bf16.msra.mxu1 %v6937_v63 }
 0xf5e   :  { %6942 = vmatprep.subr.bf16.mxu1 %v6941_v56 }
 0xf61   :  { %6944 = vmatpush3.bf16.msra.mxu1 %v6941_v56 }
 0xf62   :  { %6946 = vmatprep.subr.bf16.mxu1 %v6945_v37 }
 0xf65   :  { %6948 = vmatpush3.bf16.msra.mxu1 %v6945_v37 }
0x1016   :  { %v6392_v25 = vpop.f32.mrb[42].mxu0 }
0x1017   :  { %v8566_v22 = vadd.f32 %v6392_v25, %v5602_v7  ;;  %v2477_v38 = vpop.f32.mrb[43].mxu0 }
0x1018   :  { %v8568_v39 = vadd.f32 %v5602_v7, %v2477_v38 }
0x1019   :  { %v8571_v19 = vmul.f32 0.70710677, %v8566_v22 }
0x101a   :  { %v8574_v17 = vmul.f32 0.70710677, %v8568_v39 }
0x101b   :  { %v2525_v44 = vand.u32 2147483647, %v8571_v19  ;;  %vm2513_vm7 = vcmp.ge.f32.partialorder %v8571_v19, 0.0 }
0x101c   :  { %v2524_v12 = vand.u32 2147483647, %v8574_v17  ;;  %vm2512_vm8 = vcmp.ge.f32.partialorder %v8574_v17, 0.0 }
0x101d   :  { %v2531_v27 = vmul.f32 0.3275911, %v2525_v44  ;;  %v2603_v45 = vsub.f32 0.0, %v2525_v44 }
0x101e   :  { %v2530_v49 = vmul.f32 0.3275911, %v2524_v12  ;;  %v2602_v2 = vsub.f32 0.0, %v2524_v12 }
0x101f   :  { %v2537_v40 = vadd.f32 1.0, %v2531_v27  ;;  %v6395_v34 = vpop.f32.mrb[44].mxu0  ;;  %v2609_v21 = vmul.f32 %v2603_v45, %v2525_v44 }
0x1020   :  { %v2536_v33 = vadd.f32 1.0, %v2530_v49  ;;  %v8578_v35 = vadd.f32 %v6395_v34, %v5602_v7  ;;  %v2487_v42 = vpop.f32.mrb[45].mxu0  ;;  %v2608_v28 = vmul.f32 %v2602_v2, %v2524_v12 }
0x1021   :  { %7458 = vrcp.f32 %v2537_v40  ;;  %v8580_v29 = vadd.f32 %v5602_v7, %v2487_v42  ;;  %v2616_v0 = vmul.f32 1.442695, %v2609_v21 }
0x1022   :  { %7460 = vrcp.f32 %v2536_v33  ;;  %v8583_v52 = vmul.f32 0.70710677, %v8578_v35  ;;  %v2614_v63 = vmul.f32 1.442695, %v2608_v28 }
0x1023   :  { %v8586_v51 = vmul.f32 0.70710677, %v8580_v29  ;;  %v6398_v54 = vpop.f32.mrb[46].mxu0 }
0x1024   :  { %v2527_v50 = vand.u32 2147483647, %v8583_v52  ;;  %v8589_v46 = vadd.f32 %v6398_v54, %v5602_v7  ;;  %v2497_v58 = vpop.f32.mrb[47].mxu0  ;;  %vm2515_vm9 = vcmp.ge.f32.partialorder %v8583_v52, 0.0 }
0x1025   :  { %v2526_v59 = vand.u32 2147483647, %v8586_v51  ;;  %v8592_v53 = vadd.f32 %v5602_v7, %v2497_v58  ;;  %vm2514_vm10 = vcmp.ge.f32.partialorder %v8586_v51, 0.0 }
0x1026   :  { %v2533_v41 = vmul.f32 0.3275911, %v2527_v50  ;;  %v8595_v61 = vmul.f32 0.70710677, %v8589_v46  ;;  %v2605_v1 = vsub.f32 0.0, %v2527_v50 }
0x1027   :  { %v2532_v47 = vmul.f32 0.3275911, %v2526_v59  ;;  %v8598_v24 = vmul.f32 0.70710677, %v8592_v53  ;;  %v2604_v48 = vsub.f32 0.0, %v2526_v59 }
0x1028   :  { %v2539_v15 = vadd.f32 1.0, %v2533_v41  ;;  %v2529_v55 = vand.u32 2147483647, %v8595_v61  ;;  %v2611_v8 = vmul.f32 %v2605_v1, %v2527_v50  ;;  %vm2517_vm11 = vcmp.ge.f32.partialorder %v8595_v61, 0.0 }
0x1029   :  { %v2538_v36 = vadd.f32 1.0, %v2532_v47  ;;  %v2528_v3 = vand.u32 2147483647, %v8598_v24  ;;  %v2610_v44 = vmul.f32 %v2604_v48, %v2526_v59  ;;  %vm2516_vm12 = vcmp.ge.f32.partialorder %v8598_v24, 0.0 }
0x102a   :  { %7462 = vrcp.f32 %v2539_v15  ;;  %v2535_v16 = vmul.f32 0.3275911, %v2529_v55  ;;  %v2607_v32 = vsub.f32 0.0, %v2529_v55  ;;  %v2620_v49 = vmul.f32 1.442695, %v2611_v8 }
0x102b   :  { %v7459_v20 = vpop.eup %7458  ;;  %7464 = vrcp.f32 %v2538_v36  ;;  %v2534_v31 = vmul.f32 0.3275911, %v2528_v3  ;;  %v2606_v42 = vsub.f32 0.0, %v2528_v3  ;;  %v2618_v47 = vmul.f32 1.442695, %v2610_v44 }
0x102c   :  { %v7461_v4 = vpop.eup %7460  ;;  %v2549_v5 = vmul.f32 1.0614054, %v7459_v20  ;;  %v2541_v23 = vadd.f32 1.0, %v2535_v16  ;;  %v2613_v33 = vmul.f32 %v2607_v32, %v2529_v55 }
0x102d   :  { %v2548_v9 = vmul.f32 1.0614054, %v7461_v4  ;;  %v2540_v10 = vadd.f32 1.0, %v2534_v31 }
0x102e   :  { %v2555_v60 = vadd.f32 -1.4531521, %v2549_v5  ;;  %7466 = vrcp.f32 %v2541_v23  ;;  %v2624_v21 = vmul.f32 1.442695, %v2613_v33  ;;  %v2612_v5 = vmul.f32 %v2606_v42, %v2528_v3 }
0x102f   :  { %v2554_v62 = vadd.f32 -1.4531521, %v2548_v9  ;;  %7468 = vrcp.f32 %v2540_v10 }
0x1030   :  { %v2561_v11 = vmul.f32 %v7459_v20, %v2555_v60  ;;  %7470 = vpow2.f32 %v2616_v0 }
0x1031   :  { %v2560_v56 = vmul.f32 %v7461_v4, %v2554_v62  ;;  %7472 = vpow2.f32 %v2614_v63 }
0x1032   :  { %v2567_v13 = vadd.f32 1.4214138, %v2561_v11  ;;  %7474 = vpow2.f32 %v2620_v49 }
0x1033   :  { %v2566_v25 = vadd.f32 1.4214138, %v2560_v56  ;;  %7476 = vpow2.f32 %v2618_v47 }
0x1034   :  { %v8602_v37 = vpop.eup %7462  ;;  %v2573_v7 = vmul.f32 %v7459_v20, %v2567_v13  ;;  %7478 = vpow2.f32 %v2624_v21 }
0x1035   :  { %v8604_v38 = vpop.eup %7464  ;;  %v2551_v12 = vmul.f32 1.0614054, %v8602_v37  ;;  %v2572_v40 = vmul.f32 %v7461_v4, %v2566_v25 }
0x1036   :  { %v2579_v27 = vadd.f32 -0.28449672, %v2573_v7  ;;  %v2550_v34 = vmul.f32 1.0614054, %v8604_v38 }
0x1037   :  { %v2557_v54 = vadd.f32 -1.4531521, %v2551_v12  ;;  %v2578_v41 = vadd.f32 -0.28449672, %v2572_v40  ;;  %v7666_v12 = vmov -1.0  }
0x1038   :  { %v8608_v50 = vpop.eup %7466  ;;  %v2585_v58 = vmul.f32 %v7459_v20, %v2579_v27  ;;  %v2556_v45 = vadd.f32 -1.4531521, %v2550_v34  ;;  %v2519_v27 = vsel %vm2513_vm7, 1.0, %v7666_v12  ;;  %v2520_v52 = vsel %vm2514_vm10, 1.0, %v7666_v12 }
0x1039   :  { %v2563_v59 = vmul.f32 %v8602_v37, %v2557_v54  ;;  %v2553_v15 = vmul.f32 1.0614054, %v8608_v50  ;;  %v2584_v36 = vmul.f32 %v7461_v4, %v2578_v41  ;;  %v8614_v55 = vpop.eup %7468  ;;  %v2518_v54 = vsel %vm2512_vm8, 1.0, %v7666_v12 }
0x103a   :  { %v2591_v2 = vadd.f32 0.2548296, %v2585_v58  ;;  %v2562_v16 = vmul.f32 %v8604_v38, %v2556_v45  ;;  %v2552_v9 = vmul.f32 1.0614054, %v8614_v55  ;;  %v7471_v0 = vpop.eup %7470  ;;  %vm5476_vm7 = vcmask 74752  }
0x103b   :  { %v2569_v23 = vadd.f32 1.4214138, %v2563_v59  ;;  %v2559_v28 = vadd.f32 -1.4531521, %v2553_v15  ;;  %v2590_v60 = vadd.f32 0.2548296, %v2584_v36  ;;  %v7473_v13 = vpop.eup %7472 }
0x103c   :  { %v2597_v31 = vmul.f32 %v7459_v20, %v2591_v2  ;;  %v2568_v1 = vadd.f32 1.4214138, %v2562_v16  ;;  %v2558_v3 = vadd.f32 -1.4531521, %v2552_v9  ;;  %v2622_v20 = vmul.f32 1.442695, %v2612_v5  ;;  %v7475_v45 = vpop.eup %7474 }
0x103d   :  { %v2575_v10 = vmul.f32 %v8602_v37, %v2569_v23  ;;  %v2565_v11 = vmul.f32 %v8608_v50, %v2559_v28  ;;  %v2596_v63 = vmul.f32 %v7461_v4, %v2590_v60  ;;  %v2644_v16 = vmul.f32 0.5, %v8568_v39  ;;  %v7477_v23 = vpop.eup %7476 }
0x103e   :  { %v2627_v62 = vmul.f32 %v7471_v0, %v2597_v31  ;;  %v2574_v48 = vmul.f32 %v8604_v38, %v2568_v1  ;;  %v2564_v44 = vmul.f32 %v8614_v55, %v2558_v3  ;;  %7480 = vpow2.f32 %v2622_v20  ;;  %v7479_v0 = vpop.eup %7478 }
0x103f   :  { %v2581_v8 = vadd.f32 -0.28449672, %v2575_v10  ;;  %v2571_v56 = vadd.f32 1.4214138, %v2565_v11  ;;  %v2626_v7 = vmul.f32 %v7473_v13, %v2596_v63  ;;  %v2645_v28 = vmul.f32 0.5, %v8566_v22 }
0x1040   :  { %v2633_v32 = vsub.f32 1.0, %v2627_v62  ;;  %v2580_v25 = vadd.f32 -0.28449672, %v2574_v48  ;;  %v2570_v42 = vadd.f32 1.4214138, %v2564_v44  ;;  %v2646_v20 = vmul.f32 0.5, %v8580_v29 }
0x1041   :  { %v2587_v4 = vmul.f32 %v8602_v37, %v2581_v8  ;;  %v2577_v49 = vmul.f32 %v8608_v50, %v2571_v56  ;;  %v2632_v34 = vsub.f32 1.0, %v2626_v7  ;;  %v2523_v56 = vsel %vm2517_vm11, 1.0, %v7666_v12 }
0x1042   :  { %v2639_v40 = vmul.f32 %v2633_v32, %v2519_v27  ;;  %v2586_v33 = vmul.f32 %v8604_v38, %v2580_v25  ;;  %v2576_v59 = vmul.f32 %v8614_v55, %v2570_v42  ;;  %v2647_v25 = vmul.f32 0.5, %v8578_v35  ;;  %v5609_v35 = vld [vmem:[%s9465_s19] ss:$0 sm:$0xff] }
0x1043   :  { %v2593_v58 = vadd.f32 0.2548296, %v2587_v4  ;;  %v2583_v41 = vadd.f32 -0.28449672, %v2577_v49  ;;  %v2638_v47 = vmul.f32 %v2632_v34, %v2518_v54  ;;  %v2522_v4 = vsel %vm2516_vm12, 1.0, %v7666_v12 }
0x1044   :  { %v2592_v19 = vadd.f32 0.2548296, %v2586_v33  ;;  %v2651_v15 = vadd.f32 1.0, %v2639_v40  ;;  %v2582_v17 = vadd.f32 -0.28449672, %v2576_v59  ;;  %v2648_v40 = vmul.f32 0.5, %v8592_v53 }
0x1045   :  { %v2599_v2 = vmul.f32 %v8602_v37, %v2593_v58  ;;  %v2589_v36 = vmul.f32 %v8608_v50, %v2583_v41  ;;  %v2650_v21 = vadd.f32 1.0, %v2638_v47  ;;  %v2649_v33 = vmul.f32 0.5, %v8589_v46 }
0x1046   :  { %v2598_v5 = vmul.f32 %v8604_v38, %v2592_v19  ;;  %v2588_v37 = vmul.f32 %v8614_v55, %v2582_v17  ;;  %v2657_v10 = vmul.f32 %v2651_v15, %v2645_v28  ;;  %v2521_v38 = vsel %vm2515_vm9, 1.0, %v7666_v12 }
0x1047   :  { %v2629_v31 = vmul.f32 %v7475_v45, %v2599_v2  ;;  %v2595_v60 = vadd.f32 0.2548296, %v2589_v36  ;;  %v2656_v1 = vmul.f32 %v2650_v21, %v2644_v16 }
0x1048   :  { %v2628_v9 = vmul.f32 %v7477_v23, %v2598_v5  ;;  %v2594_v22 = vadd.f32 0.2548296, %v2588_v37  ;;  %v7481_v13 = vpop.eup %7480 }
0x1049   :  { %v2635_v39 = vsub.f32 1.0, %v2629_v31  ;;  %v2601_v11 = vmul.f32 %v8608_v50, %v2595_v60  ;;  %6431 = vmatprep.mubr.f32.mxu1 %v2656_v1 }
0x104a   :  { %v2634_v62 = vsub.f32 1.0, %v2628_v9  ;;  %6432 = vmatmul.mubr.f32.vlgmr.msra.gmra.mrb[36].mxu1 %v2657_v10  ;;  %v2600_v3 = vmul.f32 %v8614_v55, %v2594_v22 }
0x104b   :  { %v2641_v51 = vmul.f32 %v2635_v39, %v2521_v38  ;;  %v2631_v63 = vmul.f32 %v7479_v0, %v2601_v11 }
0x104c   :  { %v2640_v48 = vmul.f32 %v2634_v62, %v2520_v52  ;;  %v2630_v7 = vmul.f32 %v7481_v13, %v2600_v3 }
0x104d   :  { %v2653_v8 = vadd.f32 1.0, %v2641_v51  ;;  %v2637_v50 = vsub.f32 1.0, %v2631_v63 }
0x104e   :  { %v2652_v32 = vadd.f32 1.0, %v2640_v48  ;;  %v2636_v27 = vsub.f32 1.0, %v2630_v7 }
0x104f   :  { %v2643_v61 = vmul.f32 %v2637_v50, %v2523_v56  ;;  %v2659_v49 = vmul.f32 %v2653_v8, %v2647_v25 }
0x1050   :  { %v2658_v44 = vmul.f32 %v2652_v32, %v2646_v20  ;;  %v2642_v55 = vmul.f32 %v2636_v27, %v2522_v4 }
0x1051   :  { %v2655_v29 = vadd.f32 1.0, %v2643_v61 }
0x1052   :  { %6434 = vmatprep.mubr.f32.mxu1 %v2658_v44  ;;  %v2654_v34 = vadd.f32 1.0, %v2642_v55  ;;  %v5614_v55 = vld [vmem:[%s9506_s25 + $0x20] sm:$0xff] }
0x1053   :  { %6435 = vmatmul.mubr.f32.gmra.mrb[38].mxu1 %v2659_v49  ;;  %v2661_v42 = vmul.f32 %v2655_v29, %v2649_v33  ;;  %v5615_v29 = vld [vmem:[%s9506_s25 + $0x28] sm:$0xff]  ;;  %v5617_v33 = vld [vmem:[%s9506_s25 + $0x38] sm:$0xff] }
0x1054   :  { %v2660_v24 = vmul.f32 %v2654_v34, %v2648_v40  ;;  %v6949_v40 = vpack.c.bf16 %v5615_v29, %v5614_v55  ;;  %v5616_v34 = vld [vmem:[%s9506_s25 + $0x30] sm:$0xff]  ;;  %s9519_s25 = smov 24  }
0x1056   :  { %6437 = vmatprep.mubr.f32.mxu1 %v2660_v24  ;;  %v6953_v24 = vpack.c.bf16 %v5617_v33, %v5616_v34  ;;  %6950 = vmatprep.subr.bf16.mxu0 %v6949_v40 }
0x1057   :  { %6438 = vmatmul.mubr.f32.gmra.mrb[40].mxu1 %v2661_v42  ;;  %6952 = vmatpush3.bf16.msra.mxu0 %v6949_v40  ;;  %v5626_v42 = vld [vmem:[%s9507_s28 + $0x20] sm:$0xff] }
0x1058   :  { %6954 = vmatprep.subr.bf16.mxu0 %v6953_v24 }
0x105b   :  { %6956 = vmatpush3.bf16.msra.mxu0 %v6953_v24  ;;  %v5640_v24 = vld [vmem:[%s9456_s10 + $0x30] sm:$0xff] }
0x111d   :  { %v6433_v54 = vpop.f32.mrb[36].mxu1 }
0x111e   :  { %v2757_v58 = vadd.f32 %v6433_v54, %v5609_v35  ;;  %v2751_v41 = vpop.f32.mrb[37].mxu1 }
0x111f   :  { %v2752_v45 = vadd.f32 %v5609_v35, %v2751_v41 }
0x1120   :  { %v8656_v47 = vadd.f32 %v2757_v58, %v8425_v14 }
0x1121   :  { %v8659_v53 = vadd.f32 %v2752_v45, %v8428_v6 }
0x1122   :  { %v2793_v46 = vsel %vm218_vm1, %v8656_v47, 0.0 }
0x1123   :  { %2794 = vadd.xlane.f32.xlu1 %v2793_v46  ;;  %v2790_v19 = vsel %vm218_vm1, %v8659_v53, 0.0 }
0x1124   :  { %2791 = vadd.xlane.f32.xlu0 %v2790_v19 }
0x1126   :  { %v6436_v59 = vpop.f32.mrb[38].mxu1 }
0x1127   :  { %v2767_v15 = vadd.f32 %v6436_v59, %v5609_v35  ;;  %v2761_v2 = vpop.f32.mrb[39].mxu1 }
0x1128   :  { %v2762_v36 = vadd.f32 %v5609_v35, %v2761_v2 }
0x1129   :  { %v8666_v16 = vadd.f32 %v2767_v15, %v8435_v57 }
0x112a   :  { %v8669_v14 = vadd.f32 %v2762_v36, %v8440_v30  ;;  %v6439_v21 = vpop.f32.mrb[40].mxu1 }
0x112b   :  { %v2799_v6 = vsel %vm218_vm1, %v8666_v16, 0.0  ;;  %v2777_v17 = vadd.f32 %v6439_v21, %v5609_v35  ;;  %v2771_v23 = vpop.f32.mrb[41].mxu1 }
0x112c   :  { %2800 = vadd.xlane.f32.xlu1 %v2799_v6  ;;  %v2796_v5 = vsel %vm218_vm1, %v8669_v14, 0.0  ;;  %v2772_v28 = vadd.f32 %v5609_v35, %v2771_v23  ;;  %v5627_v35 = vld [vmem:[%s9507_s28 + $0x28] sm:$0xff] }
0x112d   :  { %2797 = vadd.xlane.f32.xlu0 %v2796_v5  ;;  %v8676_v31 = vadd.f32 %v2777_v17, %v8443_v43  ;;  %v6957_v54 = vpack.c.bf16 %v5627_v35, %v5626_v42  ;;  %v8790_v42 = vld [vmem:[%s9510_s27 + $0x1] ss:$0 sm:$0xff] }
0x112e   :  { %v8679_v57 = vadd.f32 %v2772_v28, %v8448_v26  ;;  %v5612_v28 = vld [vmem:[%s9508_s2 + $0x1] ss:$0 sm:$0xff]  ;;  %s9518_s2 = smov 16  }
0x112f   :  { %v2805_v30 = vsel %vm218_vm1, %v8676_v31, 0.0  ;;  %6958 = vmatprep.subr.bf16.mxu0 %v6957_v54 }
0x1130   :  { %2806 = vadd.xlane.f32.xlu1 %v2805_v30  ;;  %v2802_v60 = vsel %vm218_vm1, %v8679_v57, 0.0 }
0x1131   :  { %2803 = vadd.xlane.f32.xlu0 %v2802_v60 }
0x11b0   :  { %v2795_v1 = vpop.xlane.xlu1 %2794 }
0x11b1   :  { %v2809_v9 = vmul.f32 0.03125, %v2795_v1  ;;  %v2792_v37 = vpop.xlane.xlu0 %2791 }
0x11b2   :  { %v2808_v0 = vmul.f32 0.03125, %v2792_v37 }
0x11b3   :  { %v8686_v10 = vsub.f32 %v8656_v47, %v2809_v9 }
0x11b4   :  { %v8689_v43 = vsub.f32 %v8659_v53, %v2808_v0 }
0x11b5   :  { %v2821_v26 = vmul.f32 %v8686_v10, %v8686_v10 }
0x11b6   :  { %v2820_v39 = vmul.f32 %v8689_v43, %v8689_v43 }
0x11b7   :  { %v2829_v11 = vsel %vm218_vm1, %v2821_v26, 0.0 }
0x11b8   :  { %2830 = vadd.xlane.f32.xlu1 %v2829_v11  ;;  %v2826_v62 = vsel %vm218_vm1, %v2820_v39, 0.0 }
0x11b9   :  { %v2801_v38 = vpop.xlane.xlu1 %2800  ;;  %2827 = vadd.xlane.f32.xlu0 %v2826_v62 }
0x11ba   :  { %v2811_v22 = vmul.f32 0.03125, %v2801_v38  ;;  %v2798_v52 = vpop.xlane.xlu0 %2797  ;;  %v5613_v38 = vld [vmem:[%s9509_s7 + $0x1] ss:$0 sm:$0xff] }
0x11bb   :  { %v2810_v51 = vmul.f32 0.03125, %v2798_v52 }
0x11bc   :  { %v8698_v63 = vsub.f32 %v8666_v16, %v2811_v22  ;;  %v5628_v22 = vld [vmem:[%s9507_s28 + $0x30] sm:$0xff] }
0x11bd   :  { %v8701_v48 = vsub.f32 %v8669_v14, %v2810_v51  ;;  %v2807_v13 = vpop.xlane.xlu1 %2806 }
0x11be   :  { %v2823_v3 = vmul.f32 %v8698_v63, %v8698_v63  ;;  %v2813_v8 = vmul.f32 0.03125, %v2807_v13  ;;  %v2804_v50 = vpop.xlane.xlu0 %2803  ;;  %v5638_v13 = vld [vmem:[%s9456_s10 + $0x20] sm:$0xff] }
0x11bf   :  { %v2822_v20 = vmul.f32 %v8701_v48, %v8701_v48  ;;  %v2812_v32 = vmul.f32 0.03125, %v2804_v50 }
0x11c0   :  { %v2835_v56 = vsel %vm218_vm1, %v2823_v3, 0.0  ;;  %v8710_v25 = vsub.f32 %v8676_v31, %v2813_v8 }
0x11c1   :  { %2836 = vadd.xlane.f32.xlu1 %v2835_v56  ;;  %v2832_v7 = vsel %vm218_vm1, %v2822_v20, 0.0  ;;  %v8713_v61 = vsub.f32 %v8679_v57, %v2812_v32  ;;  %v5639_v20 = vld [vmem:[%s9456_s10 + $0x28] sm:$0xff] }
0x11c2   :  { %2833 = vadd.xlane.f32.xlu0 %v2832_v7  ;;  %v2825_v44 = vmul.f32 %v8710_v25, %v8710_v25  ;;  %v6965_v7 = vpack.c.bf16 %v5639_v20, %v5638_v13 }
0x11c3   :  { %v2824_v27 = vmul.f32 %v8713_v61, %v8713_v61 }
0x11c4   :  { %v2841_v4 = vsel %vm218_vm1, %v2825_v44, 0.0 }
0x11c5   :  { %2842 = vadd.xlane.f32.xlu1 %v2841_v4  ;;  %v2838_v49 = vsel %vm218_vm1, %v2824_v27, 0.0 }
0x11c6   :  { %2839 = vadd.xlane.f32.xlu0 %v2838_v49 }
0x1245   :  { %v2831_v58 = vpop.xlane.xlu1 %2830 }
0x1246   :  { %v2845_v41 = vmul.f32 0.03125, %v2831_v58  ;;  %v2828_v45 = vpop.xlane.xlu0 %2827 }
0x1247   :  { %v2844_v46 = vmul.f32 0.03125, %v2828_v45 }
0x1248   :  { %v2851_v19 = vadd.f32 1e-06, %v2845_v41 }
0x1249   :  { %v2850_v59 = vadd.f32 1e-06, %v2844_v46 }
0x124a   :  { %7482 = vrsqrt.f32 %v2851_v19 }
0x124b   :  { %7484 = vrsqrt.f32 %v2850_v59  ;;  %v5631_v59 = vld [vmem:[%s9455_s9 + $0x1] ss:$0 sm:$0xff] }
0x124e   :  { %v2837_v15 = vpop.xlane.xlu1 %2836 }
0x124f   :  { %v2847_v2 = vmul.f32 0.03125, %v2837_v15  ;;  %v2834_v36 = vpop.xlane.xlu0 %2833 }
0x1250   :  { %v2846_v6 = vmul.f32 0.03125, %v2834_v36 }
0x1251   :  { %v2853_v21 = vadd.f32 1e-06, %v2847_v2 }
0x1252   :  { %v2852_v5 = vadd.f32 1e-06, %v2846_v6  ;;  %v2843_v17 = vpop.xlane.xlu1 %2842 }
0x1253   :  { %7486 = vrsqrt.f32 %v2853_v21  ;;  %v2849_v30 = vmul.f32 0.03125, %v2843_v17  ;;  %v2840_v60 = vpop.xlane.xlu0 %2839 }
0x1254   :  { %7488 = vrsqrt.f32 %v2852_v5  ;;  %v7483_v23 = vpop.eup %7482  ;;  %v2848_v37 = vmul.f32 0.03125, %v2840_v60 }
0x1255   :  { %v7485_v1 = vpop.eup %7484  ;;  %v2863_v9 = vmul.f32 %v7483_v23, %v8686_v10  ;;  %v2855_v0 = vadd.f32 1e-06, %v2849_v30  ;;  %v5629_v10 = vld [vmem:[%s9507_s28 + $0x38] sm:$0xff] }
0x1256   :  { %v2862_v26 = vmul.f32 %v7485_v1, %v8689_v43  ;;  %v2854_v11 = vadd.f32 1e-06, %v2848_v37  ;;  %v6961_v43 = vpack.c.bf16 %v5629_v10, %v5628_v22 }
0x1257   :  { %v2875_v39 = vmul.f32 %v5612_v28, %v2863_v9  ;;  %7490 = vrsqrt.f32 %v2855_v0 }
0x1258   :  { %v2874_v62 = vmul.f32 %v5612_v28, %v2862_v26  ;;  %7492 = vrsqrt.f32 %v2854_v11 }
0x1259   :  { %v2887_v51 = vadd.f32 %v5613_v38, %v2875_v39  ;;  %v5643_v39 = vld [vmem:[%s9457_s11 + $0x1] ss:$0 sm:$0xff] }
0x125a   :  { %v2886_v52 = vadd.f32 %v5613_v38, %v2874_v62 }
0x125c   :  { %6448 = vmatprep.mubr.msk.f32.mxu0 %vm218_vm1, %v2886_v52 }
0x125d   :  { %v7487_v3 = vpop.eup %7486  ;;  %6449 = vmatmul.mubr.msk.f32.vlgmr.msra.gmra.mrb[48].mxu0 %vm218_vm1, %v2887_v51 }
0x125e   :  { %v7489_v8 = vpop.eup %7488  ;;  %v2865_v50 = vmul.f32 %v7487_v3, %v8698_v63  ;;  %6960 = vmatpush3.bf16.msra.mxu0 %v6957_v54 }
0x125f   :  { %v2864_v56 = vmul.f32 %v7489_v8, %v8701_v48  ;;  %6962 = vmatprep.subr.bf16.mxu0 %v6961_v43 }
0x1260   :  { %v2877_v32 = vmul.f32 %v5612_v28, %v2865_v50 }
0x1261   :  { %v2876_v44 = vmul.f32 %v5612_v28, %v2864_v56  ;;  %v7491_v27 = vpop.eup %7490 }
0x1262   :  { %6964 = vmatpush3.bf16.msra.mxu0 %v6961_v43  ;;  %v7493_v49 = vpop.eup %7492  ;;  %v2889_v55 = vadd.f32 %v5613_v38, %v2877_v32  ;;  %v2867_v29 = vmul.f32 %v7491_v27, %v8710_v25  ;;  %v5641_v25 = vld [vmem:[%s9456_s10 + $0x38] sm:$0xff]  ;;  %s9514_s10 = smov 120  }
0x1263   :  { %v2888_v4 = vadd.f32 %v5613_v38, %v2876_v44  ;;  %6966 = vmatprep.subr.bf16.mxu0 %v6965_v7  ;;  %v2866_v40 = vmul.f32 %v7493_v49, %v8713_v61  ;;  %v6969_v61 = vpack.c.bf16 %v5641_v25, %v5640_v24 }
0x1264   :  { %v2879_v63 = vmul.f32 %v5612_v28, %v2867_v29 }
0x1265   :  { %6451 = vmatprep.mubr.msk.f32.mxu0 %vm218_vm1, %v2888_v4  ;;  %v2878_v48 = vmul.f32 %v5612_v28, %v2866_v40 }
0x1266   :  { %6452 = vmatmul.mubr.msk.f32.gmra.mrb[50].mxu0 %vm218_vm1, %v2889_v55  ;;  %v2891_v33 = vadd.f32 %v5613_v38, %v2879_v63 }
0x1267   :  { %v2890_v34 = vadd.f32 %v5613_v38, %v2878_v48 }
0x1269   :  { %6454 = vmatprep.mubr.msk.f32.mxu0 %vm218_vm1, %v2890_v34 }
0x126a   :  { %6455 = vmatmul.mubr.msk.f32.gmra.mrb[52].mxu0 %vm218_vm1, %v2891_v33 }
0x126b   :  { %6465 = vmatprep.mubr.msk.f32.mxu0 %vm218_vm1, %v2886_v52 }
0x126e   :  { %6466 = vmatmul.mubr.msk.f32.vlgmr.msra.gmra.mrb[54].mxu0 %vm218_vm1, %v2887_v51 }
0x126f   :  { %6468 = vmatprep.mubr.msk.f32.mxu0 %vm218_vm1, %v2888_v4  ;;  %6968 = vmatpush3.bf16.msra.mxu0 %v6965_v7 }
0x1270   :  { %6970 = vmatprep.subr.bf16.mxu0 %v6969_v61 }
0x1272   :  { %6469 = vmatmul.mubr.msk.f32.gmra.mrb[56].mxu0 %vm218_vm1, %v2889_v55 }
0x1273   :  { %6471 = vmatprep.mubr.msk.f32.mxu0 %vm218_vm1, %v2890_v34  ;;  %6972 = vmatpush3.bf16.msra.mxu0 %v6969_v61  ;;  %v8855_v61 = vld [vmem:[%s9513_s8 + $0x8] sm:$0xff] }
0x1276   :  { %6472 = vmatmul.mubr.msk.f32.gmra.mrb[58].mxu0 %vm218_vm1, %v2891_v33 }
0x1277   :  { %6482 = vmatprep.mubr.msk.f32.mxu0 %vm218_vm1, %v2886_v52 }
0x127a   :  { %6483 = vmatmul.mubr.msk.f32.vlgmr.msra.gmra.mrb[60].mxu0 %vm218_vm1, %v2887_v51 }
0x127b   :  { %6485 = vmatprep.mubr.msk.f32.mxu0 %vm218_vm1, %v2888_v4 }
0x127e   :  { %6486 = vmatmul.mubr.msk.f32.gmra.mrb[62].mxu0 %vm218_vm1, %v2889_v55 }
0x127f   :  { %6488 = vmatprep.mubr.msk.f32.mxu0 %vm218_vm1, %v2890_v34 }
0x1282   :  { %6489 = vmatmul.mubr.msk.f32.gmra.mrb[64].mxu0 %vm218_vm1, %v2891_v33 }
0x1330   :  { %v6450_v35 = vpop.f32.mrb[48].mxu0 }
0x1331   :  { %v2989_v54 = vpop.f32.mrb[49].mxu0  ;;  %v8828_v55 = vadd.f32 %v6450_v35, %v8790_v42 }
0x1332   :  { %v8793_v58 = vadd.f32 %v8790_v42, %v2989_v54  ;;  %v8861_v54 = vld [vmem:[%s9513_s8] sm:$0xff] }
0x1334   :  { %6503 = vmatprep.mubr.msk.f32.mxu1 %vm658_vm2, %v8793_v58 }
0x1339   :  { %v6453_v41 = vpop.f32.mrb[50].mxu0 }
0x133a   :  { %v2999_v45 = vpop.f32.mrb[51].mxu0  ;;  %v8838_v40 = vadd.f32 %v6453_v41, %v8790_v42 }
0x133b   :  { %v8831_v29 = vadd.f32 %v8790_v42, %v2999_v45 }
0x133d   :  { %v6456_v46 = vpop.f32.mrb[52].mxu0 }
0x133e   :  { %v3009_v19 = vpop.f32.mrb[53].mxu0  ;;  %v8848_v48 = vadd.f32 %v6456_v46, %v8790_v42 }
0x133f   :  { %v8841_v63 = vadd.f32 %v8790_v42, %v3009_v19 }
0x1341   :  { %v6467_v15 = vpop.f32.mrb[54].mxu0 }
0x1342   :  { %v3103_v2 = vadd.f32 %v6467_v15, %v5631_v59  ;;  %v3097_v36 = vpop.f32.mrb[55].mxu0 }
0x1343   :  { %v3098_v6 = vadd.f32 %v5631_v59, %v3097_v36 }
0x1345   :  { %v6470_v21 = vpop.f32.mrb[56].mxu0  ;;  %v6973_v5 = vpack.c.bf16 %v3103_v2, %v3098_v6  ;;  %v8800_v17 = vpack.i.bf16 %v3103_v2, %v3098_v6  ;;  %v8869_v2 = vld [vmem:[%s9513_s8 + $0x18] sm:$0xff]  ;;  %v8875_v6 = vld [vmem:[%s9513_s8 + $0x10] sm:$0xff] }
0x1346   :  { %v3113_v23 = vadd.f32 %v6470_v21, %v5631_v59  ;;  %v3107_v28 = vpop.f32.mrb[57].mxu0 }
0x1347   :  { %v3108_v30 = vadd.f32 %v5631_v59, %v3107_v28  ;;  %6975 = vmatprep.subr.msk.bf16.mxu1 %vm7995_vm3, %v6973_v5 }
0x1348   :  { %6978 = vmatpush3.bf16.xpose.msk.msra.mxu1 %vm7995_vm3, %v6973_v5 }
0x1349   :  { %v6473_v60 = vpop.f32.mrb[58].mxu0  ;;  %v6979_v1 = vpack.c.bf16 %v3113_v23, %v3108_v30  ;;  %v8806_v9 = vpack.i.bf16 %v3113_v23, %v3108_v30 }
0x134a   :  { %v3123_v37 = vadd.f32 %v6473_v60, %v5631_v59  ;;  %v3117_v0 = vpop.f32.mrb[59].mxu0 }
0x134b   :  { %v3118_v26 = vadd.f32 %v5631_v59, %v3117_v0  ;;  %6981 = vmatprep.subr.msk.bf16.mxu1 %vm7995_vm3, %v6979_v1 }
0x134d   :  { %v6484_v11 = vpop.f32.mrb[60].mxu0  ;;  %v6985_v38 = vpack.c.bf16 %v3123_v37, %v3118_v26  ;;  %v8813_v62 = vpack.i.bf16 %v3123_v37, %v3118_v26  ;;  %v8883_v37 = vld [vmem:[%s9513_s8 + $0x28] sm:$0xff]  ;;  %v8889_v26 = vld [vmem:[%s9513_s8 + $0x20] sm:$0xff] }
0x134e   :  { %v3211_v22 = vadd.f32 %v6484_v11, %v5643_v39  ;;  %v3205_v10 = vpop.f32.mrb[61].mxu0 }
0x134f   :  { %v3206_v52 = vadd.f32 %v5643_v39, %v3205_v10 }
0x1350   :  { %6984 = vmatpush3.bf16.xpose.msk.msra.mxu1 %vm7995_vm3, %v6979_v1 }
0x1351   :  { %v6487_v51 = vpop.f32.mrb[62].mxu0  ;;  %6987 = vmatprep.subr.msk.bf16.mxu1 %vm7995_vm3, %v6985_v38  ;;  %v6991_v43 = vpack.c.bf16 %v3211_v22, %v3206_v52  ;;  %v8819_v3 = vpack.i.bf16 %v3211_v22, %v3206_v52 }
0x1352   :  { %v3221_v13 = vadd.f32 %v6487_v51, %v5643_v39  ;;  %v3215_v20 = vpop.f32.mrb[63].mxu0 }
0x1353   :  { %v3216_v8 = vadd.f32 %v5643_v39, %v3215_v20  ;;  %6992 = vmatprep.subr.bf16.mxu0 %v6991_v43 }
0x1354   :  { %6994 = vmatpush3.bf16.msra.mxu0 %v6991_v43 }
0x1355   :  { %v6490_v50 = vpop.f32.mrb[64].mxu0  ;;  %v6995_v56 = vpack.c.bf16 %v3221_v13, %v3216_v8  ;;  %v8821_v32 = vpack.i.bf16 %v3221_v13, %v3216_v8 }
0x1356   :  { %v3231_v7 = vadd.f32 %v6490_v50, %v5643_v39  ;;  %v3225_v44 = vpop.f32.mrb[65].mxu0 }
0x1357   :  { %v3226_v27 = vadd.f32 %v5643_v39, %v3225_v44  ;;  %6996 = vmatprep.subr.bf16.mxu0 %v6995_v56 }
0x1358   :  { %6990 = vmatpush3.bf16.xpose.msk.msra.mxu1 %vm7995_vm3, %v6985_v38  ;;  %6998 = vmatpush3.bf16.msra.mxu0 %v6995_v56 }
0x1359   :  { %v6999_v4 = vpack.c.bf16 %v3231_v7, %v3226_v27  ;;  %v8825_v49 = vpack.i.bf16 %v3231_v7, %v3226_v27 }
0x135b   :  { %7000 = vmatprep.subr.bf16.mxu0 %v6999_v4 }
0x135c   :  { %7002 = vmatpush3.bf16.msra.mxu0 %v6999_v4 }
0x135f   :  { %6504 = vmatmul.mubr.msk.f32.vlgmr.msra.gmra.mrb[42].mxu1 %vm658_vm2, %v8828_v55 }
0x1360   :  { %6506 = vmatprep.mubr.msk.f32.mxu1 %vm658_vm2, %v8831_v29 }
0x1363   :  { %6507 = vmatmul.mubr.msk.f32.gmra.mrb[44].mxu1 %vm658_vm2, %v8838_v40 }
0x1364   :  { %6509 = vmatprep.mubr.msk.f32.mxu1 %vm658_vm2, %v8841_v63 }
0x1367   :  { %6510 = vmatmul.mubr.msk.f32.gmra.mrb[46].mxu1 %vm658_vm2, %v8848_v48 }
0x1432   :  { %v6505_v34 = vpop.f32.mrb[42].mxu1 }
0x1433   :  { %v3366_v33 = vmul.f32 0.35355338, %v6505_v34  ;;  %v3336_v24 = vpop.f32.mrb[43].mxu1 }
0x1434   :  { %v3365_v25 = vmul.f32 0.35355338, %v3336_v24 }
0x1435   :  { %v3372_v35 = vadd.f32 %v8855_v61, %v3366_v33 }
0x1436   :  { %v3371_v42 = vadd.f32 %v8861_v54, %v3365_v25  ;;  %v6508_v41 = vpop.f32.mrb[44].mxu1 }
0x1437   :  { %v3368_v45 = vmul.f32 0.35355338, %v6508_v41  ;;  %v3346_v46 = vpop.f32.mrb[45].mxu1  ;;  %v3380_v19 = vsel %vm96_vm0, %v3372_v35, -inf }
0x1438   :  { %v3367_v59 = vmul.f32 0.35355338, %v3346_v46  ;;  %3381 = vmax.xlane.f32.xlu1 %v3380_v19  ;;  %v3377_v15 = vsel %vm96_vm0, %v3371_v42, -inf }
0x1439   :  { %v3374_v36 = vadd.f32 %v8869_v2, %v3368_v45  ;;  %3378 = vmax.xlane.f32.xlu0 %v3377_v15 }
0x143a   :  { %v3373_v21 = vadd.f32 %v8875_v6, %v3367_v59  ;;  %v6511_v5 = vpop.f32.mrb[46].mxu1 }
0x143b   :  { %v3370_v23 = vmul.f32 0.35355338, %v6511_v5  ;;  %v3356_v28 = vpop.f32.mrb[47].mxu1  ;;  %v3386_v30 = vsel %vm96_vm0, %v3374_v36, -inf }
0x143c   :  { %v3369_v60 = vmul.f32 0.35355338, %v3356_v28  ;;  %3387 = vmax.xlane.f32.xlu1 %v3386_v30  ;;  %v3383_v1 = vsel %vm96_vm0, %v3373_v21, -inf }
0x143d   :  { %v3376_v0 = vadd.f32 %v8883_v37, %v3370_v23  ;;  %3384 = vmax.xlane.f32.xlu0 %v3383_v1 }
0x143e   :  { %v3375_v39 = vadd.f32 %v8889_v26, %v3369_v60 }
0x143f   :  { %v3392_v11 = vsel %vm96_vm0, %v3376_v0, -inf }
0x1440   :  { %3393 = vmax.xlane.f32.xlu1 %v3392_v11  ;;  %v3389_v38 = vsel %vm96_vm0, %v3375_v39, -inf }
0x1441   :  { %3390 = vmax.xlane.f32.xlu0 %v3389_v38 }
0x14c5   :  { %v3382_v22 = vpop.xlane.xlu1 %3381 }
0x14c6   :  { %v3396_v10 = vsub.f32 %v3372_v35, %v3382_v22  ;;  %v3379_v52 = vpop.xlane.xlu0 %3378 }
0x14c7   :  { %v3395_v51 = vsub.f32 %v3371_v42, %v3379_v52 }
0x14c8   :  { %v3403_v43 = vmul.f32 1.442695, %v3396_v10 }
0x14c9   :  { %v3401_v13 = vmul.f32 1.442695, %v3395_v51  ;;  %v3388_v20 = vpop.xlane.xlu1 %3387 }
0x14ca   :  { %7494 = vpow2.f32 %v3403_v43  ;;  %v3398_v8 = vsub.f32 %v3374_v36, %v3388_v20  ;;  %v3385_v50 = vpop.xlane.xlu0 %3384 }
0x14cb   :  { %7496 = vpow2.f32 %v3401_v13  ;;  %v3397_v56 = vsub.f32 %v3373_v21, %v3385_v50 }
0x14cc   :  { %v3407_v7 = vmul.f32 1.442695, %v3398_v8 }
0x14cd   :  { %v3405_v44 = vmul.f32 1.442695, %v3397_v56  ;;  %v3394_v27 = vpop.xlane.xlu1 %3393 }
0x14ce   :  { %7498 = vpow2.f32 %v3407_v7  ;;  %v3400_v4 = vsub.f32 %v3376_v0, %v3394_v27  ;;  %v3391_v34 = vpop.xlane.xlu0 %3390 }
0x14cf   :  { %7500 = vpow2.f32 %v3405_v44  ;;  %v3399_v33 = vsub.f32 %v3375_v39, %v3391_v34 }
0x14d0   :  { %v3411_v24 = vmul.f32 1.442695, %v3400_v4 }
0x14d1   :  { %v3409_v25 = vmul.f32 1.442695, %v3399_v33 }
0x14d2   :  { %7502 = vpow2.f32 %v3411_v24 }
0x14d3   :  { %7504 = vpow2.f32 %v3409_v25 }
0x14d4   :  { %v7495_v35 = vpop.eup %7494 }
0x14d5   :  { %v7497_v42 = vpop.eup %7496  ;;  %v3416_v41 = vsel %vm96_vm0, %v7495_v35, 0.0 }
0x14d6   :  { %3417 = vadd.xlane.f32.xlu1 %v3416_v41  ;;  %v3413_v45 = vsel %vm96_vm0, %v7497_v42, 0.0 }
0x14d7   :  { %3414 = vadd.xlane.f32.xlu0 %v3413_v45 }
0x14d8   :  { %v7499_v46 = vpop.eup %7498 }
0x14d9   :  { %v7501_v19 = vpop.eup %7500  ;;  %v3422_v59 = vsel %vm96_vm0, %v7499_v46, 0.0 }
0x14da   :  { %3423 = vadd.xlane.f32.xlu1 %v3422_v59  ;;  %v3419_v15 = vsel %vm96_vm0, %v7501_v19, 0.0 }
0x14db   :  { %3420 = vadd.xlane.f32.xlu0 %v3419_v15 }
0x14dc   :  { %v7503_v36 = vpop.eup %7502 }
0x14dd   :  { %v7505_v21 = vpop.eup %7504  ;;  %v3428_v5 = vsel %vm96_vm0, %v7503_v36, 0.0 }
0x14de   :  { %3429 = vadd.xlane.f32.xlu1 %v3428_v5  ;;  %v3425_v23 = vsel %vm96_vm0, %v7505_v21, 0.0 }
0x14df   :  { %3426 = vadd.xlane.f32.xlu0 %v3425_v23 }
0x14ef   :  { %7254 = vrot.lane.b32.xlu1 %v8806_v9, %s9514_s10 }
0x14f3   :  { %7259 = vrot.lane.b32.xlu1 %v8813_v62, %s9514_s10 }
0x14f5   :  { %7249 = vrot.lane.b32.xlu0 %v8800_v17, %s9514_s10 }
0x14f7   :  { %3562 = vrot.lane.b32.xlu1 %v8793_v58, %s9514_s10 }
0x14f9   :  { %3564 = vrot.lane.b32.xlu0 %v8828_v55, %s9514_s10 }
0x14fb   :  { %3566 = vrot.lane.b32.xlu1 %v8831_v29, %s9514_s10 }
0x14fd   :  { %3568 = vrot.lane.b32.xlu0 %v8838_v40, %s9514_s10 }
0x14ff   :  { %3570 = vrot.lane.b32.xlu1 %v8841_v63, %s9514_s10 }
0x1501   :  { %3572 = vrot.lane.b32.xlu0 %v8848_v48, %s9514_s10 }
0x1563   :  { %v3418_v28 = vpop.xlane.xlu1 %3417 }
0x1564   :  { %7506 = vrcp.f32 %v3418_v28  ;;  %v3415_v30 = vpop.xlane.xlu0 %3414 }
0x1565   :  { %7508 = vrcp.f32 %v3415_v30 }
0x1567   :  { %v3424_v60 = vpop.xlane.xlu1 %3423 }
0x1568   :  { %7510 = vrcp.f32 %v3424_v60  ;;  %v3421_v1 = vpop.xlane.xlu0 %3420 }
0x1569   :  { %7512 = vrcp.f32 %v3421_v1 }
0x156b   :  { %v3430_v0 = vpop.xlane.xlu1 %3429 }
0x156c   :  { %7514 = vrcp.f32 %v3430_v0  ;;  %v3427_v39 = vpop.xlane.xlu0 %3426 }
0x156d   :  { %7516 = vrcp.f32 %v3427_v39 }
0x156e   :  { %v7507_v11 = vpop.eup %7506 }
0x156f   :  { %v7509_v38 = vpop.eup %7508  ;;  %v7255_v22 = vpop.permute.xlu1 %7254  ;;  %v3438_v10 = vmul.f32 %v7507_v11, %v7495_v35 }
0x1570   :  { %v7250_v52 = vpop.permute.xlu0 %7249  ;;  %v3437_v51 = vmul.f32 %v7509_v38, %v7497_v42  ;;  %v7257_v43 = vunpack.i.h.bf16 %v7255_v22  ;;  %v7256_v13 = vunpack.i.l.bf16 %v7255_v22 }
0x1571   :  { %v7252_v20 = vunpack.i.h.bf16 %v7250_v52  ;;  %v7251_v8 = vunpack.i.l.bf16 %v7250_v52 }
0x1572   :  { %v7511_v50 = vpop.eup %7510  ;;  %6524 = vmatprep.mubr.msk.f32.mxu0 %vm96_vm0, %v3437_v51  ;;  %v7009_v27 = vpack.c.bf16 %v7257_v43, %v7256_v13 }
0x1573   :  { %v7513_v56 = vpop.eup %7512  ;;  %v7003_v7 = vpack.c.bf16 %v7252_v20, %v7251_v8  ;;  %6525 = vmatmul.mubr.msk.f32.vlgmr.msra.gmra.mrb[66].mxu0 %vm96_vm0, %v3438_v10  ;;  %v7260_v4 = vpop.permute.xlu1 %7259  ;;  %v3440_v34 = vmul.f32 %v7511_v50, %v7499_v46 }
0x1574   :  { %v3439_v44 = vmul.f32 %v7513_v56, %v7501_v19  ;;  %v7262_v35 = vunpack.i.h.bf16 %v7260_v4  ;;  %v7261_v42 = vunpack.i.l.bf16 %v7260_v4  ;;  %v3565_v19 = vpop.permute.xlu0 %3564 }
0x1575   :  { %7005 = vmatprep.subr.msk.bf16.mxu0 %vm7995_vm3, %v7003_v7 }
0x1576   :  { %v7515_v33 = vpop.eup %7514  ;;  %6527 = vmatprep.mubr.msk.f32.mxu0 %vm96_vm0, %v3439_v44  ;;  %7008 = vmatpush3.bf16.xpose.msk.msra.mxu0 %vm7995_vm3, %v7003_v7  ;;  %v7015_v46 = vpack.c.bf16 %v7262_v35, %v7261_v42 }
0x1577   :  { %v7517_v24 = vpop.eup %7516  ;;  %6528 = vmatmul.mubr.msk.f32.gmra.mrb[68].mxu0 %vm96_vm0, %v3440_v34  ;;  %7011 = vmatprep.subr.msk.bf16.mxu0 %vm7995_vm3, %v7009_v27  ;;  %v3442_v41 = vmul.f32 %v7515_v33, %v7503_v36  ;;  %v3563_v45 = vpop.permute.xlu1 %3562 }
0x1578   :  { %v3441_v25 = vmul.f32 %v7517_v24, %v7505_v21  ;;  %v3569_v15 = vpop.permute.xlu0 %3568 }
0x157a   :  { %6530 = vmatprep.mubr.msk.f32.mxu0 %vm96_vm0, %v3441_v25 }
0x157b   :  { %6531 = vmatmul.mubr.msk.f32.gmra.mrb[70].mxu0 %vm96_vm0, %v3442_v41  ;;  %v3567_v59 = vpop.permute.xlu1 %3566 }
0x157c   :  { %6545 = vmatprep.mubr.msk.f32.mxu0 %vm658_vm2, %v3563_v45  ;;  %v3573_v21 = vpop.permute.xlu0 %3572 }
0x157e   :  { %7014 = vmatpush3.bf16.xpose.msk.msra.mxu0 %vm7995_vm3, %v7009_v27 }
0x157f   :  { %7017 = vmatprep.subr.msk.bf16.mxu0 %vm7995_vm3, %v7015_v46  ;;  %v3571_v36 = vpop.permute.xlu1 %3570 }
0x1586   :  { %7020 = vmatpush3.bf16.xpose.msk.msra.mxu0 %vm7995_vm3, %v7015_v46 }
0x158d   :  { %6546 = vmatmul.mubr.msk.f32.vlgmr.msra.gmra.mrb[72].mxu0 %vm658_vm2, %v3565_v19 }
0x158e   :  { %6548 = vmatprep.mubr.msk.f32.mxu0 %vm658_vm2, %v3567_v59 }
0x1591   :  { %6549 = vmatmul.mubr.msk.f32.gmra.mrb[74].mxu0 %vm658_vm2, %v3569_v15 }
0x1592   :  { %6551 = vmatprep.mubr.msk.f32.mxu0 %vm658_vm2, %v3571_v36 }
0x1595   :  { %6552 = vmatmul.mubr.msk.f32.gmra.mrb[76].mxu0 %vm658_vm2, %v3573_v21 }
0x1646   :  { %v6526_v5 = vpop.f32.mrb[66].mxu0 }
0x1647   :  { %3557 = vst.msk [vmem:[#allocation2 + $0x8] sm:$0xff] %vm658_vm2, %v6526_v5  ;;  %v3527_v23 = vpop.f32.mrb[67].mxu0 }
0x1648   :  { %3556 = vst.msk [vmem:[#allocation2] sm:$0xff] %vm658_vm2, %v3527_v23 }
0x164a   :  { %v6529_v28 = vpop.f32.mrb[68].mxu0 }
0x164b   :  { %3559 = vst.msk [vmem:[#allocation2 + $0x18] sm:$0xff] %vm658_vm2, %v6529_v28  ;;  %v3537_v30 = vpop.f32.mrb[69].mxu0 }
0x164c   :  { %3558 = vst.msk [vmem:[#allocation2 + $0x10] sm:$0xff] %vm658_vm2, %v3537_v30 }
0x164e   :  { %v6532_v60 = vpop.f32.mrb[70].mxu0 }
0x164f   :  { %3561 = vst.msk [vmem:[#allocation2 + $0x28] sm:$0xff] %vm658_vm2, %v6532_v60  ;;  %v3547_v1 = vpop.f32.mrb[71].mxu0 }
0x1650   :  { %3560 = vst.msk [vmem:[#allocation2 + $0x20] sm:$0xff] %vm658_vm2, %v3547_v1 }
0x1660   :  { %v6547_v0 = vpop.f32.mrb[72].mxu0 }
0x1661   :  { %v3706_v39 = vmul.f32 0.35355338, %v6547_v0  ;;  %v3676_v11 = vpop.f32.mrb[73].mxu0 }
0x1662   :  { %v3705_v38 = vmul.f32 0.35355338, %v3676_v11 }
0x1663   :  { %v3712_v22 = vadd.f32 %v8855_v61, %v3706_v39 }
0x1664   :  { %v3711_v10 = vadd.f32 %v8861_v54, %v3705_v38  ;;  %v6550_v52 = vpop.f32.mrb[74].mxu0 }
0x1665   :  { %v3708_v51 = vmul.f32 0.35355338, %v6550_v52  ;;  %v3686_v43 = vpop.f32.mrb[75].mxu0  ;;  %v3720_v13 = vsel %vm96_vm0, %v3712_v22, -inf }
0x1666   :  { %v3707_v20 = vmul.f32 0.35355338, %v3686_v43  ;;  %3721 = vmax.xlane.f32.xlu0 %v3720_v13  ;;  %v3717_v8 = vsel %vm96_vm0, %v3711_v10, -inf }
0x1667   :  { %v3714_v50 = vadd.f32 %v8869_v2, %v3708_v51  ;;  %3718 = vmax.xlane.f32.xlu1 %v3717_v8 }
0x1668   :  { %v6553_v56 = vpop.f32.mrb[76].mxu0  ;;  %v3713_v7 = vadd.f32 %v8875_v6, %v3707_v20 }
0x1669   :  { %v3710_v44 = vmul.f32 0.35355338, %v6553_v56  ;;  %v3696_v27 = vpop.f32.mrb[77].mxu0  ;;  %v3726_v4 = vsel %vm96_vm0, %v3714_v50, -inf }
0x166a   :  { %v3709_v34 = vmul.f32 0.35355338, %v3696_v27  ;;  %3727 = vmax.xlane.f32.xlu0 %v3726_v4  ;;  %v3723_v25 = vsel %vm96_vm0, %v3713_v7, -inf }
0x166b   :  { %v3716_v24 = vadd.f32 %v8883_v37, %v3710_v44 }
0x166c   :  { %v3715_v33 = vadd.f32 %v8889_v26, %v3709_v34 }
0x166d   :  { %v3732_v42 = vsel %vm96_vm0, %v3716_v24, -inf }
0x166e   :  { %3724 = vmax.xlane.f32.xlu0 %v3723_v25  ;;  %v3729_v35 = vsel %vm96_vm0, %v3715_v33, -inf }
0x166f   :  { %3730 = vmax.xlane.f32.xlu1 %v3729_v35 }
0x1672   :  { %3733 = vmax.xlane.f32.xlu0 %v3732_v42 }
0x1680   :  { %7264 = vrot.lane.b32.xlu1 %v8819_v3, %s9514_s10 }
0x1684   :  { %7274 = vrot.lane.b32.xlu1 %v8825_v49, %s9514_s10 }
0x1688   :  { %7269 = vrot.lane.b32.xlu0 %v8821_v32, %s9514_s10 }
0x16f3   :  { %v3722_v41 = vpop.xlane.xlu0 %3721 }
0x16f4   :  { %v3736_v45 = vsub.f32 %v3712_v22, %v3722_v41  ;;  %v3719_v46 = vpop.xlane.xlu1 %3718 }
0x16f5   :  { %v3735_v19 = vsub.f32 %v3711_v10, %v3719_v46 }
0x16f6   :  { %v3743_v59 = vmul.f32 1.442695, %v3736_v45 }
0x16f7   :  { %v3741_v15 = vmul.f32 1.442695, %v3735_v19  ;;  %v3728_v36 = vpop.xlane.xlu0 %3727 }
0x16f8   :  { %7518 = vpow2.f32 %v3743_v59  ;;  %v3738_v21 = vsub.f32 %v3714_v50, %v3728_v36 }
0x16f9   :  { %7520 = vpow2.f32 %v3741_v15 }
0x16fa   :  { %v3747_v5 = vmul.f32 1.442695, %v3738_v21 }
0x16fb   :  { %v3725_v23 = vpop.xlane.xlu0 %3724 }
0x16fc   :  { %7522 = vpow2.f32 %v3747_v5  ;;  %v3737_v28 = vsub.f32 %v3713_v7, %v3725_v23  ;;  %v3731_v30 = vpop.xlane.xlu1 %3730 }
0x16fd   :  { %v3739_v1 = vsub.f32 %v3715_v33, %v3731_v30 }
0x16fe   :  { %v3745_v60 = vmul.f32 1.442695, %v3737_v28 }
0x16ff   :  { %v3734_v0 = vpop.xlane.xlu0 %3733  ;;  %v3749_v52 = vmul.f32 1.442695, %v3739_v1 }
0x1700   :  { %7524 = vpow2.f32 %v3745_v60  ;;  %v3740_v39 = vsub.f32 %v3716_v24, %v3734_v0  ;;  %v7265_v11 = vpop.permute.xlu1 %7264 }
0x1701   :  { %v7267_v38 = vunpack.i.h.bf16 %v7265_v11  ;;  %v7266_v22 = vunpack.i.l.bf16 %v7265_v11 }
0x1702   :  { %v7519_v10 = vpop.eup %7518  ;;  %v3751_v51 = vmul.f32 1.442695, %v3740_v39 }
0x1703   :  { %v7521_v43 = vpop.eup %7520  ;;  %v7021_v13 = vpack.c.bf16 %v7267_v38, %v7266_v22  ;;  %v7270_v20 = vpop.permute.xlu0 %7269  ;;  %v3756_v8 = vsel %vm96_vm0, %v7519_v10, 0.0 }
0x1704   :  { %7526 = vpow2.f32 %v3751_v51  ;;  %v7272_v50 = vunpack.i.h.bf16 %v7270_v20  ;;  %v7271_v56 = vunpack.i.l.bf16 %v7270_v20  ;;  %3757 = vadd.xlane.f32.xlu0 %v3756_v8  ;;  %v7275_v7 = vpop.permute.xlu1 %7274  ;;  %v3753_v44 = vsel %vm96_vm0, %v7521_v43, 0.0 }
0x1705   :  { %v7277_v27 = vunpack.i.h.bf16 %v7275_v7  ;;  %v7276_v4 = vunpack.i.l.bf16 %v7275_v7  ;;  %3754 = vadd.xlane.f32.xlu1 %v3753_v44  ;;  %7022 = vmatprep.subr.bf16.mxu1 %v7021_v13  ;;  %7528 = vpow2.f32 %v3749_v52 }
0x1706   :  { %v7523_v34 = vpop.eup %7522  ;;  %v7025_v33 = vpack.c.bf16 %v7272_v50, %v7271_v56  ;;  %7024 = vmatpush3.bf16.msra.mxu1 %v7021_v13 }
0x1707   :  { %v3762_v24 = vsel %vm96_vm0, %v7523_v34, 0.0  ;;  %v7029_v25 = vpack.c.bf16 %v7277_v27, %v7276_v4 }
0x1708   :  { %3763 = vadd.xlane.f32.xlu0 %v3762_v24  ;;  %7026 = vmatprep.subr.bf16.mxu1 %v7025_v33 }
0x170a   :  { %v7525_v35 = vpop.eup %7524  ;;  %7028 = vmatpush3.bf16.msra.mxu1 %v7025_v33 }
0x170b   :  { %7030 = vmatprep.subr.bf16.mxu1 %v7029_v25  ;;  %v3759_v42 = vsel %vm96_vm0, %v7525_v35, 0.0 }
0x170c   :  { %3760 = vadd.xlane.f32.xlu1 %v3759_v42 }
0x170e   :  { %v7527_v41 = vpop.eup %7526  ;;  %7032 = vmatpush3.bf16.msra.mxu1 %v7029_v25 }
0x170f   :  { %v3768_v45 = vsel %vm96_vm0, %v7527_v41, 0.0  ;;  %v7529_v46 = vpop.eup %7528 }
0x1710   :  { %3769 = vadd.xlane.f32.xlu0 %v3768_v45  ;;  %v3765_v19 = vsel %vm96_vm0, %v7529_v46, 0.0 }
0x1714   :  { %3766 = vadd.xlane.f32.xlu0 %v3765_v19 }
0x171d   :  { %7284 = vrot.lane.b32.xlu1 %v8806_v9, %s9515_s6 }
0x1721   :  { %7289 = vrot.lane.b32.xlu1 %v8813_v62, %s9515_s6 }
0x1725   :  { %3950 = vrot.lane.b32.xlu1 %v8793_v58, %s9515_s6 }
0x1729   :  { %3952 = vrot.lane.b32.xlu1 %v8828_v55, %s9515_s6 }
0x172a   :  { %7279 = vrot.lane.b32.xlu0 %v8800_v17, %s9515_s6 }
0x172d   :  { %3954 = vrot.lane.b32.xlu1 %v8831_v29, %s9515_s6 }
0x172e   :  { %3956 = vrot.lane.b32.xlu0 %v8838_v40, %s9515_s6 }
0x1731   :  { %3958 = vrot.lane.b32.xlu1 %v8841_v63, %s9515_s6 }
0x1732   :  { %3960 = vrot.lane.b32.xlu0 %v8848_v48, %s9515_s6 }
0x1791   :  { %v3758_v59 = vpop.xlane.xlu0 %3757 }
0x1792   :  { %7530 = vrcp.f32 %v3758_v59  ;;  %v3755_v15 = vpop.xlane.xlu1 %3754 }
0x1793   :  { %7532 = vrcp.f32 %v3755_v15 }
0x1795   :  { %v3764_v36 = vpop.xlane.xlu0 %3763 }
0x1796   :  { %7534 = vrcp.f32 %v3764_v36 }
0x1799   :  { %v3761_v21 = vpop.xlane.xlu1 %3760 }
0x179a   :  { %7536 = vrcp.f32 %v3761_v21 }
0x179c   :  { %v7531_v5 = vpop.eup %7530 }
0x179d   :  { %v7533_v23 = vpop.eup %7532  ;;  %v3770_v28 = vpop.xlane.xlu0 %3769  ;;  %v3778_v60 = vmul.f32 %v7531_v5, %v7519_v10 }
0x179e   :  { %v3777_v30 = vmul.f32 %v7533_v23, %v7521_v43  ;;  %7538 = vrcp.f32 %v3770_v28  ;;  %v7285_v0 = vpop.permute.xlu1 %7284 }
0x179f   :  { %v7287_v38 = vunpack.i.h.bf16 %v7285_v0  ;;  %v7286_v51 = vunpack.i.l.bf16 %v7285_v0 }
0x17a0   :  { %6566 = vmatprep.mubr.msk.f32.mxu1 %vm96_vm0, %v3777_v30  ;;  %v7535_v39 = vpop.eup %7534 }
0x17a1   :  { %v3767_v1 = vpop.xlane.xlu0 %3766  ;;  %6567 = vmatmul.mubr.msk.f32.vlgmr.msra.gmra.mrb[48].mxu1 %vm96_vm0, %v3778_v60  ;;  %v3780_v8 = vmul.f32 %v7535_v39, %v7523_v34  ;;  %v7039_v43 = vpack.c.bf16 %v7287_v38, %v7286_v51 }
0x17a2   :  { %7540 = vrcp.f32 %v3767_v1  ;;  %v7290_v50 = vpop.permute.xlu1 %7289 }
0x17a3   :  { %v7292_v27 = vunpack.i.h.bf16 %v7290_v50  ;;  %v7291_v4 = vunpack.i.l.bf16 %v7290_v50 }
0x17a4   :  { %v7537_v11 = vpop.eup %7536 }
0x17a5   :  { %v7280_v22 = vpop.permute.xlu0 %7279  ;;  %v3779_v52 = vmul.f32 %v7537_v11, %v7525_v35  ;;  %v7045_v24 = vpack.c.bf16 %v7292_v27, %v7291_v4 }
0x17a6   :  { %v7282_v13 = vunpack.i.h.bf16 %v7280_v22  ;;  %v7281_v20 = vunpack.i.l.bf16 %v7280_v22  ;;  %v3951_v33 = vpop.permute.xlu1 %3950 }
0x17a7   :  { %6569 = vmatprep.mubr.msk.f32.mxu1 %vm96_vm0, %v3779_v52 }
0x17a8   :  { %v7033_v10 = vpack.c.bf16 %v7282_v13, %v7281_v20  ;;  %6570 = vmatmul.mubr.msk.f32.gmra.mrb[50].mxu1 %vm96_vm0, %v3780_v8  ;;  %v7539_v56 = vpop.eup %7538 }
0x17a9   :  { %v3782_v34 = vmul.f32 %v7539_v56, %v7527_v41  ;;  %v3957_v42 = vpop.permute.xlu0 %3956 }
0x17aa   :  { %7035 = vmatprep.subr.msk.bf16.mxu1 %vm7995_vm3, %v7033_v10  ;;  %v3953_v25 = vpop.permute.xlu1 %3952 }
0x17ab   :  { %7038 = vmatpush3.bf16.xpose.msk.msra.mxu1 %vm7995_vm3, %v7033_v10 }
0x17ac   :  { %v7541_v7 = vpop.eup %7540  ;;  %7041 = vmatprep.subr.msk.bf16.mxu1 %vm7995_vm3, %v7039_v43 }
0x17ad   :  { %v3781_v44 = vmul.f32 %v7541_v7, %v7529_v46  ;;  %v3961_v45 = vpop.permute.xlu0 %3960 }
0x17ae   :  { %v3955_v35 = vpop.permute.xlu1 %3954 }
0x17af   :  { %6572 = vmatprep.mubr.msk.f32.mxu1 %vm96_vm0, %v3781_v44 }
0x17b0   :  { %6573 = vmatmul.mubr.msk.f32.gmra.mrb[52].mxu1 %vm96_vm0, %v3782_v34 }
0x17b1   :  { %6587 = vmatprep.mubr.msk.f32.mxu1 %vm658_vm2, %v3951_v33 }
0x17b2   :  { %v3959_v41 = vpop.permute.xlu1 %3958 }
0x17b3   :  { %7044 = vmatpush3.bf16.xpose.msk.msra.mxu1 %vm7995_vm3, %v7039_v43 }
0x17b4   :  { %7047 = vmatprep.subr.msk.bf16.mxu1 %vm7995_vm3, %v7045_v24 }
0x17bb   :  { %7050 = vmatpush3.bf16.xpose.msk.msra.mxu1 %vm7995_vm3, %v7045_v24 }
0x17c2   :  { %6588 = vmatmul.mubr.msk.f32.vlgmr.msra.gmra.mrb[54].mxu1 %vm658_vm2, %v3953_v25 }
0x17c3   :  { %6590 = vmatprep.mubr.msk.f32.mxu1 %vm658_vm2, %v3955_v35 }
0x17c6   :  { %6591 = vmatmul.mubr.msk.f32.gmra.mrb[56].mxu1 %vm658_vm2, %v3957_v42 }
0x17c7   :  { %6593 = vmatprep.mubr.msk.f32.mxu1 %vm658_vm2, %v3959_v41 }
0x17ca   :  { %6594 = vmatmul.mubr.msk.f32.gmra.mrb[58].mxu1 %vm658_vm2, %v3961_v45 }
0x1874   :  { %v9014_v46 = vpop.f32.mrb[48].mxu1 }
0x1875   :  { %v9016_v19 = vpop.f32.mrb[49].mxu1 }
0x187b   :  { %v9018_v59 = vpop.f32.mrb[50].mxu1 }
0x187c   :  { %v9020_v15 = vpop.f32.mrb[51].mxu1 }
0x1883   :  { %v9022_v36 = vpop.f32.mrb[52].mxu1 }
0x1884   :  { %v9024_v21 = vpop.f32.mrb[53].mxu1 }
0x1895   :  { %v6589_v5 = vpop.f32.mrb[54].mxu1 }
0x1896   :  { %v4094_v23 = vmul.f32 0.35355338, %v6589_v5  ;;  %v4064_v28 = vpop.f32.mrb[55].mxu1 }
0x1897   :  { %v4093_v30 = vmul.f32 0.35355338, %v4064_v28 }
0x1898   :  { %v4100_v60 = vadd.f32 %v8855_v61, %v4094_v23 }
0x1899   :  { %v4099_v1 = vadd.f32 %v8861_v54, %v4093_v30  ;;  %v6592_v0 = vpop.f32.mrb[56].mxu1 }
0x189a   :  { %v4096_v39 = vmul.f32 0.35355338, %v6592_v0  ;;  %v4074_v11 = vpop.f32.mrb[57].mxu1  ;;  %v4108_v38 = vsel %vm96_vm0, %v4100_v60, -inf }
0x189b   :  { %v4095_v22 = vmul.f32 0.35355338, %v4074_v11  ;;  %4109 = vmax.xlane.f32.xlu0 %v4108_v38  ;;  %v4105_v52 = vsel %vm96_vm0, %v4099_v1, -inf }
0x189c   :  { %v4102_v51 = vadd.f32 %v8869_v2, %v4096_v39  ;;  %4106 = vmax.xlane.f32.xlu1 %v4105_v52 }
0x189d   :  { %v6595_v13 = vpop.f32.mrb[58].mxu1  ;;  %v4101_v20 = vadd.f32 %v8875_v6, %v4095_v22 }
0x189e   :  { %v4098_v8 = vmul.f32 0.35355338, %v6595_v13  ;;  %v4084_v10 = vpop.f32.mrb[59].mxu1  ;;  %v4114_v43 = vsel %vm96_vm0, %v4102_v51, -inf }
0x189f   :  { %v4097_v50 = vmul.f32 0.35355338, %v4084_v10  ;;  %4115 = vmax.xlane.f32.xlu0 %v4114_v43  ;;  %v4111_v44 = vsel %vm96_vm0, %v4101_v20, -inf }
0x18a0   :  { %v4104_v7 = vadd.f32 %v8883_v37, %v4098_v8 }
0x18a1   :  { %v4103_v56 = vadd.f32 %v8889_v26, %v4097_v50 }
0x18a2   :  { %v4120_v4 = vsel %vm96_vm0, %v4104_v7, -inf }
0x18a3   :  { %4112 = vmax.xlane.f32.xlu0 %v4111_v44  ;;  %v4117_v27 = vsel %vm96_vm0, %v4103_v56, -inf }
0x18a4   :  { %4118 = vmax.xlane.f32.xlu1 %v4117_v27 }
0x18a7   :  { %4121 = vmax.xlane.f32.xlu0 %v4120_v4 }
0x18b5   :  { %7294 = vrot.lane.b32.xlu1 %v8819_v3, %s9515_s6 }
0x18b9   :  { %7304 = vrot.lane.b32.xlu1 %v8825_v49, %s9515_s6 }
0x18bd   :  { %7299 = vrot.lane.b32.xlu0 %v8821_v32, %s9515_s6 }
0x1928   :  { %v4110_v26 = vpop.xlane.xlu0 %4109 }
0x1929   :  { %v4124_v37 = vsub.f32 %v4100_v60, %v4110_v26  ;;  %v4107_v34 = vpop.xlane.xlu1 %4106 }
0x192a   :  { %v4123_v33 = vsub.f32 %v4099_v1, %v4107_v34 }
0x192b   :  { %v4131_v24 = vmul.f32 1.442695, %v4124_v37 }
0x192c   :  { %v4129_v25 = vmul.f32 1.442695, %v4123_v33  ;;  %v4116_v35 = vpop.xlane.xlu0 %4115 }
0x192d   :  { %7542 = vpow2.f32 %v4131_v24  ;;  %v4126_v42 = vsub.f32 %v4102_v51, %v4116_v35 }
0x192e   :  { %7544 = vpow2.f32 %v4129_v25 }
0x192f   :  { %v4135_v41 = vmul.f32 1.442695, %v4126_v42 }
0x1930   :  { %v4113_v45 = vpop.xlane.xlu0 %4112 }
0x1931   :  { %7546 = vpow2.f32 %v4135_v41  ;;  %v4125_v5 = vsub.f32 %v4101_v20, %v4113_v45  ;;  %v4119_v23 = vpop.xlane.xlu1 %4118 }
0x1932   :  { %v4127_v30 = vsub.f32 %v4103_v56, %v4119_v23 }
0x1933   :  { %v4133_v28 = vmul.f32 1.442695, %v4125_v5 }
0x1934   :  { %v4122_v0 = vpop.xlane.xlu0 %4121  ;;  %v4137_v22 = vmul.f32 1.442695, %v4127_v30 }
0x1935   :  { %7548 = vpow2.f32 %v4133_v28  ;;  %v4128_v39 = vsub.f32 %v4104_v7, %v4122_v0  ;;  %v7295_v11 = vpop.permute.xlu1 %7294 }
0x1936   :  { %v7297_v60 = vunpack.i.h.bf16 %v7295_v11  ;;  %v7296_v38 = vunpack.i.l.bf16 %v7295_v11 }
0x1937   :  { %v7543_v1 = vpop.eup %7542  ;;  %v4139_v52 = vmul.f32 1.442695, %v4128_v39 }
0x1938   :  { %v7545_v13 = vpop.eup %7544  ;;  %v7051_v8 = vpack.c.bf16 %v7297_v60, %v7296_v38  ;;  %v7300_v51 = vpop.permute.xlu0 %7299  ;;  %v4144_v10 = vsel %vm96_vm0, %v7543_v1, 0.0 }
0x1939   :  { %7550 = vpow2.f32 %v4139_v52  ;;  %v7302_v43 = vunpack.i.h.bf16 %v7300_v51  ;;  %v7301_v20 = vunpack.i.l.bf16 %v7300_v51  ;;  %4145 = vadd.xlane.f32.xlu0 %v4144_v10  ;;  %v7305_v50 = vpop.permute.xlu1 %7304  ;;  %v4141_v56 = vsel %vm96_vm0, %v7545_v13, 0.0 }
0x193a   :  { %v7307_v44 = vunpack.i.h.bf16 %v7305_v50  ;;  %v7306_v7 = vunpack.i.l.bf16 %v7305_v50  ;;  %4142 = vadd.xlane.f32.xlu1 %v4141_v56  ;;  %7052 = vmatprep.subr.bf16.mxu0 %v7051_v8  ;;  %7552 = vpow2.f32 %v4137_v22 }
0x193b   :  { %v7547_v27 = vpop.eup %7546  ;;  %v7055_v4 = vpack.c.bf16 %v7302_v43, %v7301_v20  ;;  %7054 = vmatpush3.bf16.msra.mxu0 %v7051_v8 }
0x193c   :  { %v4150_v26 = vsel %vm96_vm0, %v7547_v27, 0.0  ;;  %v7059_v37 = vpack.c.bf16 %v7307_v44, %v7306_v7 }
0x193d   :  { %4151 = vadd.xlane.f32.xlu0 %v4150_v26  ;;  %7056 = vmatprep.subr.bf16.mxu0 %v7055_v4 }
0x193f   :  { %v7549_v34 = vpop.eup %7548  ;;  %7058 = vmatpush3.bf16.msra.mxu0 %v7055_v4 }
0x1940   :  { %7060 = vmatprep.subr.bf16.mxu0 %v7059_v37  ;;  %v4147_v33 = vsel %vm96_vm0, %v7549_v34, 0.0 }
0x1941   :  { %4148 = vadd.xlane.f32.xlu1 %v4147_v33 }
0x1943   :  { %v7551_v24 = vpop.eup %7550  ;;  %7062 = vmatpush3.bf16.msra.mxu0 %v7059_v37 }
0x1944   :  { %v4156_v25 = vsel %vm96_vm0, %v7551_v24, 0.0  ;;  %v7553_v35 = vpop.eup %7552 }
0x1945   :  { %4157 = vadd.xlane.f32.xlu0 %v4156_v25  ;;  %v4153_v42 = vsel %vm96_vm0, %v7553_v35, 0.0 }
0x1949   :  { %4154 = vadd.xlane.f32.xlu0 %v4153_v42 }
0x1952   :  { %7314 = vrot.lane.b32.xlu1 %v8806_v9, %s9516_s0 }
0x1956   :  { %7319 = vrot.lane.b32.xlu1 %v8813_v62, %s9516_s0 }
0x195a   :  { %4332 = vrot.lane.b32.xlu1 %v8793_v58, %s9516_s0 }
0x195e   :  { %4334 = vrot.lane.b32.xlu1 %v8828_v55, %s9516_s0 }
0x195f   :  { %7309 = vrot.lane.b32.xlu0 %v8800_v17, %s9516_s0 }
0x1962   :  { %4336 = vrot.lane.b32.xlu1 %v8831_v29, %s9516_s0 }
0x1963   :  { %4338 = vrot.lane.b32.xlu0 %v8838_v40, %s9516_s0 }
0x1966   :  { %4340 = vrot.lane.b32.xlu1 %v8841_v63, %s9516_s0 }
0x1967   :  { %4342 = vrot.lane.b32.xlu0 %v8848_v48, %s9516_s0 }
0x19c6   :  { %v4146_v9 = vpop.xlane.xlu0 %4145 }
0x19c7   :  { %7554 = vrcp.f32 %v4146_v9  ;;  %v4143_v58 = vpop.xlane.xlu1 %4142 }
0x19c8   :  { %7556 = vrcp.f32 %v4143_v58 }
0x19ca   :  { %v4152_v62 = vpop.xlane.xlu0 %4151 }
0x19cb   :  { %7558 = vrcp.f32 %v4152_v62 }
0x19ce   :  { %v4149_v55 = vpop.xlane.xlu1 %4148 }
0x19cf   :  { %7560 = vrcp.f32 %v4149_v55 }
0x19d1   :  { %v7555_v17 = vpop.eup %7554 }
0x19d2   :  { %v7557_v41 = vpop.eup %7556  ;;  %v4158_v29 = vpop.xlane.xlu0 %4157  ;;  %v4166_v5 = vmul.f32 %v7555_v17, %v7543_v1 }
0x19d3   :  { %v4165_v45 = vmul.f32 %v7557_v41, %v7545_v13  ;;  %7562 = vrcp.f32 %v4158_v29  ;;  %v7315_v63 = vpop.permute.xlu1 %7314 }
0x19d4   :  { %v7317_v28 = vunpack.i.h.bf16 %v7315_v63  ;;  %v7316_v39 = vunpack.i.l.bf16 %v7315_v63 }
0x19d5   :  { %6608 = vmatprep.mubr.msk.f32.mxu0 %vm96_vm0, %v4165_v45  ;;  %v7559_v48 = vpop.eup %7558 }
0x19d6   :  { %v4155_v40 = vpop.xlane.xlu0 %4154  ;;  %6609 = vmatmul.mubr.msk.f32.vlgmr.msra.gmra.mrb[78].mxu0 %vm96_vm0, %v4166_v5  ;;  %v4168_v38 = vmul.f32 %v7559_v48, %v7547_v27  ;;  %v7069_v22 = vpack.c.bf16 %v7317_v28, %v7316_v39 }
0x19d7   :  { %7564 = vrcp.f32 %v4155_v40  ;;  %v7320_v52 = vpop.permute.xlu1 %7319 }
0x19d8   :  { %v7322_v10 = vunpack.i.h.bf16 %v7320_v52  ;;  %v7321_v43 = vunpack.i.l.bf16 %v7320_v52 }
0x19d9   :  { %v7561_v23 = vpop.eup %7560 }
0x19da   :  { %v7310_v30 = vpop.permute.xlu0 %7309  ;;  %v4167_v0 = vmul.f32 %v7561_v23, %v7549_v34  ;;  %v7075_v56 = vpack.c.bf16 %v7322_v10, %v7321_v43 }
0x19db   :  { %v7312_v11 = vunpack.i.h.bf16 %v7310_v30  ;;  %v7311_v60 = vunpack.i.l.bf16 %v7310_v30  ;;  %v4333_v50 = vpop.permute.xlu1 %4332 }
0x19dc   :  { %6611 = vmatprep.mubr.msk.f32.mxu0 %vm96_vm0, %v4167_v0 }
0x19dd   :  { %v7063_v1 = vpack.c.bf16 %v7312_v11, %v7311_v60  ;;  %6612 = vmatmul.mubr.msk.f32.gmra.mrb[80].mxu0 %vm96_vm0, %v4168_v38  ;;  %v7563_v13 = vpop.eup %7562 }
0x19de   :  { %v4170_v20 = vmul.f32 %v7563_v13, %v7551_v24  ;;  %v4339_v27 = vpop.permute.xlu0 %4338 }
0x19df   :  { %7065 = vmatprep.subr.msk.bf16.mxu0 %vm7995_vm3, %v7063_v1  ;;  %v4335_v44 = vpop.permute.xlu1 %4334 }
0x19e0   :  { %7068 = vmatpush3.bf16.xpose.msk.msra.mxu0 %vm7995_vm3, %v7063_v1 }
0x19e1   :  { %v7565_v8 = vpop.eup %7564  ;;  %7071 = vmatprep.subr.msk.bf16.mxu0 %vm7995_vm3, %v7069_v22 }
0x19e2   :  { %v4169_v51 = vmul.f32 %v7565_v8, %v7553_v35  ;;  %v4343_v26 = vpop.permute.xlu0 %4342 }
0x19e3   :  { %v4337_v7 = vpop.permute.xlu1 %4336 }
0x19e4   :  { %6614 = vmatprep.mubr.msk.f32.mxu0 %vm96_vm0, %v4169_v51 }
0x19e5   :  { %6615 = vmatmul.mubr.msk.f32.gmra.mrb[82].mxu0 %vm96_vm0, %v4170_v20 }
0x19e6   :  { %6629 = vmatprep.mubr.msk.f32.mxu0 %vm658_vm2, %v4333_v50 }
0x19e7   :  { %v4341_v4 = vpop.permute.xlu1 %4340 }
0x19e8   :  { %7074 = vmatpush3.bf16.xpose.msk.msra.mxu0 %vm7995_vm3, %v7069_v22 }
0x19e9   :  { %7077 = vmatprep.subr.msk.bf16.mxu0 %vm7995_vm3, %v7075_v56 }
0x19f0   :  { %7080 = vmatpush3.bf16.xpose.msk.msra.mxu0 %vm7995_vm3, %v7075_v56  ;;  %vm5364_vm3 = vcmask 254976  }
0x19f7   :  { %6630 = vmatmul.mubr.msk.f32.vlgmr.msra.gmra.mrb[84].mxu0 %vm658_vm2, %v4335_v44 }
0x19f8   :  { %6632 = vmatprep.mubr.msk.f32.mxu0 %vm658_vm2, %v4337_v7 }
0x19fb   :  { %6633 = vmatmul.mubr.msk.f32.gmra.mrb[86].mxu0 %vm658_vm2, %v4339_v27 }
0x19fc   :  { %6635 = vmatprep.mubr.msk.f32.mxu0 %vm658_vm2, %v4341_v4 }
0x19ff   :  { %6636 = vmatmul.mubr.msk.f32.gmra.mrb[88].mxu0 %vm658_vm2, %v4343_v26  ;;  %vm5358_vm2 = vcmask 253952  }
0x1aa9   :  { %v9092_v37 = vpop.f32.mrb[78].mxu0 }
0x1aaa   :  { %v9094_v34 = vpop.f32.mrb[79].mxu0 }
0x1ab0   :  { %v9096_v18 = vpop.f32.mrb[80].mxu0 }
0x1ab1   :  { %v9098_v33 = vpop.f32.mrb[81].mxu0 }
0x1ab8   :  { %v9100_v24 = vpop.f32.mrb[82].mxu0 }
0x1ab9   :  { %v9102_v25 = vpop.f32.mrb[83].mxu0 }
0x1aca   :  { %v6631_v35 = vpop.f32.mrb[84].mxu0 }
0x1acb   :  { %v4476_v42 = vmul.f32 0.35355338, %v6631_v35  ;;  %v4446_v9 = vpop.f32.mrb[85].mxu0 }
0x1acc   :  { %v4475_v58 = vmul.f32 0.35355338, %v4446_v9 }
0x1acd   :  { %v4482_v62 = vadd.f32 %v8855_v61, %v4476_v42  ;;  %v7634_v42 = vld [vmem:[%s9513_s8 + $0x20] sm:$0xff] }
0x1ace   :  { %v4481_v55 = vadd.f32 %v8861_v54, %v4475_v58  ;;  %v6634_v17 = vpop.f32.mrb[86].mxu0  ;;  %v7635_v58 = vld [vmem:[%s9513_s8 + $0x28] sm:$0xff] }
0x1acf   :  { %v4456_v41 = vpop.f32.mrb[87].mxu0  ;;  %v4490_v29 = vsel %vm96_vm0, %v4482_v62, -inf  ;;  %v4478_v45 = vmul.f32 0.35355338, %v6634_v17 }
0x1ad0   :  { %v4477_v5 = vmul.f32 0.35355338, %v4456_v41  ;;  %4491 = vmax.xlane.f32.xlu0 %v4490_v29  ;;  %v4487_v40 = vsel %vm96_vm0, %v4481_v55, -inf }
0x1ad1   :  { %4488 = vmax.xlane.f32.xlu1 %v4487_v40  ;;  %v4484_v28 = vadd.f32 %v8869_v2, %v4478_v45 }
0x1ad2   :  { %v4483_v63 = vadd.f32 %v8875_v6, %v4477_v5  ;;  %v6637_v48 = vpop.f32.mrb[88].mxu0 }
0x1ad3   :  { %v4466_v23 = vpop.f32.mrb[89].mxu0  ;;  %v4496_v54 = vsel %vm96_vm0, %v4484_v28, -inf  ;;  %v4480_v35 = vmul.f32 0.35355338, %v6637_v48 }
0x1ad4   :  { %v4493_v61 = vsel %vm96_vm0, %v4483_v63, -inf  ;;  %v4479_v26 = vmul.f32 0.35355338, %v4466_v23 }
0x1ad5   :  { %4494 = vmax.xlane.f32.xlu0 %v4493_v61 }
0x1ad6   :  { %v4485_v9 = vadd.f32 %v7634_v42, %v4479_v26  ;;  %v5724_v26 = vld [vmem:[%s9458_s12 + $0x30] sm:$0xff] }
0x1ad9   :  { %4497 = vmax.xlane.f32.xlu0 %v4496_v54 }
0x1ae2   :  { %7324 = vrot.lane.b32.xlu1 %v8819_v3, %s9516_s0 }
0x1b5d   :  { %v4492_v30 = vpop.xlane.xlu0 %4491 }
0x1b5e   :  { %v4506_v0 = vsub.f32 %v4482_v62, %v4492_v30  ;;  %v4489_v39 = vpop.xlane.xlu1 %4488  ;;  %v4486_v62 = vadd.f32 %v7635_v58, %v4480_v35  ;;  %v5725_v35 = vld [vmem:[%s9458_s12 + $0x38] sm:$0xff] }
0x1b5f   :  { %v4505_v11 = vsub.f32 %v4481_v55, %v4489_v39  ;;  %v4499_v55 = vsel %vm96_vm0, %v4485_v9, -inf  ;;  %v7097_v42 = vpack.c.bf16 %v5725_v35, %v5724_v26  ;;  %v5739_v26 = vld [vmem:[%s9462_s16 + $0x28] sm:$0xff] }
0x1b60   :  { %v4513_v60 = vmul.f32 1.442695, %v4506_v0 }
0x1b61   :  { %v4511_v38 = vmul.f32 1.442695, %v4505_v11 }
0x1b62   :  { %7566 = vpow2.f32 %v4513_v60  ;;  %v7325_v6 = vpop.permute.xlu1 %7324  ;;  %v4495_v1 = vpop.xlane.xlu0 %4494 }
0x1b63   :  { %7568 = vpow2.f32 %v4511_v38  ;;  %v7327_v2 = vunpack.i.h.bf16 %v7325_v6  ;;  %v7326_v22 = vunpack.i.l.bf16 %v7325_v6  ;;  %v4507_v52 = vsub.f32 %v4483_v63, %v4495_v1 }
0x1b65   :  { %v7081_v13 = vpack.c.bf16 %v7327_v2, %v7326_v22  ;;  %v4515_v8 = vmul.f32 1.442695, %v4507_v52 }
0x1b66   :  { %v4498_v51 = vpop.xlane.xlu0 %4497 }
0x1b67   :  { %7570 = vpow2.f32 %v4515_v8  ;;  %v4508_v10 = vsub.f32 %v4484_v28, %v4498_v51  ;;  %7082 = vmatprep.subr.bf16.mxu1 %v7081_v13 }
0x1b68   :  { %7084 = vmatpush3.bf16.msra.mxu1 %v7081_v13 }
0x1b69   :  { %v4517_v3 = vmul.f32 1.442695, %v4508_v10 }
0x1b6b   :  { %7572 = vpow2.f32 %v4517_v3 }
0x1b6c   :  { %v7567_v43 = vpop.eup %7566 }
0x1b6d   :  { %v7569_v20 = vpop.eup %7568  ;;  %v4526_v50 = vsel %vm96_vm0, %v7567_v43, 0.0 }
0x1b6e   :  { %4527 = vadd.xlane.f32.xlu0 %v4526_v50  ;;  %v4523_v56 = vsel %vm96_vm0, %v7569_v20, 0.0  ;;  %v5723_v50 = vld [vmem:[%s9458_s12 + $0x28] sm:$0xff] }
0x1b6f   :  { %4524 = vadd.xlane.f32.xlu1 %v4523_v56 }
0x1b71   :  { %v7571_v44 = vpop.eup %7570 }
0x1b72   :  { %v4529_v7 = vsel %vm96_vm0, %v7571_v44, 0.0 }
0x1b73   :  { %4530 = vadd.xlane.f32.xlu1 %v4529_v7 }
0x1b75   :  { %v7573_v27 = vpop.eup %7572 }
0x1b76   :  { %v4532_v4 = vsel %vm96_vm0, %v7573_v27, 0.0 }
0x1b77   :  { %4533 = vadd.xlane.f32.xlu0 %v4532_v4 }
0x1b84   :  { %7334 = vrot.lane.b32.xlu1 %v8825_v49, %s9516_s0  ;;  %v4502_v49 = vsel %vm96_vm0, %v4486_v62, -inf }
0x1b8d   :  { %7329 = vrot.lane.b32.xlu0 %v8821_v32, %s9516_s0 }
0x1ba8   :  { %4500 = vmax.xlane.f32.xlu1 %v4499_v55 }
0x1bac   :  { %4503 = vmax.xlane.f32.xlu0 %v4502_v49 }
0x1bb9   :  { %3928 = vrot.lane.b32.xlu1 %v9014_v46, %s9517_s29 }
0x1bbd   :  { %4308 = vrot.lane.b32.xlu1 %v9094_v34, %s9518_s2 }
0x1bc1   :  { %4310 = vrot.lane.b32.xlu1 %v9092_v37, %s9518_s2 }
0x1bc2   :  { %3926 = vrot.lane.b32.xlu0 %v9016_v19, %s9517_s29 }
0x1bc5   :  { %3932 = vrot.lane.b32.xlu1 %v9018_v59, %s9517_s29 }
0x1bc6   :  { %3930 = vrot.lane.b32.xlu0 %v9020_v15, %s9517_s29 }
0x1bc9   :  { %4314 = vrot.lane.b32.xlu1 %v9096_v18, %s9518_s2 }
0x1bca   :  { %4312 = vrot.lane.b32.xlu0 %v9098_v33, %s9518_s2 }
0x1bfb   :  { %v4528_v46 = vpop.xlane.xlu0 %4527 }
0x1bfc   :  { %v4525_v32 = vpop.xlane.xlu1 %4524 }
0x1bfd   :  { %7574 = vrcp.f32 %v4525_v32 }
0x1bfe   :  { %7576 = vrcp.f32 %v4528_v46 }
0x1c00   :  { %v4531_v34 = vpop.xlane.xlu1 %4530 }
0x1c01   :  { %7578 = vrcp.f32 %v4531_v34 }
0x1c04   :  { %v4534_v37 = vpop.xlane.xlu0 %4533  ;;  %v7335_v17 = vpop.permute.xlu1 %7334 }
0x1c05   :  { %v7337_v29 = vunpack.i.h.bf16 %v7335_v17  ;;  %v7336_v45 = vunpack.i.l.bf16 %v7335_v17  ;;  %7580 = vrcp.f32 %v4534_v37 }
0x1c07   :  { %v7575_v19 = vpop.eup %7574  ;;  %v7089_v33 = vpack.c.bf16 %v7337_v29, %v7336_v45 }
0x1c08   :  { %v7330_v41 = vpop.permute.xlu0 %7329  ;;  %v4547_v59 = vmul.f32 %v7575_v19, %v7569_v20  ;;  %v7577_v40 = vpop.eup %7576  ;;  %v5722_v20 = vld [vmem:[%s9458_s12 + $0x20] sm:$0xff] }
0x1c09   :  { %v7332_v15 = vunpack.i.h.bf16 %v7330_v41  ;;  %v7331_v5 = vunpack.i.l.bf16 %v7330_v41  ;;  %v4548_v48 = vmul.f32 %v7577_v40, %v7567_v43  ;;  %v7093_v56 = vpack.c.bf16 %v5723_v50, %v5722_v20 }
0x1c0a   :  { %6650 = vmatprep.mubr.msk.f32.mxu1 %vm96_vm0, %v4547_v59 }
0x1c0b   :  { %v7085_v18 = vpack.c.bf16 %v7332_v15, %v7331_v5  ;;  %v7579_v63 = vpop.eup %7578  ;;  %v9189_v5 = vld [vmem:[%s9459_s13 + $0x1] ss:$0 sm:$0xff] }
0x1c0c   :  { %v4549_v28 = vmul.f32 %v7579_v63, %v7571_v44 }
0x1c0d   :  { %7086 = vmatprep.subr.bf16.mxu1 %v7085_v18 }
0x1c0e   :  { %7088 = vmatpush3.bf16.msra.mxu1 %v7085_v18 }
0x1c0f   :  { %7090 = vmatprep.subr.bf16.mxu1 %v7089_v33  ;;  %v7581_v23 = vpop.eup %7580 }
0x1c10   :  { %v4550_v61 = vmul.f32 %v7581_v23, %v7573_v27 }
0x1c12   :  { %7092 = vmatpush3.bf16.msra.mxu1 %v7089_v33 }
0x1c13   :  { %7094 = vmatprep.subr.bf16.mxu1 %v7093_v56 }
0x1c15   :  { %6651 = vmatmul.mubr.msk.f32.vlgmr.msra.gmra.mrb[60].mxu1 %vm96_vm0, %v4548_v48 }
0x1c16   :  { %6653 = vmatprep.mubr.msk.f32.mxu1 %vm96_vm0, %v4549_v28  ;;  %7096 = vmatpush3.bf16.msra.mxu1 %v7093_v56 }
0x1c17   :  { %7098 = vmatprep.subr.bf16.mxu1 %v7097_v42 }
0x1c19   :  { %6654 = vmatmul.mubr.msk.f32.gmra.mrb[62].mxu1 %vm96_vm0, %v4550_v61 }
0x1c1a   :  { %7100 = vmatpush3.bf16.msra.mxu1 %v7097_v42 }
0x1c35   :  { %v4501_v54 = vpop.xlane.xlu1 %4500 }
0x1c36   :  { %v4509_v30 = vsub.f32 %v4485_v9, %v4501_v54 }
0x1c38   :  { %v4519_v0 = vmul.f32 1.442695, %v4509_v30 }
0x1c39   :  { %v4504_v39 = vpop.xlane.xlu0 %4503  ;;  %v3929_v11 = vpop.permute.xlu1 %3928 }
0x1c3a   :  { %7582 = vpow2.f32 %v4519_v0  ;;  %v4510_v60 = vsub.f32 %v4486_v62, %v4504_v39  ;;  %3945 = vst.msk [vmem:[#allocation2 + $0x8] sm:$0xff] %vm1369_vm4, %v3929_v11 }
0x1c3c   :  { %v4521_v38 = vmul.f32 1.442695, %v4510_v60 }
0x1c3d   :  { %v3927_v6 = vpop.permute.xlu0 %3926  ;;  %v4309_v1 = vpop.permute.xlu1 %4308 }
0x1c3e   :  { %7584 = vpow2.f32 %v4521_v38  ;;  %3944 = vst.msk [vmem:[#allocation2] sm:$0xff] %vm1369_vm4, %v3927_v6 }
0x1c3f   :  { %4326 = vst.msk [vmem:[#allocation2] sm:$0xff] %vm1752_vm5, %v4309_v1 }
0x1c41   :  { %v3931_v2 = vpop.permute.xlu0 %3930  ;;  %v4311_v22 = vpop.permute.xlu1 %4310 }
0x1c42   :  { %3946 = vst.msk [vmem:[#allocation2 + $0x10] sm:$0xff] %vm1369_vm4, %v3931_v2 }
0x1c43   :  { %4327 = vst.msk [vmem:[#allocation2 + $0x8] sm:$0xff] %vm1752_vm5, %v4311_v22 }
0x1c44   :  { %v7583_v52 = vpop.eup %7582 }
0x1c45   :  { %v4313_v13 = vpop.permute.xlu0 %4312  ;;  %v3933_v8 = vpop.permute.xlu1 %3932  ;;  %v4535_v51 = vsel %vm96_vm0, %v7583_v52, 0.0 }
0x1c46   :  { %4328 = vst.msk [vmem:[#allocation2 + $0x10] sm:$0xff] %vm1752_vm5, %v4313_v13  ;;  %4536 = vadd.xlane.f32.xlu0 %v4535_v51 }
0x1c47   :  { %3947 = vst.msk [vmem:[#allocation2 + $0x18] sm:$0xff] %vm1369_vm4, %v3933_v8 }
0x1c48   :  { %v7585_v10 = vpop.eup %7584 }
0x1c49   :  { %v4315_v3 = vpop.permute.xlu1 %4314  ;;  %v4538_v43 = vsel %vm96_vm0, %v7585_v10, 0.0 }
0x1c4a   :  { %4329 = vst.msk [vmem:[#allocation2 + $0x18] sm:$0xff] %vm1752_vm5, %v4315_v3  ;;  %4539 = vadd.xlane.f32.xlu1 %v4538_v43 }
0x1cd3   :  { %v4537_v44 = vpop.xlane.xlu0 %4536 }
0x1cd4   :  { %7586 = vrcp.f32 %v4537_v44 }
0x1cd7   :  { %v4540_v7 = vpop.xlane.xlu1 %4539 }
0x1cd8   :  { %7588 = vrcp.f32 %v4540_v7 }
0x1cde   :  { %v7587_v27 = vpop.eup %7586 }
0x1cdf   :  { %v4551_v4 = vmul.f32 %v7587_v27, %v7583_v52 }
0x1ce1   :  { %6656 = vmatprep.mubr.msk.f32.mxu1 %vm96_vm0, %v4551_v4  ;;  %v5738_v4 = vld [vmem:[%s9462_s16 + $0x20] sm:$0xff] }
0x1ce2   :  { %v7589_v9 = vpop.eup %7588  ;;  %v7101_v35 = vpack.c.bf16 %v5739_v26, %v5738_v4  ;;  %v5760_v26 = vld [vmem:[%s9464_s18 + $0xd0] sm:$0xff] }
0x1ce3   :  { %v4552_v58 = vmul.f32 %v7589_v9, %v7585_v10 }
0x1ce4   :  { %7102 = vmatprep.subr.bf16.mxu0 %v7101_v35 }
0x1ce5   :  { %6657 = vmatmul.mubr.msk.f32.gmra.mrb[64].mxu1 %vm96_vm0, %v4552_v58  ;;  %7104 = vmatpush3.bf16.msra.mxu0 %v7101_v35  ;;  %v5761_v35 = vld [vmem:[%s9464_s18 + $0xd8] sm:$0xff] }
0x1ce8   :  { %v6652_v62 = vpop.f32.mrb[60].mxu1 }
0x1ce9   :  { %v4655_v55 = vpop.f32.mrb[61].mxu1  ;;  %4692 = vrot.lane.b32.xlu1 %v6652_v62, %s9519_s25 }
0x1cea   :  { %4690 = vrot.lane.b32.xlu0 %v4655_v55, %s9519_s25 }
0x1cec   :  { %v6655_v49 = vpop.f32.mrb[62].mxu1 }
0x1ced   :  { %v4665_v32 = vpop.f32.mrb[63].mxu1  ;;  %4696 = vrot.lane.b32.xlu1 %v6655_v49, %s9519_s25 }
0x1cee   :  { %4694 = vrot.lane.b32.xlu0 %v4665_v32, %s9519_s25 }
0x1d5b   :  { %v4693_v46 = vpop.permute.xlu1 %4692 }
0x1d5c   :  { %4709 = vst.msk [vmem:[#allocation2 + $0x8] sm:$0xff] %vm2135_vm6, %v4693_v46  ;;  %v4691_v34 = vpop.permute.xlu0 %4690 }
0x1d5d   :  { %4708 = vst.msk [vmem:[#allocation2] sm:$0xff] %vm2135_vm6, %v4691_v34 }
0x1d5f   :  { %v4697_v37 = vpop.permute.xlu1 %4696 }
0x1d60   :  { %4711 = vst.msk [vmem:[#allocation2 + $0x18] sm:$0xff] %vm2135_vm6, %v4697_v37  ;;  %v4695_v17 = vpop.permute.xlu0 %4694 }
0x1d61   :  { %4710 = vst.msk [vmem:[#allocation2 + $0x10] sm:$0xff] %vm2135_vm6, %v4695_v17 }
0x1d63   :  { %v4715_v41 = vld [vmem:[#allocation2 + $0x8] sm:$0xff] }
0x1d64   :  { %v4714_v19 = vld [vmem:[#allocation2] sm:$0xff] }
0x1d65   :  { %6667 = vmatprep.mubr.msk.f32.mxu1 %vm218_vm1, %v4714_v19 }
0x1d66   :  { %6668 = vmatmul.mubr.msk.f32.vlgmr.msra.gmra.mrb[66].mxu1 %vm218_vm1, %v4715_v41 }
0x1d67   :  { %v4717_v29 = vld [vmem:[#allocation2 + $0x18] sm:$0xff] }
0x1d68   :  { %v4716_v59 = vld [vmem:[#allocation2 + $0x10] sm:$0xff] }
0x1d69   :  { %6670 = vmatprep.mubr.msk.f32.mxu1 %vm218_vm1, %v4716_v59 }
0x1d6a   :  { %6671 = vmatmul.mubr.msk.f32.gmra.mrb[68].mxu1 %vm218_vm1, %v4717_v29  ;;  %v9250_v29 = vld [vmem:[%s9460_s14 + $0x1] ss:$0 sm:$0xff] }
0x1db8   :  { %v6658_v45 = vpop.f32.mrb[64].mxu1 }
0x1db9   :  { %v4675_v15 = vpop.f32.mrb[65].mxu1 }
0x1e39   :  { %v6669_v18 = vpop.f32.mrb[66].mxu1 }
0x1e3a   :  { %v4823_v33 = vadd.f32 %v6669_v18, %v9189_v5  ;;  %v4817_v40 = vpop.f32.mrb[67].mxu1 }
0x1e3b   :  { %v4818_v63 = vadd.f32 %v9189_v5, %v4817_v40  ;;  %v9255_v40 = vld [vmem:[%s9461_s15 + $0x1] ss:$0 sm:$0xff] }
0x1e3c   :  { %v4847_v48 = vadd.f32 %v4823_v33, %v8656_v47 }
0x1e3d   :  { %v9195_v23 = vadd.f32 %v4818_v63, %v8659_v53  ;;  %v6672_v28 = vpop.f32.mrb[68].mxu1 }
0x1e3e   :  { %v4827_v61 = vpop.f32.mrb[69].mxu1  ;;  %v4859_v54 = vsel %vm218_vm1, %v4847_v48, 0.0  ;;  %v4833_v30 = vadd.f32 %v6672_v28, %v9189_v5 }
0x1e3f   :  { %v4828_v0 = vadd.f32 %v9189_v5, %v4827_v61  ;;  %4860 = vadd.xlane.f32.xlu1 %v4859_v54  ;;  %v4856_v39 = vsel %vm218_vm1, %v9195_v23, 0.0 }
0x1e40   :  { %4857 = vadd.xlane.f32.xlu0 %v4856_v39  ;;  %v9204_v47 = vadd.f32 %v4833_v30, %v8666_v16 }
0x1e41   :  { %v4848_v11 = vadd.f32 %v4828_v0, %v8669_v14 }
0x1e42   :  { %v4865_v60 = vsel %vm218_vm1, %v9204_v47, 0.0 }
0x1e43   :  { %v4862_v53 = vsel %vm218_vm1, %v4848_v11, 0.0 }
0x1e44   :  { %4863 = vadd.xlane.f32.xlu0 %v4862_v53 }
0x1e48   :  { %4866 = vadd.xlane.f32.xlu0 %v4865_v60 }
0x1ecc   :  { %v4861_v38 = vpop.xlane.xlu1 %4860 }
0x1ecd   :  { %v4875_v6 = vmul.f32 0.03125, %v4861_v38  ;;  %v4858_v1 = vpop.xlane.xlu0 %4857 }
0x1ece   :  { %v4874_v2 = vmul.f32 0.03125, %v4858_v1 }
0x1ecf   :  { %v4881_v22 = vsub.f32 %v4847_v48, %v4875_v6 }
0x1ed0   :  { %v4880_v52 = vsub.f32 %v9195_v23, %v4874_v2 }
0x1ed1   :  { %v4864_v13 = vpop.xlane.xlu0 %4863  ;;  %v4887_v8 = vmul.f32 %v4881_v22, %v4881_v22 }
0x1ed2   :  { %v4876_v14 = vmul.f32 0.03125, %v4864_v13  ;;  %v4886_v51 = vmul.f32 %v4880_v52, %v4880_v52  ;;  %v5750_v13 = vld [vmem:[%s9464_s18 + $0x80] sm:$0xff] }
0x1ed3   :  { %v4895_v16 = vsel %vm218_vm1, %v4887_v8, 0.0  ;;  %v5751_v8 = vld [vmem:[%s9464_s18 + $0x88] sm:$0xff] }
0x1ed4   :  { %v9211_v10 = vsub.f32 %v4848_v11, %v4876_v14  ;;  %4896 = vadd.xlane.f32.xlu1 %v4895_v16  ;;  %v4892_v3 = vsel %vm218_vm1, %v4886_v51, 0.0  ;;  %v7109_v14 = vpack.c.bf16 %v5751_v8, %v5750_v13  ;;  %v5752_v51 = vld [vmem:[%s9464_s18 + $0x90] sm:$0xff]  ;;  %v5753_v16 = vld [vmem:[%s9464_s18 + $0x98] sm:$0xff] }
0x1ed5   :  { %4893 = vadd.xlane.f32.xlu0 %v4892_v3  ;;  %v4867_v43 = vpop.xlane.xlu0 %4866  ;;  %v5754_v3 = vld [vmem:[%s9464_s18 + $0xa0] sm:$0xff] }
0x1ed6   :  { %v4877_v20 = vmul.f32 0.03125, %v4867_v43  ;;  %v4888_v50 = vmul.f32 %v9211_v10, %v9211_v10  ;;  %7110 = vmatprep.subr.bf16.mxu1 %v7109_v14  ;;  %v5755_v43 = vld [vmem:[%s9464_s18 + $0xa8] sm:$0xff] }
0x1ed7   :  { %7112 = vmatpush3.bf16.msra.mxu1 %v7109_v14 }
0x1ed8   :  { %v9217_v56 = vsub.f32 %v9204_v47, %v4877_v20  ;;  %v4898_v44 = vsel %vm218_vm1, %v4888_v50, 0.0  ;;  %v7117_v20 = vpack.c.bf16 %v5755_v43, %v5754_v3  ;;  %v5756_v50 = vld [vmem:[%s9464_s18 + $0xb0] sm:$0xff] }
0x1ed9   :  { %4899 = vadd.xlane.f32.xlu0 %v4898_v44 }
0x1eda   :  { %v4889_v7 = vmul.f32 %v9217_v56, %v9217_v56 }
0x1edc   :  { %v4901_v27 = vsel %vm218_vm1, %v4889_v7, 0.0  ;;  %v5758_v7 = vld [vmem:[%s9464_s18 + $0xc0] sm:$0xff] }
0x1edd   :  { %4902 = vadd.xlane.f32.xlu1 %v4901_v27  ;;  %v5759_v27 = vld [vmem:[%s9464_s18 + $0xc8] sm:$0xff] }
0x1ede   :  { %v7125_v4 = vpack.c.bf16 %v5759_v27, %v5758_v7 }
0x1eee   :  { %3936 = vrot.lane.b32.xlu1 %v9022_v36, %s9517_s29  ;;  %v5740_v36 = vld [vmem:[%s9462_s16 + $0x30] sm:$0xff] }
0x1eef   :  { %3934 = vrot.lane.b32.xlu0 %v9024_v21, %s9517_s29  ;;  %v5741_v21 = vld [vmem:[%s9462_s16 + $0x38] sm:$0xff] }
0x1ef2   :  { %4316 = vrot.lane.b32.xlu1 %v9102_v25, %s9518_s2  ;;  %v7105_v25 = vpack.c.bf16 %v5741_v21, %v5740_v36  ;;  %v7129_v36 = vpack.c.bf16 %v5761_v35, %v5760_v26  ;;  %v5762_v21 = vld [vmem:[%s9464_s18 + $0xe0] sm:$0xff] }
0x1ef3   :  { %4698 = vrot.lane.b32.xlu0 %v4675_v15, %s9519_s25 }
0x1ef4   :  { %7106 = vmatprep.subr.bf16.mxu0 %v7105_v25 }
0x1ef5   :  { %7108 = vmatpush3.bf16.msra.mxu0 %v7105_v25  ;;  %v5763_v25 = vld [vmem:[%s9464_s18 + $0xe8] sm:$0xff] }
0x1ef6   :  { %4318 = vrot.lane.b32.xlu1 %v9100_v24, %s9518_s2 }
0x1efa   :  { %4700 = vrot.lane.b32.xlu1 %v6658_v45, %s9519_s25 }
0x1f61   :  { %v4897_v42 = vpop.xlane.xlu1 %4896 }
0x1f62   :  { %v4911_v9 = vmul.f32 0.03125, %v4897_v42  ;;  %v4894_v58 = vpop.xlane.xlu0 %4893  ;;  %v7133_v42 = vpack.c.bf16 %v5763_v25, %v5762_v21 }
0x1f63   :  { %v4910_v62 = vmul.f32 0.03125, %v4894_v58  ;;  %v5765_v58 = vld [vmem:[%s9464_s18 + $0xf8] sm:$0xff] }
0x1f64   :  { %v4917_v55 = vadd.f32 1e-06, %v4911_v9  ;;  %v5764_v9 = vld [vmem:[%s9464_s18 + $0xf0] sm:$0xff] }
0x1f65   :  { %v4916_v49 = vadd.f32 1e-06, %v4910_v62  ;;  %v7137_v62 = vpack.c.bf16 %v5765_v58, %v5764_v9 }
0x1f66   :  { %7590 = vrsqrt.f32 %v4917_v55  ;;  %v4900_v32 = vpop.xlane.xlu0 %4899  ;;  %v9328_v55 = vld [vmem:[%s9463_s17 + $0x1] ss:$0 sm:$0xff] }
0x1f67   :  { %7592 = vrsqrt.f32 %v4916_v49  ;;  %v4912_v46 = vmul.f32 0.03125, %v4900_v32 }
0x1f69   :  { %v4918_v34 = vadd.f32 1e-06, %v4912_v46 }
0x1f6a   :  { %v3935_v37 = vpop.permute.xlu0 %3934  ;;  %v4903_v17 = vpop.xlane.xlu1 %4902 }
0x1f6b   :  { %7594 = vrsqrt.f32 %v4918_v34  ;;  %3948 = vst.msk [vmem:[#allocation2 + $0x20] sm:$0xff] %vm1369_vm4, %v3935_v37  ;;  %v4913_v24 = vmul.f32 0.03125, %v4903_v17 }
0x1f6d   :  { %v4919_v19 = vadd.f32 1e-06, %v4913_v24 }
0x1f6e   :  { %v3937_v41 = vpop.permute.xlu1 %3936  ;;  %v4699_v48 = vpop.permute.xlu0 %4698 }
0x1f6f   :  { %7596 = vrsqrt.f32 %v4919_v19  ;;  %3949 = vst.msk [vmem:[#allocation2 + $0x28] sm:$0xff] %vm1369_vm4, %v3937_v41  ;;  %vm7668_vm4 = vmmov 0  }
0x1f70   :  { %v7591_v59 = vpop.eup %7590 }
0x1f71   :  { %v7593_v45 = vpop.eup %7592  ;;  %v4929_v15 = vmul.f32 %v7591_v59, %v4881_v22 }
0x1f72   :  { %v4317_v18 = vpop.permute.xlu1 %4316  ;;  %v4928_v33 = vmul.f32 %v7593_v45, %v4880_v52 }
0x1f73   :  { %v4941_v63 = vmul.f32 %v9250_v29, %v4929_v15  ;;  %4330 = vst.msk [vmem:[#allocation2 + $0x20] sm:$0xff] %vm1752_vm5, %v4317_v18 }
0x1f74   :  { %4712 = vst.msk [vmem:[#allocation2 + $0x20] sm:$0xff] %vm2135_vm6, %v4699_v48  ;;  %v4940_v28 = vmul.f32 %v9250_v29, %v4928_v33 }
0x1f75   :  { %v7595_v61 = vpop.eup %7594  ;;  %v4953_v39 = vadd.f32 %v9255_v40, %v4941_v63 }
0x1f76   :  { %v4319_v54 = vpop.permute.xlu1 %4318  ;;  %v4952_v30 = vadd.f32 %v9255_v40, %v4940_v28  ;;  %v4930_v0 = vmul.f32 %v7595_v61, %v9211_v10  ;;  %v7113_v10 = vpack.c.bf16 %v5753_v16, %v5752_v51 }
0x1f77   :  { %4331 = vst.msk [vmem:[#allocation2 + $0x28] sm:$0xff] %vm1752_vm5, %v4319_v54 }
0x1f78   :  { %6684 = vmatprep.mubr.msk.f32.mxu0 %vm218_vm1, %v4952_v30  ;;  %v4942_v11 = vmul.f32 %v9250_v29, %v4930_v0  ;;  %7114 = vmatprep.subr.bf16.mxu1 %v7113_v10 }
0x1f79   :  { %v7597_v53 = vpop.eup %7596  ;;  %6685 = vmatmul.mubr.msk.f32.vlgmr.msra.gmra.mrb[90].mxu0 %vm218_vm1, %v4953_v39  ;;  %7116 = vmatpush3.bf16.msra.mxu1 %v7113_v10 }
0x1f7a   :  { %v4701_v60 = vpop.permute.xlu1 %4700  ;;  %v4954_v38 = vadd.f32 %v9255_v40, %v4942_v11  ;;  %v4931_v6 = vmul.f32 %v7597_v53, %v9217_v56  ;;  %7118 = vmatprep.subr.bf16.mxu1 %v7117_v20  ;;  %v5757_v56 = vld [vmem:[%s9464_s18 + $0xb8] sm:$0xff] }
0x1f7b   :  { %4713 = vst.msk [vmem:[#allocation2 + $0x28] sm:$0xff] %vm2135_vm6, %v4701_v60  ;;  %v4718_v1 = vld [vmem:[#allocation2 + $0x20] sm:$0xff]  ;;  %v7121_v44 = vpack.c.bf16 %v5757_v56, %v5756_v50 }
0x1f7c   :  { %6673 = vmatprep.mubr.msk.f32.mxu1 %vm218_vm1, %v4718_v1  ;;  %6687 = vmatprep.mubr.msk.f32.mxu0 %vm218_vm1, %v4954_v38  ;;  %v4943_v2 = vmul.f32 %v9250_v29, %v4931_v6 }
0x1f7d   :  { %7120 = vmatpush3.bf16.msra.mxu1 %v7117_v20 }
0x1f7e   :  { %v4955_v22 = vadd.f32 %v9255_v40, %v4943_v2  ;;  %7122 = vmatprep.subr.bf16.mxu1 %v7121_v44 }
0x1f80   :  { %6688 = vmatmul.mubr.msk.f32.gmra.mrb[92].mxu0 %vm218_vm1, %v4955_v22 }
0x1f81   :  { %7124 = vmatpush3.bf16.msra.mxu1 %v7121_v44 }
0x1f82   :  { %v4719_v52 = vld [vmem:[#allocation2 + $0x28] sm:$0xff]  ;;  %7126 = vmatprep.subr.bf16.mxu1 %v7125_v4 }
0x1f83   :  { %6674 = vmatmul.mubr.msk.f32.gmra.mrb[70].mxu1 %vm218_vm1, %v4719_v52 }
0x1f85   :  { %7128 = vmatpush3.bf16.msra.mxu1 %v7125_v4 }
0x1f86   :  { %7130 = vmatprep.subr.bf16.mxu1 %v7129_v36 }
0x1f89   :  { %7132 = vmatpush3.bf16.msra.mxu1 %v7129_v36 }
0x1f8a   :  { %7134 = vmatprep.subr.bf16.mxu1 %v7133_v42 }
0x1f8d   :  { %7136 = vmatpush3.bf16.msra.mxu1 %v7133_v42 }
0x1f8e   :  { %7138 = vmatprep.subr.bf16.mxu1 %v7137_v62 }
0x1f91   :  { %7140 = vmatpush3.bf16.msra.mxu1 %v7137_v62 }
0x204c   :  { %v6686_v49 = vpop.f32.mrb[90].mxu0 }
0x204d   :  { %v9331_v32 = vadd.f32 %v6686_v49, %v9328_v55  ;;  %v5055_v46 = vpop.f32.mrb[91].mxu0 }
0x204e   :  { %v9334_v34 = vadd.f32 %v9328_v55, %v5055_v46 }
0x204f   :  { %v9337_v37 = vmul.f32 0.70710677, %v9331_v32 }
0x2050   :  { %v9340_v17 = vmul.f32 0.70710677, %v9334_v34 }
0x2051   :  { %v5103_v24 = vand.u32 2147483647, %v9337_v37  ;;  %vm5091_vm13 = vcmp.ge.f32.partialorder %v9337_v37, 0.0 }
0x2052   :  { %v5102_v19 = vand.u32 2147483647, %v9340_v17  ;;  %vm5090_vm14 = vcmp.ge.f32.partialorder %v9340_v17, 0.0  ;;  %v5222_v17 = vmul.f32 0.5, %v9334_v34 }
0x2053   :  { %v5109_v41 = vmul.f32 0.3275911, %v5103_v24  ;;  %v6689_v59 = vpop.f32.mrb[92].mxu0  ;;  %v5181_v1 = vsub.f32 0.0, %v5103_v24 }
0x2054   :  { %v5108_v45 = vmul.f32 0.3275911, %v5102_v19  ;;  %v9345_v15 = vadd.f32 %v6689_v59, %v9328_v55  ;;  %v5065_v18 = vpop.f32.mrb[93].mxu0  ;;  %v5180_v13 = vsub.f32 0.0, %v5102_v19 }
0x2055   :  { %v5115_v33 = vadd.f32 1.0, %v5109_v41  ;;  %v9348_v63 = vadd.f32 %v9328_v55, %v5065_v18  ;;  %v5187_v51 = vmul.f32 %v5181_v1, %v5103_v24 }
0x2056   :  { %v5114_v48 = vadd.f32 1.0, %v5108_v45  ;;  %v9351_v28 = vmul.f32 0.70710677, %v9345_v15  ;;  %v6675_v61 = vpop.f32.mrb[70].mxu1 }
0x2057   :  { %7598 = vrcp.f32 %v5115_v33  ;;  %v9354_v54 = vmul.f32 0.70710677, %v9348_v63  ;;  %v4837_v30 = vpop.f32.mrb[71].mxu1  ;;  %v4843_v60 = vadd.f32 %v6675_v61, %v9189_v5  ;;  %v5194_v20 = vmul.f32 1.442695, %v5187_v51 }
0x2058   :  { %7600 = vrcp.f32 %v5114_v48  ;;  %v5105_v0 = vand.u32 2147483647, %v9351_v28  ;;  %v4838_v38 = vadd.f32 %v9189_v5, %v4837_v30  ;;  %vm5093_vm15 = vcmp.ge.f32.partialorder %v9351_v28, 0.0 }
0x2059   :  { %v5104_v39 = vand.u32 2147483647, %v9354_v54  ;;  %v9361_v22 = vadd.f32 %v4843_v60, %v8676_v31  ;;  %v5186_v31 = vmul.f32 %v5180_v13, %v5102_v19  ;;  %vm5092_vm0 = vcmp.ge.f32.partialorder %v9354_v54, 0.0 }
0x205a   :  { %v5111_v11 = vmul.f32 0.3275911, %v5105_v0  ;;  %v9364_v52 = vadd.f32 %v4838_v38, %v8679_v57  ;;  %v5183_v57 = vsub.f32 0.0, %v5105_v0 }
0x205b   :  { %v5110_v53 = vmul.f32 0.3275911, %v5104_v39  ;;  %v4871_v8 = vsel %vm218_vm1, %v9361_v22, 0.0  ;;  %v5182_v50 = vsub.f32 0.0, %v5104_v39  ;;  %v5192_v7 = vmul.f32 1.442695, %v5186_v31 }
0x205c   :  { %v5117_v6 = vadd.f32 1.0, %v5111_v11  ;;  %v4868_v14 = vsel %vm218_vm1, %v9364_v52, 0.0  ;;  %4872 = vadd.xlane.f32.xlu1 %v4871_v8  ;;  %v5189_v35 = vmul.f32 %v5183_v57, %v5105_v0 }
0x205d   :  { %v5116_v2 = vadd.f32 1.0, %v5110_v53  ;;  %4869 = vadd.xlane.f32.xlu0 %v4868_v14  ;;  %v5188_v21 = vmul.f32 %v5182_v50, %v5104_v39 }
0x205e   :  { %7602 = vrcp.f32 %v5117_v6  ;;  %v5198_v24 = vmul.f32 1.442695, %v5189_v35 }
0x205f   :  { %7604 = vrcp.f32 %v5116_v2  ;;  %v5196_v41 = vmul.f32 1.442695, %v5188_v21  ;;  %v5223_v21 = vmul.f32 0.5, %v9331_v32  ;;  %v5225_v32 = vmul.f32 0.5, %v9345_v15  ;;  %v5767_v15 = vld [vmem:[%s9465_s19 + $0x1] ss:$0 sm:$0xff] }
0x2060   :  { %7606 = vpow2.f32 %v5194_v20  ;;  %v5096_v20 = vsel %vm5090_vm14, 1.0, %v7666_v12 }
0x2061   :  { %v7599_v5 = vpop.eup %7598  ;;  %7608 = vpow2.f32 %v5192_v7 }
0x2062   :  { %v7601_v16 = vpop.eup %7600  ;;  %v5127_v10 = vmul.f32 1.0614054, %v7599_v5  ;;  %7610 = vpow2.f32 %v5198_v24 }
0x2063   :  { %v5126_v3 = vmul.f32 1.0614054, %v7601_v16  ;;  %7612 = vpow2.f32 %v5196_v41 }
0x2064   :  { %v5133_v43 = vadd.f32 -1.4531521, %v5127_v10 }
0x2065   :  { %v5132_v56 = vadd.f32 -1.4531521, %v5126_v3  ;;  %v5097_v3 = vsel %vm5091_vm13, 1.0, %v7666_v12 }
0x2066   :  { %v5139_v44 = vmul.f32 %v7599_v5, %v5133_v43 }
0x2067   :  { %v5138_v27 = vmul.f32 %v7601_v16, %v5132_v56 }
0x2068   :  { %v7603_v4 = vpop.eup %7602  ;;  %v5145_v26 = vadd.f32 1.4214138, %v5139_v44 }
0x2069   :  { %v7605_v36 = vpop.eup %7604  ;;  %v5144_v25 = vadd.f32 1.4214138, %v5138_v27  ;;  %v5129_v42 = vmul.f32 1.0614054, %v7603_v4 }
0x206a   :  { %v5151_v9 = vmul.f32 %v7599_v5, %v5145_v26  ;;  %v5128_v58 = vmul.f32 1.0614054, %v7605_v36  ;;  %v7607_v38 = vpop.eup %7606 }
0x206b   :  { %v5150_v62 = vmul.f32 %v7601_v16, %v5144_v25  ;;  %v5135_v49 = vadd.f32 -1.4531521, %v5129_v42  ;;  %v7609_v2 = vpop.eup %7608 }
0x206c   :  { %v5157_v46 = vadd.f32 -0.28449672, %v5151_v9  ;;  %v5134_v19 = vadd.f32 -1.4531521, %v5128_v58  ;;  %v7611_v44 = vpop.eup %7610 }
0x206d   :  { %v5156_v59 = vadd.f32 -0.28449672, %v5150_v62  ;;  %v5141_v45 = vmul.f32 %v7603_v4, %v5135_v49  ;;  %v7613_v27 = vpop.eup %7612 }
0x206e   :  { %v5163_v18 = vmul.f32 %v7599_v5, %v5157_v46  ;;  %v5140_v33 = vmul.f32 %v7605_v36, %v5134_v19  ;;  %v5224_v46 = vmul.f32 0.5, %v9348_v63 }
0x206f   :  { %v5162_v48 = vmul.f32 %v7601_v16, %v5156_v59  ;;  %v5147_v61 = vadd.f32 1.4214138, %v5141_v45 }
0x2070   :  { %v5169_v30 = vadd.f32 0.2548296, %v5163_v18  ;;  %v5146_v0 = vadd.f32 1.4214138, %v5140_v33 }
0x2071   :  { %v5168_v39 = vadd.f32 0.2548296, %v5162_v48  ;;  %v5153_v11 = vmul.f32 %v7603_v4, %v5147_v61 }
0x2072   :  { %v5175_v53 = vmul.f32 %v7599_v5, %v5169_v30  ;;  %v5152_v60 = vmul.f32 %v7605_v36, %v5146_v0 }
0x2073   :  { %v5174_v6 = vmul.f32 %v7601_v16, %v5168_v39  ;;  %v5159_v1 = vadd.f32 -0.28449672, %v5153_v11 }
0x2074   :  { %v5205_v13 = vmul.f32 %v7607_v38, %v5175_v53  ;;  %v5158_v8 = vadd.f32 -0.28449672, %v5152_v60 }
0x2075   :  { %v5204_v14 = vmul.f32 %v7609_v2, %v5174_v6  ;;  %v5165_v51 = vmul.f32 %v7603_v4, %v5159_v1 }
0x2076   :  { %v5211_v10 = vsub.f32 1.0, %v5205_v13  ;;  %v5164_v31 = vmul.f32 %v7605_v36, %v5158_v8 }
0x2077   :  { %v5210_v43 = vsub.f32 1.0, %v5204_v14  ;;  %v5171_v57 = vadd.f32 0.2548296, %v5165_v51 }
0x2078   :  { %v5217_v5 = vmul.f32 %v5211_v10, %v5097_v3  ;;  %v5170_v16 = vadd.f32 0.2548296, %v5164_v31 }
0x2079   :  { %v5216_v50 = vmul.f32 %v5210_v43, %v5096_v20  ;;  %v5177_v56 = vmul.f32 %v7603_v4, %v5171_v57  ;;  %v5099_v4 = vsel %vm5093_vm15, 1.0, %v7666_v12 }
0x207a   :  { %v5229_v37 = vadd.f32 1.0, %v5217_v5  ;;  %v5176_v7 = vmul.f32 %v7605_v36, %v5170_v16  ;;  %v5098_v36 = vsel %vm5092_vm0, 1.0, %v7666_v12 }
0x207b   :  { %v5228_v26 = vadd.f32 1.0, %v5216_v50  ;;  %v5207_v35 = vmul.f32 %v7611_v44, %v5177_v56 }
0x207c   :  { %v5206_v25 = vmul.f32 %v7613_v27, %v5176_v7  ;;  %v5235_v58 = vmul.f32 %v5229_v37, %v5223_v21  ;;  %v5392_v27 = vld [vmem:[%s9468_s22] sm:$0xff] }
0x207d   :  { %v5234_v42 = vmul.f32 %v5228_v26, %v5222_v17  ;;  %v5213_v9 = vsub.f32 1.0, %v5207_v35  ;;  %v7667_v17 = vmov 0.0|0.0   ;;  %v5394_v26 = vld [vmem:[%s9468_s22 + $0x10] sm:$0xff]  ;;  %v5395_v35 = vld [vmem:[%s9468_s22 + $0x18] sm:$0xff] }
0x207e   :  { %v5212_v62 = vsub.f32 1.0, %v5206_v25  ;;  %7141 = vmatprep.subr.bf16.mxu0 %v7667_v17  ;;  %v7145_v21 = vpack.c.bf16 %v5395_v35, %v5394_v26  ;;  %v7669_v25 = vmov 0.0  }
0x207f   :  { %6725 = vmatprep.mubr.f32.mxu1 %v5234_v42  ;;  %v5219_v49 = vmul.f32 %v5213_v9, %v5099_v4 }
0x2080   :  { %6726 = vmatmul.mubr.f32.vlgmr.msra.gmra.mrb[72].mxu1 %v5235_v58  ;;  %v5218_v34 = vmul.f32 %v5212_v62, %v5098_v36 }
0x2081   :  { %v5231_v28 = vadd.f32 1.0, %v5219_v49 }
0x2082   :  { %v5230_v24 = vadd.f32 1.0, %v5218_v34 }
0x2083   :  { %v5237_v19 = vmul.f32 %v5231_v28, %v5225_v32 }
0x2084   :  { %v5236_v54 = vmul.f32 %v5230_v24, %v5224_v46 }
0x2086   :  { %6728 = vmatprep.mubr.f32.mxu1 %v5236_v54 }
0x2087   :  { %6729 = vmatmul.mubr.f32.gmra.mrb[74].mxu1 %v5237_v19 }
0x20e9   :  { %v4873_v41 = vpop.xlane.xlu1 %4872 }
0x20ea   :  { %v4870_v59 = vpop.xlane.xlu0 %4869  ;;  %v4879_v45 = vmul.f32 0.03125, %v4873_v41 }
0x20eb   :  { %v4878_v18 = vmul.f32 0.03125, %v4870_v59 }
0x20ec   :  { %v4885_v33 = vsub.f32 %v9361_v22, %v4879_v45 }
0x20ed   :  { %v4884_v48 = vsub.f32 %v9364_v52, %v4878_v18 }
0x20ee   :  { %v4891_v0 = vmul.f32 %v4885_v33, %v4885_v33 }
0x20ef   :  { %v4890_v61 = vmul.f32 %v4884_v48, %v4884_v48 }
0x20f0   :  { %v4907_v63 = vsel %vm218_vm1, %v4891_v0, 0.0 }
0x20f1   :  { %v4904_v30 = vsel %vm218_vm1, %v4890_v61, 0.0 }
0x20f2   :  { %4905 = vadd.xlane.f32.xlu0 %v4904_v30 }
0x20f6   :  { %4908 = vadd.xlane.f32.xlu0 %v4907_v63 }
0x2153   :  { %v6727_v39 = vpop.f32.mrb[72].mxu1 }
0x2154   :  { %v5331_v11 = vpop.f32.mrb[73].mxu1 }
0x2155   :  { %v5332_v53 = vadd.f32 %v5767_v15, %v5331_v11 }
0x2157   :  { %v5356_v22 = vadd.f32 %v5332_v53, %v9195_v23 }
0x2159   :  { %5359 = vst.msk [vmem:[#allocation2] sm:$0x1] %vm5358_vm2, %v5356_v22 }
0x215a   :  { %v6730_v52 = vpop.f32.mrb[74].mxu1 }
0x215b   :  { %v5345_v60 = vadd.f32 %v6730_v52, %v5767_v15  ;;  %v5340_v38 = vpop.f32.mrb[75].mxu1 }
0x215d   :  { %v5357_v6 = vadd.f32 %v5345_v60, %v9204_v47 }
0x215f   :  { %5360 = vst.msk [vmem:[#allocation2 + $0x1] sm:$0x1] %vm5358_vm2, %v5357_v6 }
0x2166   :  { %v5361_v1 = vld [vmem:[#allocation2] sm:$0x3] }
0x2167   :  { %v5365_v2 = vsel %vm5364_vm3, %v5361_v1, 0.0 }
0x2168   :  { %5366 = vadd.xlane.f32.xlu0 %v5365_v2 }
0x217f   :  { %v4906_v13 = vpop.xlane.xlu0 %4905 }
0x2180   :  { %v4914_v8 = vmul.f32 0.03125, %v4906_v13 }
0x2182   :  { %v4920_v14 = vadd.f32 1e-06, %v4914_v8 }
0x2183   :  { %v4909_v51 = vpop.xlane.xlu0 %4908 }
0x2184   :  { %7614 = vrsqrt.f32 %v4920_v14  ;;  %v4915_v10 = vmul.f32 0.03125, %v4909_v51 }
0x2186   :  { %v4921_v31 = vadd.f32 1e-06, %v4915_v10 }
0x2188   :  { %7616 = vrsqrt.f32 %v4921_v31 }
0x218e   :  { %v7615_v23 = vpop.eup %7614 }
0x218f   :  { %v4932_v3 = vmul.f32 %v7615_v23, %v4884_v48 }
0x2191   :  { %v4944_v43 = vmul.f32 %v9250_v29, %v4932_v3 }
0x2192   :  { %v7617_v57 = vpop.eup %7616 }
0x2193   :  { %v4956_v47 = vadd.f32 %v9255_v40, %v4944_v43  ;;  %v4933_v5 = vmul.f32 %v7617_v57, %v4885_v33 }
0x2195   :  { %6690 = vmatprep.mubr.msk.f32.mxu0 %vm218_vm1, %v4956_v47  ;;  %v4945_v20 = vmul.f32 %v9250_v29, %v4933_v5  ;;  %v5393_v29 = vld [vmem:[%s9468_s22 + $0x8] sm:$0xff]  ;;  %v5768_v47 = vld [vmem:[%s9466_s20] ss:$0 sm:$0xff] }
0x2197   :  { %v4957_v16 = vadd.f32 %v9255_v40, %v4945_v20  ;;  %v7142_v40 = vpack.c.bf16 %v5393_v29, %v5392_v27 }
0x2199   :  { %6691 = vmatmul.mubr.msk.f32.gmra.mrb[94].mxu0 %vm218_vm1, %v4957_v16 }
0x219a   :  { %7143 = vmatpush3.bf16.msra.mxu0 %v7142_v40  ;;  %6742 = vmatprep.mubr.msk.f32.mxu0 %vm7668_vm4, %v7669_v25 }
0x219b   :  { %7144 = vmatprep.subr.bf16.mxu0 %v7667_v17 }
0x219e   :  { %7146 = vmatpush3.bf16.msra.mxu0 %v7145_v21 }
0x21f5   :  { %v5367_v50 = vpop.xlane.xlu0 %5366 }
0x21f6   :  { %v5368_v56 = vmul.f32 0.03125, %v5367_v50 }
0x21f8   :  { %v9398_v44 = vsub.f32 %v5361_v1, %v5368_v56 }
0x21fa   :  { %v5370_v37 = vmul.f32 %v9398_v44, %v9398_v44 }
0x21fc   :  { %v5371_v7 = vsel %vm5364_vm3, %v5370_v37, 0.0  ;;  %v5769_v37 = vld [vmem:[%s9467_s21] ss:$0 sm:$0xff]  ;;  %s7670_s21 = smov [#allocation3]  }
0x21fd   :  { %5372 = vadd.xlane.f32.xlu1 %v5371_v7  ;;  %s5484_s29 = sshll.u32 %s7670_s21, 4  ;;  %s5485_s29 = int_to_ptr.vmem [resolvable:$true] %s5484_s29 }
0x21fe   :  { %s7636_s2 = scalar_lea.vmem %s5485_s29, 32  ;;  %p7641_p1 = scmp.lt.s32.totalorder %s5485_s29, %s5485_s29 }
0x21ff   :  { %p7637_p0 = scmp.ne.s32.totalorder %s5485_s29, %s7636_s2  ;;  %p7642_p2 = scmp.lt.s32.totalorder %s7636_s2, %s7636_s2 }
0x2201   :  { %p7643_p3 = por %p7642_p2, %p7641_p1 }
0x2203   :  { %p7644_p4 = pnand %p7643_p3, %p7637_p0 }
0x226c   :  { %v6692_v42 = vpop.f32.mrb[94].mxu0 }
0x226d   :  { %v9416_v9 = vadd.f32 %v6692_v42, %v9328_v55  ;;  %v5075_v58 = vpop.f32.mrb[95].mxu0 }
0x226e   :  { %v5076_v4 = vadd.f32 %v9328_v55, %v5075_v58 }
0x226f   :  { %v5089_v62 = vmul.f32 0.70710677, %v9416_v9  ;;  %v5227_v21 = vmul.f32 0.5, %v9416_v9 }
0x2270   :  { %v5088_v36 = vmul.f32 0.70710677, %v5076_v4  ;;  %v5226_v17 = vmul.f32 0.5, %v5076_v4 }
0x2271   :  { %v5107_v49 = vand.u32 2147483647, %v5089_v62  ;;  %vm5095_vm5 = vcmp.ge.f32.partialorder %v5089_v62, 0.0 }
0x2272   :  { %v5106_v34 = vand.u32 2147483647, %v5088_v36  ;;  %vm5094_vm6 = vcmp.ge.f32.partialorder %v5088_v36, 0.0  ;;  %v5101_v20 = vsel %vm5095_vm5, 1.0, %v7666_v12 }
0x2273   :  { %v5113_v28 = vmul.f32 0.3275911, %v5107_v49  ;;  %v5185_v54 = vsub.f32 0.0, %v5107_v49  ;;  %v5100_v56 = vsel %vm5094_vm6, 1.0, %v7666_v12  ;;  %v5770_v12 = vld [vmem:[%s9469_s23] ss:$0 sm:$0xff] }
0x2274   :  { %v5112_v46 = vmul.f32 0.3275911, %v5106_v34  ;;  %v5184_v19 = vsub.f32 0.0, %v5106_v34 }
0x2275   :  { %v5119_v24 = vadd.f32 1.0, %v5113_v28  ;;  %v5191_v59 = vmul.f32 %v5185_v54, %v5107_v49 }
0x2276   :  { %v5118_v32 = vadd.f32 1.0, %v5112_v46  ;;  %v5190_v18 = vmul.f32 %v5184_v19, %v5106_v34 }
0x2277   :  { %7618 = vrcp.f32 %v5119_v24  ;;  %v5202_v61 = vmul.f32 1.442695, %v5191_v59 }
0x2278   :  { %7620 = vrcp.f32 %v5118_v32  ;;  %v5200_v0 = vmul.f32 1.442695, %v5190_v18 }
0x2279   :  { %7622 = vpow2.f32 %v5202_v61 }
0x227a   :  { %7624 = vpow2.f32 %v5200_v0 }
0x2281   :  { %v7619_v41 = vpop.eup %7618 }
0x2282   :  { %v7621_v45 = vpop.eup %7620  ;;  %v5131_v33 = vmul.f32 1.0614054, %v7619_v41 }
0x2283   :  { %v5130_v48 = vmul.f32 1.0614054, %v7621_v45  ;;  %v7623_v10 = vpop.eup %7622 }
0x2284   :  { %v5137_v55 = vadd.f32 -1.4531521, %v5131_v33  ;;  %v7625_v23 = vpop.eup %7624 }
0x2285   :  { %v5136_v30 = vadd.f32 -1.4531521, %v5130_v48 }
0x2286   :  { %v5143_v63 = vmul.f32 %v7619_v41, %v5137_v55 }
0x2287   :  { %v5142_v39 = vmul.f32 %v7621_v45, %v5136_v30 }
0x2288   :  { %v5149_v53 = vadd.f32 1.4214138, %v5143_v63 }
0x2289   :  { %v5148_v22 = vadd.f32 1.4214138, %v5142_v39 }
0x228a   :  { %v5373_v15 = vpop.xlane.xlu1 %5372  ;;  %v5155_v60 = vmul.f32 %v7619_v41, %v5149_v53 }
0x228b   :  { %v5374_v11 = vmul.f32 0.03125, %v5373_v15  ;;  %v5154_v38 = vmul.f32 %v7621_v45, %v5148_v22 }
0x228c   :  { %v5161_v6 = vadd.f32 -0.28449672, %v5155_v60 }
0x228d   :  { %v5375_v52 = vadd.f32 1e-06, %v5374_v11  ;;  %v5160_v1 = vadd.f32 -0.28449672, %v5154_v38 }
0x228e   :  { %v5167_v2 = vmul.f32 %v7619_v41, %v5161_v6 }
0x228f   :  { %7626 = vrsqrt.f32 %v5375_v52  ;;  %v5166_v13 = vmul.f32 %v7621_v45, %v5160_v1 }
0x2290   :  { %v5173_v8 = vadd.f32 0.2548296, %v5167_v2 }
0x2291   :  { %v5172_v14 = vadd.f32 0.2548296, %v5166_v13 }
0x2292   :  { %v5179_v51 = vmul.f32 %v7619_v41, %v5173_v8 }
0x2293   :  { %v5178_v31 = vmul.f32 %v7621_v45, %v5172_v14 }
0x2294   :  { %v5209_v3 = vmul.f32 %v7623_v10, %v5179_v51 }
0x2295   :  { %v5208_v43 = vmul.f32 %v7625_v23, %v5178_v31 }
0x2296   :  { %v5215_v5 = vsub.f32 1.0, %v5209_v3 }
0x2297   :  { %v5214_v50 = vsub.f32 1.0, %v5208_v43 }
0x2298   :  { %v5221_v7 = vmul.f32 %v5215_v5, %v5101_v20 }
0x2299   :  { %v7627_v57 = vpop.eup %7626  ;;  %v5220_v29 = vmul.f32 %v5214_v50, %v5100_v56 }
0x229a   :  { %v5377_v16 = vmul.f32 %v7627_v57, %v9398_v44  ;;  %v5233_v40 = vadd.f32 1.0, %v5221_v7 }
0x229b   :  { %v5232_v35 = vadd.f32 1.0, %v5220_v29 }
0x229c   :  { %v5384_v27 = vmul.f32 %v5768_v47, %v5377_v16  ;;  %v5239_v44 = vmul.f32 %v5233_v40, %v5227_v21 }
0x229d   :  { %v5238_v25 = vmul.f32 %v5232_v35, %v5226_v17 }
0x229e   :  { %v5391_v26 = vadd.f32 %v5769_v37, %v5384_v27 }
0x229f   :  { %6731 = vmatprep.mubr.f32.mxu1 %v5238_v25 }
0x22a0   :  { %6743 = vmatmul.mubr.msk.f32.vlgmr.msra.gmra.mrb[96].mxu0 %vm218_vm1, %v5391_v26  ;;  %6732 = vmatmul.mubr.f32.gmra.mrb[76].mxu1 %v5239_v44 }
0x2373   :  { %v5472_v42 = vpop.f32.mrb[96].mxu0  ;;  %v6733_v62 = vpop.f32.mrb[76].mxu1 }
0x2374   :  { %v5473_v58 = vadd.f32 %v5770_v12, %v5472_v42  ;;  %v6744_v4 = vpop.f32.mrb[97].mxu0  ;;  %v5349_v9 = vpop.f32.mrb[77].mxu1 }
0x2376   :  { %5477 = vst.msk [vmem:[#allocation3] sm:$0x3] %vm5476_vm7, %v5473_v58 }
0x2377   :  { %7647 = shalt.err (!%p7644_p4)
}
0x2378   :  { %s9520_s23 = sld [smem:[#allocation15_spill]] }
0x237e   :  { %s7648_s15 = scalar_lea.hbm %s9520_s23, 32 }
0x237f   :  { %p7649_p5 = scmp.ne.s32.totalorder %s9520_s23, %s7648_s15  ;;  %p7652_p6 = scmp.lt.u32.totalorder %s7648_s15, %s9520_s23 }
0x2381   :  { %p7654_p7 = pnand %p7652_p6, %p7649_p5 }
0x2383   :  { %7657 = shalt.err (!%p7654_p7)
}
0x2384   :  { %5487 = dma.vmem_to_hbm [thread:$0]  %s5485_s29, 32, %s9520_s23, [#allocation4]  }
0x2385   :  { %7658 = dma.done.wait [#allocation4], 32  }
0x2386   :  { %7659 = vsyncadd [#allocation4], 4294967264 }
0x2387   :  { %5491 = vsyncpa [#allocation4], 1 }

</bundles_post_ra>
